<compile_context>
chip_gen: v7x
topology: tpu7x:2x2x1
jax: 0.10.0
libtpu: 0.0.40
codegen_flags: <defaults>
</compile_context>

<pallas_src>
import jax
import jax.numpy as jnp
from jax.experimental import pallas as pl
from jax.experimental.pallas import tpu as pltpu

EPS = 1e-5                      # nn.BatchNorm2d default eps
VMEM_LIMIT = 48 * 1024 * 1024   # explicit scoped-VMEM cap (fits v7x's 64 MiB physical VMEM)


def _round_up(x, m):
    return ((x + m - 1) // m) * m


# ---------------------------------------------------------------------------
# Shared conv body: im2col pack along K -> single MXU matmul -> raw conv output
# plus per-image per-channel BN partial statistics.
# ---------------------------------------------------------------------------
def _im2col_conv(h, w_ref, y_ref, sum_ref, sqsum_ref):
    # h:         (Hp, Wp, Cin) f32, spatially zero-padded (zero halo).
    # w_ref:     (KPAD, NPAD) bf16, taps packed along K in (ky, kx, ci) order.
    # y_ref:     (1, H*W, Cout) bf16  raw conv output (pre-BN).
    # sum_ref:   (1, 1, Cout) f32     per-image per-channel sum of conv output.
    # sqsum_ref: (1, 1, Cout) f32     per-image per-channel sum of squares.
    Hp, Wp, Cin = h.shape
    H, W = Hp - 2, Wp - 2
    KPAD = w_ref.shape[0]
    Cout = y_ref.shape[-1]

    # im2col: pack the 9 taps along the contraction dim -> one K-deep MXU matmul.
    cols = [h[ky:ky + H, kx:kx + W, :] for ky in range(3) for kx in range(3)]
    kpad_extra = KPAD - 9 * Cin
    if kpad_extra > 0:
        cols.append(jnp.zeros((H, W, kpad_extra), jnp.float32))
    patch = jnp.concatenate(cols, axis=-1)                    # (H, W, KPAD) f32
    patch = patch.reshape(H * W, KPAD).astype(jnp.bfloat16)

    acc = jnp.dot(patch, w_ref[...],
                  preferred_element_type=jnp.float32)[:, :Cout]   # (H*W, Cout) f32

    y_ref[0] = acc.astype(y_ref.dtype)
    sum_ref[0] = jnp.sum(acc, axis=0, keepdims=True)
    sqsum_ref[0] = jnp.sum(acc * acc, axis=0, keepdims=True)


# Kernel variant A: plain conv (stage 1) -- no BN operands at all.
def conv_kernel(x_ref, w_ref, y_ref, sum_ref, sqsum_ref):
    _im2col_conv(x_ref[0].astype(jnp.float32), w_ref, y_ref, sum_ref, sqsum_ref)


# Kernel variant B: fused BN+ReLU of the previous stage, then conv (stage 2).
def bnrelu_conv_kernel(x_ref, scale_ref, shift_ref, w_ref, y_ref, sum_ref, sqsum_ref):
    _, Hp, Wp, Cin = x_ref.shape
    H, W = Hp - 2, Wp - 2
    h = x_ref[0].astype(jnp.float32)                          # (Hp, Wp, Cin)
    # Folded BN scale/shift of the previous stage, then ReLU.
    h = jnp.maximum(h * scale_ref[...] + shift_ref[...], 0.0)
    # The 1-pixel halo must be zero *after* BN+ReLU (conv "same" zero padding).
    r = jax.lax.broadcasted_iota(jnp.int32, (Hp, Wp, Cin), 0)
    c = jax.lax.broadcasted_iota(jnp.int32, (Hp, Wp, Cin), 1)
    inside = (r >= 1) & (r <= H) & (c >= 1) & (c <= W)
    h = jnp.where(inside, h, 0.0)
    _im2col_conv(h, w_ref, y_ref, sum_ref, sqsum_ref)


def conv_stage(xp, w_packed, cout, scale=None, shift=None):
    """One conv stage on spatially padded NHWC input -> raw conv output + BN partials.

    If scale/shift are given, the previous stage's BN+ReLU is applied in-kernel first.
    """
    N, Hp, Wp, Cin = xp.shape
    H, W = Hp - 2, Wp - 2
    KPAD, NPAD = w_packed.shape

    if scale is not None:
        kernel = bnrelu_conv_kernel
        operands = (xp, scale, shift, w_packed)
        in_specs = [
            pl.BlockSpec((1, Hp, Wp, Cin), lambda n: (n, 0, 0, 0)),
            pl.BlockSpec((1, Cin), lambda n: (0, 0)),
            pl.BlockSpec((1, Cin), lambda n: (0, 0)),
            pl.BlockSpec((KPAD, NPAD), lambda n: (0, 0)),
        ]
    else:
        kernel = conv_kernel
        operands = (xp, w_packed)
        in_specs = [
            pl.BlockSpec((1, Hp, Wp, Cin), lambda n: (n, 0, 0, 0)),
            pl.BlockSpec((KPAD, NPAD), lambda n: (0, 0)),
        ]

    return pl.pallas_call(
        kernel,
        out_shape=(
            jax.ShapeDtypeStruct((N, H * W, cout), jnp.bfloat16),
            jax.ShapeDtypeStruct((N, 1, cout), jnp.float32),
            jax.ShapeDtypeStruct((N, 1, cout), jnp.float32),
        ),
        grid=(N,),
        in_specs=in_specs,
        out_specs=(
            pl.BlockSpec((1, H * W, cout), lambda n: (n, 0, 0)),
            pl.BlockSpec((1, 1, cout), lambda n: (n, 0, 0)),
            pl.BlockSpec((1, 1, cout), lambda n: (n, 0, 0)),
        ),
        compiler_params=pltpu.CompilerParams(
            dimension_semantics=("parallel",),
            vmem_limit_bytes=VMEM_LIMIT),
    )(*operands)


# ---------------------------------------------------------------------------
# Kernel 2: final BN (folded scale/shift) + ReLU — cheap mem-bound elementwise pass.
# ---------------------------------------------------------------------------
def bn_relu_kernel(y_ref, scale_ref, shift_ref, o_ref):
    y = y_ref[0].astype(jnp.float32)
    o_ref[0] = jnp.maximum(y * scale_ref[...] + shift_ref[...], 0.0)


def bn_relu(y, scale, shift):
    N, HW, C = y.shape
    return pl.pallas_call(
        bn_relu_kernel,
        out_shape=jax.ShapeDtypeStruct((N, HW, C), jnp.float32),
        grid=(N,),
        in_specs=[
            pl.BlockSpec((1, HW, C), lambda n: (n, 0, 0)),
            pl.BlockSpec((1, C), lambda n: (0, 0)),
            pl.BlockSpec((1, C), lambda n: (0, 0)),
        ],
        out_specs=pl.BlockSpec((1, HW, C), lambda n: (n, 0, 0)),
        compiler_params=pltpu.CompilerParams(
            dimension_semantics=("parallel",),
            vmem_limit_bytes=VMEM_LIMIT),
    )(y, scale, shift)


# ---------------------------------------------------------------------------
# Wrapper-side helpers (tiny per-channel math stays in plain XLA).
# ---------------------------------------------------------------------------
def _pack_weights(w_hwio):
    """(3,3,Cin,Cout) HWIO -> (KPAD, NPAD) bf16 with taps packed along K in (ky,kx,ci) order."""
    kh, kw, cin, cout = w_hwio.shape
    k = kh * kw * cin
    kpad = _round_up(k, 128)
    npad = _round_up(cout, 128)
    wp = jnp.pad(w_hwio.reshape(k, cout), ((0, kpad - k), (0, npad - cout)))
    return wp.astype(jnp.bfloat16)


def _fold_bn(sums, sqsums, gamma, beta, count):
    """Training-mode BatchNorm (biased batch stats) folded into per-channel scale/shift."""
    s = jnp.sum(sums[:, 0, :], axis=0)
    ss = jnp.sum(sqsums[:, 0, :], axis=0)
    mean = s / count
    var = jnp.maximum(ss / count - mean * mean, 0.0)   # one-pass var, guard cancellation
    scale = gamma * jax.lax.rsqrt(var + EPS)
    shift = beta - mean * scale
    return (scale.astype(jnp.float32).reshape(1, -1),
            shift.astype(jnp.float32).reshape(1, -1))


@jax.jit
def double_conv(x_nchw, w1, g1, b1, w2, g2, b2):
    """DoubleConv forward. x_nchw: (N, Cin, H, W) f32; returns (N, Cout, H, W) f32."""
    N, Cin, H, W = x_nchw.shape
    Cmid = w1.shape[-1]
    Cout = w2.shape[-1]
    count = N * H * W

    x = jnp.transpose(x_nchw, (0, 2, 3, 1)).astype(jnp.bfloat16)   # NCHW -> NHWC, bf16
    xp = jnp.pad(x, ((0, 0), (1, 1), (1, 1), (0, 0)))              # 1-pixel spatial halo

    w1p = _pack_weights(w1)
    w2p = _pack_weights(w2)

    # Stage 1: conv1 -> raw output + BN1 partial stats (no preceding BN/ReLU).
    y1, s1, q1 = conv_stage(xp, w1p, Cmid)
    sc1, sh1 = _fold_bn(s1, q1, g1, b1, count)

    # Stage 2: BN1+ReLU (fused in-kernel) -> conv2 -> raw output + BN2 partial stats.
    # Intermediate stays bf16 at its real channel count; reshape is free, pad is halo-only.
    y1p = jnp.pad(y1.reshape(N, H, W, Cmid), ((0, 0), (1, 1), (1, 1), (0, 0)))
    y2, s2, q2 = conv_stage(y1p, w2p, Cout, scale=sc1, shift=sh1)
    sc2, sh2 = _fold_bn(s2, q2, g2, b2, count)

    # Final BN2 + ReLU.
    out = bn_relu(y2, sc2, sh2)                                    # (N, H*W, Cout) f32
    return jnp.transpose(out.reshape(N, H, W, Cout), (0, 3, 1, 2)) # NHWC -> NCHW


# ---------------------------------------------------------------------------
# Pure-JAX f32 reference for one conv => BN(train) => ReLU stage.
# ---------------------------------------------------------------------------
def _ref_stage(x_nhwc, w, gamma, beta):
    y = jax.lax.conv_general_dilated(
        x_nhwc, w, (1, 1), "SAME",
        dimension_numbers=("NHWC", "HWIO", "NHWC"))
    mean = y.mean(axis=(0, 1, 2), keepdims=True)
    var = ((y - mean) ** 2).mean(axis=(0, 1, 2), keepdims=True)
    y = (y - mean) * jax.lax.rsqrt(var + EPS) * gamma + beta
    return jnp.maximum(y, 0.0)


if __name__ == "__main__":
    key = jax.random.PRNGKey(0)
    kx, kw1, kg1, kb1, kw2, kg2, kb2 = jax.random.split(key, 7)

    N, Cin, H, W = 2, 4, 16, 16
    Cmid = Cout = 8          # mid_channels defaults to out_channels

    x = jax.random.normal(kx, (N, Cin, H, W), jnp.float32)
    w1 = 0.1 * jax.random.normal(kw1, (3, 3, Cin, Cmid), jnp.float32)   # HWIO
    g1 = 1.0 + 0.1 * jax.random.normal(kg1, (Cmid,), jnp.float32)
    b1 = 0.1 * jax.random.normal(kb1, (Cmid,), jnp.float32)
    w2 = 0.1 * jax.random.normal(kw2, (3, 3, Cmid, Cout), jnp.float32)
    g2 = 1.0 + 0.1 * jax.random.normal(kg2, (Cout,), jnp.float32)
    b2 = 0.1 * jax.random.normal(kb2, (Cout,), jnp.float32)

    out = double_conv(x, w1, g1, b1, w2, g2, b2)
    out = jax.block_until_ready(out)
    assert out.shape == (N, Cout, H, W), out.shape

    # Check against a pure-f32 reference.  bf16 MXU inputs + bf16 intermediate storage imply
    # a looser tolerance than a pure-f32 pipeline (accumulation and BN stats stay f32).
    xh = jnp.transpose(x, (0, 2, 3, 1))
    ref = _ref_stage(_ref_stage(xh, w1, g1, b1), w2, g2, b2)
    ref = jnp.transpose(ref, (0, 3, 1, 2))
    err = float(jnp.max(jnp.abs(out - ref)))
    assert err < 7.5e-2, err
    print("KERNEL_OK")
</pallas_src>

<mosaic_0001>
module attributes {stable_mosaic.version = 11 : i64} {
  func.func @conv_kernel(%arg0: i32, %arg1: memref<1x18x18x4xbf16, #tpu.memory_space<vmem>>, %arg2: memref<128x128xbf16, #tpu.memory_space<vmem>>, %arg3: memref<1x256x8xbf16, #tpu.memory_space<vmem>>, %arg4: memref<1x1x8xf32, #tpu.memory_space<vmem>>, %arg5: memref<1x1x8xf32, #tpu.memory_space<vmem>>) attributes {dimension_semantics = [#tpu.dimension_semantics<parallel>], iteration_bounds = array<i64: 2>, scalar_prefetch = 0 : i64, scratch_operands = 0 : i64, tpu.core_type = #tpu.core_type<tc>, window_params = [{transform_indices = @transform_0, window_bounds = array<i64: 1, 18, 18, 4>}, {pipeline_mode = #tpu.pipeline_mode<synchronous>, transform_indices = @transform_1, window_bounds = array<i64: 128, 128>}, {transform_indices = @transform_2, window_bounds = array<i64: 1, 256, 8>}, {transform_indices = @transform_3, window_bounds = array<i64: 1, 1, 8>}, {transform_indices = @transform_4, window_bounds = array<i64: 1, 1, 8>}]} {
    %c0 = arith.constant 0 : index
    %c0_0 = arith.constant 0 : index
    %c0_1 = arith.constant 0 : index
    %c0_2 = arith.constant 0 : index
    %0 = vector.load %arg1[%c0, %c0_0, %c0_1, %c0_2] : memref<1x18x18x4xbf16, #tpu.memory_space<vmem>>, vector<1x18x18x4xbf16>
    %1 = vector.shape_cast %0 : vector<1x18x18x4xbf16> to vector<18x18x4xbf16>
    %2 = arith.extf %1 : vector<18x18x4xbf16> to vector<18x18x4xf32>
    %3 = vector.extract_strided_slice %2 {offsets = [0, 0, 0], sizes = [16, 16, 4], strides = [1, 1, 1]} : vector<18x18x4xf32> to vector<16x16x4xf32>
    %4 = vector.extract_strided_slice %2 {offsets = [0, 1, 0], sizes = [16, 16, 4], strides = [1, 1, 1]} : vector<18x18x4xf32> to vector<16x16x4xf32>
    %5 = vector.extract_strided_slice %2 {offsets = [0, 2, 0], sizes = [16, 16, 4], strides = [1, 1, 1]} : vector<18x18x4xf32> to vector<16x16x4xf32>
    %6 = vector.extract_strided_slice %2 {offsets = [1, 0, 0], sizes = [16, 16, 4], strides = [1, 1, 1]} : vector<18x18x4xf32> to vector<16x16x4xf32>
    %7 = vector.extract_strided_slice %2 {offsets = [1, 1, 0], sizes = [16, 16, 4], strides = [1, 1, 1]} : vector<18x18x4xf32> to vector<16x16x4xf32>
    %8 = vector.extract_strided_slice %2 {offsets = [1, 2, 0], sizes = [16, 16, 4], strides = [1, 1, 1]} : vector<18x18x4xf32> to vector<16x16x4xf32>
    %9 = vector.extract_strided_slice %2 {offsets = [2, 0, 0], sizes = [16, 16, 4], strides = [1, 1, 1]} : vector<18x18x4xf32> to vector<16x16x4xf32>
    %10 = vector.extract_strided_slice %2 {offsets = [2, 1, 0], sizes = [16, 16, 4], strides = [1, 1, 1]} : vector<18x18x4xf32> to vector<16x16x4xf32>
    %11 = vector.extract_strided_slice %2 {offsets = [2, 2, 0], sizes = [16, 16, 4], strides = [1, 1, 1]} : vector<18x18x4xf32> to vector<16x16x4xf32>
    %cst = arith.constant 0.000000e+00 : f32
    %12 = vector.broadcast %cst : f32 to vector<16x16x92xf32>
    %13 = tpu.concatenate %3, %4, %5, %6, %7, %8, %9, %10, %11, %12 in 2 : vector<16x16x4xf32>, vector<16x16x4xf32>, vector<16x16x4xf32>, vector<16x16x4xf32>, vector<16x16x4xf32>, vector<16x16x4xf32>, vector<16x16x4xf32>, vector<16x16x4xf32>, vector<16x16x4xf32>, vector<16x16x92xf32> -> vector<16x16x128xf32>
    %14 = vector.shape_cast %13 : vector<16x16x128xf32> to vector<256x128xf32>
    %15 = arith.truncf %14 : vector<256x128xf32> to vector<256x128xbf16>
    %c0_3 = arith.constant 0 : index
    %c0_4 = arith.constant 0 : index
    %16 = vector.load %arg2[%c0_3, %c0_4] : memref<128x128xbf16, #tpu.memory_space<vmem>>, vector<128x128xbf16>
    %cst_5 = arith.constant dense<0.000000e+00> : vector<256x128xf32>
    %17 = tpu.matmul %15, %16, %cst_5 {dimension_numbers = #tpu.dot_dimension_numbers<[1], [0], [0], [1], [0, 0, 1, 1], [], []>} : vector<256x128xbf16>, vector<128x128xbf16>, vector<256x128xf32> -> vector<256x128xf32>
    %18 = vector.extract_strided_slice %17 {offsets = [0, 0], sizes = [256, 8], strides = [1, 1]} : vector<256x128xf32> to vector<256x8xf32>
    %19 = arith.truncf %18 : vector<256x8xf32> to vector<256x8xbf16>
    %c0_6 = arith.constant 0 : index
    %c0_7 = arith.constant 0 : index
    %c0_8 = arith.constant 0 : index
    %20 = vector.load %arg3[%c0_6, %c0_7, %c0_8] : memref<1x256x8xbf16, #tpu.memory_space<vmem>>, vector<1x256x8xbf16>
    %21 = vector.shape_cast %20 : vector<1x256x8xbf16> to vector<256x8xbf16>
    %22 = vector.shape_cast %19 : vector<256x8xbf16> to vector<1x256x8xbf16>
    tpu.vector_store %arg3[%c0_6, %c0_7, %c0_8], %22 {strides = array<i32>} : memref<1x256x8xbf16, #tpu.memory_space<vmem>>, vector<1x256x8xbf16>,
    %cst_9 = arith.constant dense<0.000000e+00> : vector<8xf32>
    %23 = vector.multi_reduction <add>, %18, %cst_9 [0] : vector<256x8xf32> to vector<8xf32>
    %24 = vector.shape_cast %23 : vector<8xf32> to vector<1x8xf32>
    %c0_10 = arith.constant 0 : index
    %c0_11 = arith.constant 0 : index
    %c0_12 = arith.constant 0 : index
    %25 = vector.load %arg4[%c0_10, %c0_11, %c0_12] : memref<1x1x8xf32, #tpu.memory_space<vmem>>, vector<1x1x8xf32>
    %26 = vector.shape_cast %25 : vector<1x1x8xf32> to vector<1x8xf32>
    %27 = vector.shape_cast %24 : vector<1x8xf32> to vector<1x1x8xf32>
    tpu.vector_store %arg4[%c0_10, %c0_11, %c0_12], %27 {strides = array<i32>} : memref<1x1x8xf32, #tpu.memory_space<vmem>>, vector<1x1x8xf32>,
    %28 = arith.mulf %18, %18 : vector<256x8xf32>
    %cst_13 = arith.constant dense<0.000000e+00> : vector<8xf32>
    %29 = vector.multi_reduction <add>, %28, %cst_13 [0] : vector<256x8xf32> to vector<8xf32>
    %30 = vector.shape_cast %29 : vector<8xf32> to vector<1x8xf32>
    %c0_14 = arith.constant 0 : index
    %c0_15 = arith.constant 0 : index
    %c0_16 = arith.constant 0 : index
    %31 = vector.load %arg5[%c0_14, %c0_15, %c0_16] : memref<1x1x8xf32, #tpu.memory_space<vmem>>, vector<1x1x8xf32>
    %32 = vector.shape_cast %31 : vector<1x1x8xf32> to vector<1x8xf32>
    %33 = vector.shape_cast %30 : vector<1x8xf32> to vector<1x1x8xf32>
    tpu.vector_store %arg5[%c0_14, %c0_15, %c0_16], %33 {strides = array<i32>} : memref<1x1x8xf32, #tpu.memory_space<vmem>>, vector<1x1x8xf32>,
    return
  }
  func.func @transform_0(%arg0: i32) -> (i32, i32, i32, i32) {
    %c0_i32 = arith.constant 0 : i32
    %c0_i32_0 = arith.constant 0 : i32
    %c0_i32_1 = arith.constant 0 : i32
    %c0_i32_2 = arith.constant 0 : i32
    return %arg0, %c0_i32, %c0_i32_0, %c0_i32_1 : i32, i32, i32, i32
  }
  func.func @transform_1(%arg0: i32) -> (i32, i32) {
    %c0_i32 = arith.constant 0 : i32
    %c0_i32_0 = arith.constant 0 : i32
    %c0_i32_1 = arith.constant 0 : i32
    return %c0_i32, %c0_i32_0 : i32, i32
  }
  func.func @transform_2(%arg0: i32) -> (i32, i32, i32) {
    %c0_i32 = arith.constant 0 : i32
    %c0_i32_0 = arith.constant 0 : i32
    %c0_i32_1 = arith.constant 0 : i32
    return %arg0, %c0_i32, %c0_i32_0 : i32, i32, i32
  }
  func.func @transform_3(%arg0: i32) -> (i32, i32, i32) {
    %c0_i32 = arith.constant 0 : i32
    %c0_i32_0 = arith.constant 0 : i32
    %c0_i32_1 = arith.constant 0 : i32
    return %arg0, %c0_i32, %c0_i32_0 : i32, i32, i32
  }
  func.func @transform_4(%arg0: i32) -> (i32, i32, i32) {
    %c0_i32 = arith.constant 0 : i32
    %c0_i32_0 = arith.constant 0 : i32
    %c0_i32_1 = arith.constant 0 : i32
    return %arg0, %c0_i32, %c0_i32_0 : i32, i32, i32
  }
}

module attributes {stable_mosaic.version = 11 : i64} {
  func.func @bnrelu_conv_kernel(%arg0: i32, %arg1: memref<1x18x18x8xbf16, #tpu.memory_space<vmem>>, %arg2: memref<1x8xf32, #tpu.memory_space<vmem>>, %arg3: memref<1x8xf32, #tpu.memory_space<vmem>>, %arg4: memref<128x128xbf16, #tpu.memory_space<vmem>>, %arg5: memref<1x256x8xbf16, #tpu.memory_space<vmem>>, %arg6: memref<1x1x8xf32, #tpu.memory_space<vmem>>, %arg7: memref<1x1x8xf32, #tpu.memory_space<vmem>>) attributes {dimension_semantics = [#tpu.dimension_semantics<parallel>], iteration_bounds = array<i64: 2>, scalar_prefetch = 0 : i64, scratch_operands = 0 : i64, tpu.core_type = #tpu.core_type<tc>, window_params = [{transform_indices = @transform_0, window_bounds = array<i64: 1, 18, 18, 8>}, {pipeline_mode = #tpu.pipeline_mode<synchronous>, transform_indices = @transform_1, window_bounds = array<i64: 1, 8>}, {pipeline_mode = #tpu.pipeline_mode<synchronous>, transform_indices = @transform_2, window_bounds = array<i64: 1, 8>}, {pipeline_mode = #tpu.pipeline_mode<synchronous>, transform_indices = @transform_3, window_bounds = array<i64: 128, 128>}, {transform_indices = @transform_4, window_bounds = array<i64: 1, 256, 8>}, {transform_indices = @transform_5, window_bounds = array<i64: 1, 1, 8>}, {transform_indices = @transform_6, window_bounds = array<i64: 1, 1, 8>}]} {
    %c0 = arith.constant 0 : index
    %c0_0 = arith.constant 0 : index
    %c0_1 = arith.constant 0 : index
    %c0_2 = arith.constant 0 : index
    %0 = vector.load %arg1[%c0, %c0_0, %c0_1, %c0_2] : memref<1x18x18x8xbf16, #tpu.memory_space<vmem>>, vector<1x18x18x8xbf16>
    %1 = vector.shape_cast %0 : vector<1x18x18x8xbf16> to vector<18x18x8xbf16>
    %2 = arith.extf %1 : vector<18x18x8xbf16> to vector<18x18x8xf32>
    %c0_3 = arith.constant 0 : index
    %c0_4 = arith.constant 0 : index
    %3 = vector.load %arg2[%c0_3, %c0_4] : memref<1x8xf32, #tpu.memory_space<vmem>>, vector<1x8xf32>
    %4 = vector.shape_cast %3 : vector<1x8xf32> to vector<1x1x8xf32>
    %5 = vector.broadcast %4 : vector<1x1x8xf32> to vector<18x18x8xf32>
    %6 = arith.mulf %2, %5 : vector<18x18x8xf32>
    %c0_5 = arith.constant 0 : index
    %c0_6 = arith.constant 0 : index
    %7 = vector.load %arg3[%c0_5, %c0_6] : memref<1x8xf32, #tpu.memory_space<vmem>>, vector<1x8xf32>
    %8 = vector.shape_cast %7 : vector<1x8xf32> to vector<1x1x8xf32>
    %9 = vector.broadcast %8 : vector<1x1x8xf32> to vector<18x18x8xf32>
    %10 = arith.addf %6, %9 : vector<18x18x8xf32>
    %cst = arith.constant 0.000000e+00 : f32
    %11 = vector.broadcast %cst : f32 to vector<18x18x8xf32>
    %12 = arith.maximumf %10, %11 : vector<18x18x8xf32>
    %13 = tpu.iota {dimensions = array<i32: 0>} : vector<18x18x8xi32>
    %14 = tpu.iota {dimensions = array<i32: 1>} : vector<18x18x8xi32>
    %c1_i32 = arith.constant 1 : i32
    %15 = vector.broadcast %c1_i32 : i32 to vector<18x18x8xi32>
    %16 = arith.cmpi sge, %13, %15 : vector<18x18x8xi32>
    %c16_i32 = arith.constant 16 : i32
    %17 = vector.broadcast %c16_i32 : i32 to vector<18x18x8xi32>
    %18 = arith.cmpi sle, %13, %17 : vector<18x18x8xi32>
    %19 = arith.andi %16, %18 : vector<18x18x8xi1>
    %c1_i32_7 = arith.constant 1 : i32
    %20 = vector.broadcast %c1_i32_7 : i32 to vector<18x18x8xi32>
    %21 = arith.cmpi sge, %14, %20 : vector<18x18x8xi32>
    %22 = arith.andi %19, %21 : vector<18x18x8xi1>
    %c16_i32_8 = arith.constant 16 : i32
    %23 = vector.broadcast %c16_i32_8 : i32 to vector<18x18x8xi32>
    %24 = arith.cmpi sle, %14, %23 : vector<18x18x8xi32>
    %25 = arith.andi %22, %24 : vector<18x18x8xi1>
    %cst_9 = arith.constant 0.000000e+00 : f32
    %26 = vector.broadcast %cst_9 : f32 to vector<18x18x8xf32>
    %27 = arith.select %25, %12, %26 : vector<18x18x8xi1>, vector<18x18x8xf32>
    %28 = vector.extract_strided_slice %27 {offsets = [0, 0, 0], sizes = [16, 16, 8], strides = [1, 1, 1]} : vector<18x18x8xf32> to vector<16x16x8xf32>
    %29 = vector.extract_strided_slice %27 {offsets = [0, 1, 0], sizes = [16, 16, 8], strides = [1, 1, 1]} : vector<18x18x8xf32> to vector<16x16x8xf32>
    %30 = vector.extract_strided_slice %27 {offsets = [0, 2, 0], sizes = [16, 16, 8], strides = [1, 1, 1]} : vector<18x18x8xf32> to vector<16x16x8xf32>
    %31 = vector.extract_strided_slice %27 {offsets = [1, 0, 0], sizes = [16, 16, 8], strides = [1, 1, 1]} : vector<18x18x8xf32> to vector<16x16x8xf32>
    %32 = vector.extract_strided_slice %27 {offsets = [1, 1, 0], sizes = [16, 16, 8], strides = [1, 1, 1]} : vector<18x18x8xf32> to vector<16x16x8xf32>
    %33 = vector.extract_strided_slice %27 {offsets = [1, 2, 0], sizes = [16, 16, 8], strides = [1, 1, 1]} : vector<18x18x8xf32> to vector<16x16x8xf32>
    %34 = vector.extract_strided_slice %27 {offsets = [2, 0, 0], sizes = [16, 16, 8], strides = [1, 1, 1]} : vector<18x18x8xf32> to vector<16x16x8xf32>
    %35 = vector.extract_strided_slice %27 {offsets = [2, 1, 0], sizes = [16, 16, 8], strides = [1, 1, 1]} : vector<18x18x8xf32> to vector<16x16x8xf32>
    %36 = vector.extract_strided_slice %27 {offsets = [2, 2, 0], sizes = [16, 16, 8], strides = [1, 1, 1]} : vector<18x18x8xf32> to vector<16x16x8xf32>
    %cst_10 = arith.constant 0.000000e+00 : f32
    %37 = vector.broadcast %cst_10 : f32 to vector<16x16x56xf32>
    %38 = tpu.concatenate %28, %29, %30, %31, %32, %33, %34, %35, %36, %37 in 2 : vector<16x16x8xf32>, vector<16x16x8xf32>, vector<16x16x8xf32>, vector<16x16x8xf32>, vector<16x16x8xf32>, vector<16x16x8xf32>, vector<16x16x8xf32>, vector<16x16x8xf32>, vector<16x16x8xf32>, vector<16x16x56xf32> -> vector<16x16x128xf32>
    %39 = vector.shape_cast %38 : vector<16x16x128xf32> to vector<256x128xf32>
    %40 = arith.truncf %39 : vector<256x128xf32> to vector<256x128xbf16>
    %c0_11 = arith.constant 0 : index
    %c0_12 = arith.constant 0 : index
    %41 = vector.load %arg4[%c0_11, %c0_12] : memref<128x128xbf16, #tpu.memory_space<vmem>>, vector<128x128xbf16>
    %cst_13 = arith.constant dense<0.000000e+00> : vector<256x128xf32>
    %42 = tpu.matmul %40, %41, %cst_13 {dimension_numbers = #tpu.dot_dimension_numbers<[1], [0], [0], [1], [0, 0, 1, 1], [], []>} : vector<256x128xbf16>, vector<128x128xbf16>, vector<256x128xf32> -> vector<256x128xf32>
    %43 = vector.extract_strided_slice %42 {offsets = [0, 0], sizes = [256, 8], strides = [1, 1]} : vector<256x128xf32> to vector<256x8xf32>
    %44 = arith.truncf %43 : vector<256x8xf32> to vector<256x8xbf16>
    %c0_14 = arith.constant 0 : index
    %c0_15 = arith.constant 0 : index
    %c0_16 = arith.constant 0 : index
    %45 = vector.load %arg5[%c0_14, %c0_15, %c0_16] : memref<1x256x8xbf16, #tpu.memory_space<vmem>>, vector<1x256x8xbf16>
    %46 = vector.shape_cast %45 : vector<1x256x8xbf16> to vector<256x8xbf16>
    %47 = vector.shape_cast %44 : vector<256x8xbf16> to vector<1x256x8xbf16>
    tpu.vector_store %arg5[%c0_14, %c0_15, %c0_16], %47 {strides = array<i32>} : memref<1x256x8xbf16, #tpu.memory_space<vmem>>, vector<1x256x8xbf16>,
    %cst_17 = arith.constant dense<0.000000e+00> : vector<8xf32>
    %48 = vector.multi_reduction <add>, %43, %cst_17 [0] : vector<256x8xf32> to vector<8xf32>
    %49 = vector.shape_cast %48 : vector<8xf32> to vector<1x8xf32>
    %c0_18 = arith.constant 0 : index
    %c0_19 = arith.constant 0 : index
    %c0_20 = arith.constant 0 : index
    %50 = vector.load %arg6[%c0_18, %c0_19, %c0_20] : memref<1x1x8xf32, #tpu.memory_space<vmem>>, vector<1x1x8xf32>
    %51 = vector.shape_cast %50 : vector<1x1x8xf32> to vector<1x8xf32>
    %52 = vector.shape_cast %49 : vector<1x8xf32> to vector<1x1x8xf32>
    tpu.vector_store %arg6[%c0_18, %c0_19, %c0_20], %52 {strides = array<i32>} : memref<1x1x8xf32, #tpu.memory_space<vmem>>, vector<1x1x8xf32>,
    %53 = arith.mulf %43, %43 : vector<256x8xf32>
    %cst_21 = arith.constant dense<0.000000e+00> : vector<8xf32>
    %54 = vector.multi_reduction <add>, %53, %cst_21 [0] : vector<256x8xf32> to vector<8xf32>
    %55 = vector.shape_cast %54 : vector<8xf32> to vector<1x8xf32>
    %c0_22 = arith.constant 0 : index
    %c0_23 = arith.constant 0 : index
    %c0_24 = arith.constant 0 : index
    %56 = vector.load %arg7[%c0_22, %c0_23, %c0_24] : memref<1x1x8xf32, #tpu.memory_space<vmem>>, vector<1x1x8xf32>
    %57 = vector.shape_cast %56 : vector<1x1x8xf32> to vector<1x8xf32>
    %58 = vector.shape_cast %55 : vector<1x8xf32> to vector<1x1x8xf32>
    tpu.vector_store %arg7[%c0_22, %c0_23, %c0_24], %58 {strides = array<i32>} : memref<1x1x8xf32, #tpu.memory_space<vmem>>, vector<1x1x8xf32>,
    return
  }
  func.func @transform_0(%arg0: i32) -> (i32, i32, i32, i32) {
    %c0_i32 = arith.constant 0 : i32
    %c0_i32_0 = arith.constant 0 : i32
    %c0_i32_1 = arith.constant 0 : i32
    %c0_i32_2 = arith.constant 0 : i32
    return %arg0, %c0_i32, %c0_i32_0, %c0_i32_1 : i32, i32, i32, i32
  }
  func.func @transform_1(%arg0: i32) -> (i32, i32) {
    %c0_i32 = arith.constant 0 : i32
    %c0_i32_0 = arith.constant 0 : i32
    %c0_i32_1 = arith.constant 0 : i32
    return %c0_i32, %c0_i32_0 : i32, i32
  }
  func.func @transform_2(%arg0: i32) -> (i32, i32) {
    %c0_i32 = arith.constant 0 : i32
    %c0_i32_0 = arith.constant 0 : i32
    %c0_i32_1 = arith.constant 0 : i32
    return %c0_i32, %c0_i32_0 : i32, i32
  }
  func.func @transform_3(%arg0: i32) -> (i32, i32) {
    %c0_i32 = arith.constant 0 : i32
    %c0_i32_0 = arith.constant 0 : i32
    %c0_i32_1 = arith.constant 0 : i32
    return %c0_i32, %c0_i32_0 : i32, i32
  }
  func.func @transform_4(%arg0: i32) -> (i32, i32, i32) {
    %c0_i32 = arith.constant 0 : i32
    %c0_i32_0 = arith.constant 0 : i32
    %c0_i32_1 = arith.constant 0 : i32
    return %arg0, %c0_i32, %c0_i32_0 : i32, i32, i32
  }
  func.func @transform_5(%arg0: i32) -> (i32, i32, i32) {
    %c0_i32 = arith.constant 0 : i32
    %c0_i32_0 = arith.constant 0 : i32
    %c0_i32_1 = arith.constant 0 : i32
    return %arg0, %c0_i32, %c0_i32_0 : i32, i32, i32
  }
  func.func @transform_6(%arg0: i32) -> (i32, i32, i32) {
    %c0_i32 = arith.constant 0 : i32
    %c0_i32_0 = arith.constant 0 : i32
    %c0_i32_1 = arith.constant 0 : i32
    return %arg0, %c0_i32, %c0_i32_0 : i32, i32, i32
  }
}

module attributes {stable_mosaic.version = 11 : i64} {
  func.func @bn_relu_kernel(%arg0: i32, %arg1: memref<1x256x8xbf16, #tpu.memory_space<vmem>>, %arg2: memref<1x8xf32, #tpu.memory_space<vmem>>, %arg3: memref<1x8xf32, #tpu.memory_space<vmem>>, %arg4: memref<1x256x8xf32, #tpu.memory_space<vmem>>) attributes {dimension_semantics = [#tpu.dimension_semantics<parallel>], iteration_bounds = array<i64: 2>, scalar_prefetch = 0 : i64, scratch_operands = 0 : i64, tpu.core_type = #tpu.core_type<tc>, window_params = [{transform_indices = @transform_0, window_bounds = array<i64: 1, 256, 8>}, {pipeline_mode = #tpu.pipeline_mode<synchronous>, transform_indices = @transform_1, window_bounds = array<i64: 1, 8>}, {pipeline_mode = #tpu.pipeline_mode<synchronous>, transform_indices = @transform_2, window_bounds = array<i64: 1, 8>}, {transform_indices = @transform_3, window_bounds = array<i64: 1, 256, 8>}]} {
    %c0 = arith.constant 0 : index
    %c0_0 = arith.constant 0 : index
    %c0_1 = arith.constant 0 : index
    %0 = vector.load %arg1[%c0, %c0_0, %c0_1] : memref<1x256x8xbf16, #tpu.memory_space<vmem>>, vector<1x256x8xbf16>
    %1 = vector.shape_cast %0 : vector<1x256x8xbf16> to vector<256x8xbf16>
    %2 = arith.extf %1 : vector<256x8xbf16> to vector<256x8xf32>
    %c0_2 = arith.constant 0 : index
    %c0_3 = arith.constant 0 : index
    %3 = vector.load %arg2[%c0_2, %c0_3] : memref<1x8xf32, #tpu.memory_space<vmem>>, vector<1x8xf32>
    %4 = vector.broadcast %3 : vector<1x8xf32> to vector<256x8xf32>
    %5 = arith.mulf %2, %4 : vector<256x8xf32>
    %c0_4 = arith.constant 0 : index
    %c0_5 = arith.constant 0 : index
    %6 = vector.load %arg3[%c0_4, %c0_5] : memref<1x8xf32, #tpu.memory_space<vmem>>, vector<1x8xf32>
    %7 = vector.broadcast %6 : vector<1x8xf32> to vector<256x8xf32>
    %8 = arith.addf %5, %7 : vector<256x8xf32>
    %cst = arith.constant 0.000000e+00 : f32
    %9 = vector.broadcast %cst : f32 to vector<256x8xf32>
    %10 = arith.maximumf %8, %9 : vector<256x8xf32>
    %c0_6 = arith.constant 0 : index
    %c0_7 = arith.constant 0 : index
    %c0_8 = arith.constant 0 : index
    %11 = vector.load %arg4[%c0_6, %c0_7, %c0_8] : memref<1x256x8xf32, #tpu.memory_space<vmem>>, vector<1x256x8xf32>
    %12 = vector.shape_cast %11 : vector<1x256x8xf32> to vector<256x8xf32>
    %13 = vector.shape_cast %10 : vector<256x8xf32> to vector<1x256x8xf32>
    tpu.vector_store %arg4[%c0_6, %c0_7, %c0_8], %13 {strides = array<i32>} : memref<1x256x8xf32, #tpu.memory_space<vmem>>, vector<1x256x8xf32>,
    return
  }
  func.func @transform_0(%arg0: i32) -> (i32, i32, i32) {
    %c0_i32 = arith.constant 0 : i32
    %c0_i32_0 = arith.constant 0 : i32
    %c0_i32_1 = arith.constant 0 : i32
    return %arg0, %c0_i32, %c0_i32_0 : i32, i32, i32
  }
  func.func @transform_1(%arg0: i32) -> (i32, i32) {
    %c0_i32 = arith.constant 0 : i32
    %c0_i32_0 = arith.constant 0 : i32
    %c0_i32_1 = arith.constant 0 : i32
    return %c0_i32, %c0_i32_0 : i32, i32
  }
  func.func @transform_2(%arg0: i32) -> (i32, i32) {
    %c0_i32 = arith.constant 0 : i32
    %c0_i32_0 = arith.constant 0 : i32
    %c0_i32_1 = arith.constant 0 : i32
    return %c0_i32, %c0_i32_0 : i32, i32
  }
  func.func @transform_3(%arg0: i32) -> (i32, i32, i32) {
    %c0_i32 = arith.constant 0 : i32
    %c0_i32_0 = arith.constant 0 : i32
    %c0_i32_1 = arith.constant 0 : i32
    return %arg0, %c0_i32, %c0_i32_0 : i32, i32, i32
  }
}

</mosaic_0001>

<bundles_post_ra>
// kernel: double_conv.5
= control target key start
LH: loop header
LB: loop body
LE: loop exit
PB: predicated region body
PF: predicated region fallthrough
CT: control target
= control target key end

     0   :  { %s563_s12 = smov 0   ;;  %s742_s0 = inlined_call_operand.vmem [shape: bf16[2,256,8], index: 0, kind: input, shape index: {}]   ;;  %s743_s1 = inlined_call_operand.vmem [shape: f32[1,8], index: 1, kind: input, shape index: {}]   ;;  %s744_s2 = inlined_call_operand.vmem [shape: f32[1,8], index: 2, kind: input, shape index: {}]   ;;  %s745_s3 = inlined_call_operand.vmem [shape: f32[2,256,8], index: 3, kind: output, shape index: {}]  }
   0x1 LB: > { %s433_s13 = sadd.s32 4294967295, %s541_s12   ;;  %p437_p0 = scmp.ge.s32.totalorder %s541_s12, 1  ;;  %s541_s12 = sphi %s563_s12, %s13_s12  }
   0x2   : > { %p137_p1 = scmp.lt.s32.totalorder %s541_s12, 3 }
   0x4   : > { %p138_p2 = pnand %p437_p0, %p137_p1 }
   0x5   : > { %p161_p3 = scmp.lt.s32.totalorder (!%p138_p2), %s433_s13, 1  ;;  %v582_v0 = vld [vmem:[%s743_s1] ss:$0 sm:$0xff] (!%p138_p2)  ;;  %vm345_vm0 = vcmask (!%p138_p2), 64512  }
   0x6   : > { %141 = sbr.rel (%p138_p2) target bundleno = 53 (0x35), region = 32  ;;  %v591_v9 = vld [vmem:[%s744_s2] ss:$0 sm:$0xff] (!%p138_p2) }
   0xd   : > { %s747_s13 = smov (!%p161_p3, %s433_s13), 1 }
   0xe   : > { %s446_s14 = sshll.u32 %s747_s13, 7  ;;  %s447_s22 = sshll.u32 %s747_s13, 8 }
   0xf   : > { %s577_s17 = scalar_lea.vmem %s742_s0, %s446_s14  ;;  %s609_s25 = scalar_lea.vmem %s745_s3, %s447_s22 }
  0x10   : > { %v449_v1 = vld [vmem:[%s577_s17] sm:$0xff]   ;;  %v512_v2 = vld [vmem:[%s577_s17 + $0x8] sm:$0xff]   ;;  %v513_v3 = vld [vmem:[%s577_s17 + $0x10] sm:$0xff]  }
  0x11   : > { %v450_v4 = vunpack.c.l.bf16 %v449_v1  ;;  %v451_v5 = vunpack.c.h.bf16 %v449_v1  ;;  %v454_v6 = vunpack.c.l.bf16 %v512_v2  ;;  %v455_v7 = vunpack.c.h.bf16 %v512_v2  ;;  %v514_v8 = vld [vmem:[%s577_s17 + $0x18] sm:$0xff]   ;;  %v515_v30 = vld [vmem:[%s577_s17 + $0x20] sm:$0xff]   ;;  %v516_v31 = vld [vmem:[%s577_s17 + $0x28] sm:$0xff]  }
  0x12   : > { %v458_v10 = vunpack.c.l.bf16 %v513_v3  ;;  %v459_v11 = vunpack.c.h.bf16 %v513_v3  ;;  %v462_v12 = vunpack.c.l.bf16 %v514_v8  ;;  %v463_v13 = vunpack.c.h.bf16 %v514_v8  ;;  %v517_v36 = vld [vmem:[%s577_s17 + $0x30] sm:$0xff]   ;;  %v518_v37 = vld [vmem:[%s577_s17 + $0x38] sm:$0xff]   ;;  %v519_v3 = vld [vmem:[%s577_s17 + $0x40] sm:$0xff]  }
  0x13   : > { %v242_v14 = vmul.f32 %v450_v4, %v582_v0  ;;  %v243_v15 = vmul.f32 %v451_v5, %v582_v0  ;;  %v244_v16 = vmul.f32 %v454_v6, %v582_v0  ;;  %v245_v17 = vmul.f32 %v455_v7, %v582_v0  ;;  %v520_v4 = vld [vmem:[%s577_s17 + $0x48] sm:$0xff]  }
  0x14   : > { %v246_v18 = vmul.f32 %v458_v10, %v582_v0  ;;  %v247_v19 = vmul.f32 %v459_v11, %v582_v0  ;;  %v248_v20 = vmul.f32 %v462_v12, %v582_v0  ;;  %v249_v21 = vmul.f32 %v463_v13, %v582_v0  ;;  %v521_v10 = vld [vmem:[%s577_s17 + $0x50] sm:$0xff]   ;;  %v522_v11 = vld [vmem:[%s577_s17 + $0x58] sm:$0xff]  }
  0x15   : > { %v281_v22 = vadd.f32 %v591_v9, %v242_v14  ;;  %v282_v23 = vadd.f32 %v591_v9, %v243_v15  ;;  %v283_v24 = vadd.f32 %v591_v9, %v244_v16  ;;  %v284_v25 = vadd.f32 %v591_v9, %v245_v17 }
  0x16   : > { %v285_v26 = vadd.f32 %v591_v9, %v246_v18  ;;  %v286_v27 = vadd.f32 %v591_v9, %v247_v19  ;;  %v287_v28 = vadd.f32 %v591_v9, %v248_v20  ;;  %v288_v29 = vadd.f32 %v591_v9, %v249_v21 }
  0x17   : > { %v313_v32 = vmax.f32 %v281_v22, 0.0  ;;  %v314_v33 = vmax.f32 %v282_v23, 0.0  ;;  %v315_v34 = vmax.f32 %v283_v24, 0.0  ;;  %v316_v35 = vmax.f32 %v284_v25, 0.0 }
  0x18   : > { %v317_v38 = vmax.f32 %v285_v26, 0.0  ;;  %v318_v39 = vmax.f32 %v286_v27, 0.0  ;;  %v319_v40 = vmax.f32 %v287_v28, 0.0  ;;  %v320_v41 = vmax.f32 %v288_v29, 0.0 }
  0x19   : > { %346 = vst.msk [vmem:[%s609_s25] sm:$0xff] %vm345_vm0, %v313_v32  ;;  %347 = vst.msk [vmem:[%s609_s25 + $0x8] sm:$0xff] %vm345_vm0, %v314_v33  ;;  %v466_v42 = vunpack.c.l.bf16 %v515_v30  ;;  %v467_v43 = vunpack.c.h.bf16 %v515_v30  ;;  %v470_v44 = vunpack.c.l.bf16 %v516_v31  ;;  %v471_v45 = vunpack.c.h.bf16 %v516_v31 }
  0x1a   : > { %348 = vst.msk [vmem:[%s609_s25 + $0x10] sm:$0xff] %vm345_vm0, %v315_v34  ;;  %349 = vst.msk [vmem:[%s609_s25 + $0x18] sm:$0xff] %vm345_vm0, %v316_v35  ;;  %v474_v46 = vunpack.c.l.bf16 %v517_v36  ;;  %v475_v47 = vunpack.c.h.bf16 %v517_v36  ;;  %v478_v48 = vunpack.c.l.bf16 %v518_v37  ;;  %v479_v49 = vunpack.c.h.bf16 %v518_v37 }
  0x1b   : > { %350 = vst.msk [vmem:[%s609_s25 + $0x20] sm:$0xff] %vm345_vm0, %v317_v38  ;;  %351 = vst.msk [vmem:[%s609_s25 + $0x28] sm:$0xff] %vm345_vm0, %v318_v39  ;;  %v250_v50 = vmul.f32 %v466_v42, %v582_v0  ;;  %v251_v51 = vmul.f32 %v467_v43, %v582_v0  ;;  %v252_v52 = vmul.f32 %v470_v44, %v582_v0  ;;  %v482_v16 = vunpack.c.l.bf16 %v519_v3 }
  0x1c   : > { %352 = vst.msk [vmem:[%s609_s25 + $0x30] sm:$0xff] %vm345_vm0, %v319_v40  ;;  %353 = vst.msk [vmem:[%s609_s25 + $0x38] sm:$0xff] %vm345_vm0, %v320_v41  ;;  %v253_v53 = vmul.f32 %v471_v45, %v582_v0  ;;  %v254_v54 = vmul.f32 %v474_v46, %v582_v0  ;;  %v255_v55 = vmul.f32 %v475_v47, %v582_v0  ;;  %v483_v17 = vunpack.c.h.bf16 %v519_v3  ;;  %v523_v40 = vld [vmem:[%s577_s17 + $0x60] sm:$0xff]   ;;  %v524_v41 = vld [vmem:[%s577_s17 + $0x68] sm:$0xff]  }
  0x1d   : > { %v256_v56 = vmul.f32 %v478_v48, %v582_v0  ;;  %v257_v57 = vmul.f32 %v479_v49, %v582_v0  ;;  %v289_v58 = vadd.f32 %v591_v9, %v250_v50  ;;  %v290_v59 = vadd.f32 %v591_v9, %v251_v51  ;;  %v525_v46 = vld [vmem:[%s577_s17 + $0x70] sm:$0xff]   ;;  %v526_v47 = vld [vmem:[%s577_s17 + $0x78] sm:$0xff]  }
  0x1e   : > { %v291_v60 = vadd.f32 %v591_v9, %v252_v52  ;;  %v292_v61 = vadd.f32 %v591_v9, %v253_v53  ;;  %v293_v62 = vadd.f32 %v591_v9, %v254_v54  ;;  %v294_v63 = vadd.f32 %v591_v9, %v255_v55 }
  0x1f   : > { %v295_v1 = vadd.f32 %v591_v9, %v256_v56  ;;  %v296_v2 = vadd.f32 %v591_v9, %v257_v57  ;;  %v321_v5 = vmax.f32 %v289_v58, 0.0  ;;  %v322_v6 = vmax.f32 %v290_v59, 0.0 }
  0x20   : > { %v323_v7 = vmax.f32 %v291_v60, 0.0  ;;  %v324_v8 = vmax.f32 %v292_v61, 0.0  ;;  %v325_v12 = vmax.f32 %v293_v62, 0.0  ;;  %v326_v13 = vmax.f32 %v294_v63, 0.0 }
  0x21   : > { %v327_v14 = vmax.f32 %v295_v1, 0.0  ;;  %v328_v15 = vmax.f32 %v296_v2, 0.0  ;;  %354 = vst.msk [vmem:[%s609_s25 + $0x40] sm:$0xff] %vm345_vm0, %v321_v5  ;;  %355 = vst.msk [vmem:[%s609_s25 + $0x48] sm:$0xff] %vm345_vm0, %v322_v6  ;;  %v486_v18 = vunpack.c.l.bf16 %v520_v4  ;;  %v487_v19 = vunpack.c.h.bf16 %v520_v4 }
  0x22   : > { %356 = vst.msk [vmem:[%s609_s25 + $0x50] sm:$0xff] %vm345_vm0, %v323_v7  ;;  %357 = vst.msk [vmem:[%s609_s25 + $0x58] sm:$0xff] %vm345_vm0, %v324_v8  ;;  %v490_v20 = vunpack.c.l.bf16 %v521_v10  ;;  %v491_v21 = vunpack.c.h.bf16 %v521_v10  ;;  %v494_v22 = vunpack.c.l.bf16 %v522_v11  ;;  %v495_v23 = vunpack.c.h.bf16 %v522_v11 }
  0x23   : > { %358 = vst.msk [vmem:[%s609_s25 + $0x60] sm:$0xff] %vm345_vm0, %v325_v12  ;;  %359 = vst.msk [vmem:[%s609_s25 + $0x68] sm:$0xff] %vm345_vm0, %v326_v13  ;;  %v258_v24 = vmul.f32 %v482_v16, %v582_v0  ;;  %v259_v25 = vmul.f32 %v483_v17, %v582_v0  ;;  %v260_v26 = vmul.f32 %v486_v18, %v582_v0  ;;  %v498_v52 = vunpack.c.l.bf16 %v523_v40 }
  0x24   : > { %360 = vst.msk [vmem:[%s609_s25 + $0x70] sm:$0xff] %vm345_vm0, %v327_v14  ;;  %361 = vst.msk [vmem:[%s609_s25 + $0x78] sm:$0xff] %vm345_vm0, %v328_v15  ;;  %v261_v27 = vmul.f32 %v487_v19, %v582_v0  ;;  %v262_v28 = vmul.f32 %v490_v20, %v582_v0  ;;  %v263_v29 = vmul.f32 %v491_v21, %v582_v0  ;;  %v499_v53 = vunpack.c.h.bf16 %v523_v40 }
  0x25   : > { %v264_v30 = vmul.f32 %v494_v22, %v582_v0  ;;  %v265_v31 = vmul.f32 %v495_v23, %v582_v0  ;;  %v297_v32 = vadd.f32 %v591_v9, %v258_v24  ;;  %v298_v33 = vadd.f32 %v591_v9, %v259_v25 }
  0x26   : > { %v299_v34 = vadd.f32 %v591_v9, %v260_v26  ;;  %v300_v35 = vadd.f32 %v591_v9, %v261_v27  ;;  %v301_v36 = vadd.f32 %v591_v9, %v262_v28  ;;  %v302_v37 = vadd.f32 %v591_v9, %v263_v29 }
  0x27   : > { %v303_v38 = vadd.f32 %v591_v9, %v264_v30  ;;  %v304_v39 = vadd.f32 %v591_v9, %v265_v31  ;;  %v329_v42 = vmax.f32 %v297_v32, 0.0  ;;  %v330_v43 = vmax.f32 %v298_v33, 0.0 }
  0x28   : > { %v331_v44 = vmax.f32 %v299_v34, 0.0  ;;  %v332_v45 = vmax.f32 %v300_v35, 0.0  ;;  %v333_v48 = vmax.f32 %v301_v36, 0.0  ;;  %v334_v49 = vmax.f32 %v302_v37, 0.0 }
  0x29   : > { %v335_v50 = vmax.f32 %v303_v38, 0.0  ;;  %v336_v51 = vmax.f32 %v304_v39, 0.0  ;;  %362 = vst.msk [vmem:[%s609_s25 + $0x80] sm:$0xff] %vm345_vm0, %v329_v42  ;;  %363 = vst.msk [vmem:[%s609_s25 + $0x88] sm:$0xff] %vm345_vm0, %v330_v43  ;;  %v502_v54 = vunpack.c.l.bf16 %v524_v41  ;;  %v503_v55 = vunpack.c.h.bf16 %v524_v41 }
  0x2a   : > { %364 = vst.msk [vmem:[%s609_s25 + $0x90] sm:$0xff] %vm345_vm0, %v331_v44  ;;  %365 = vst.msk [vmem:[%s609_s25 + $0x98] sm:$0xff] %vm345_vm0, %v332_v45  ;;  %v506_v56 = vunpack.c.l.bf16 %v525_v46  ;;  %v507_v57 = vunpack.c.h.bf16 %v525_v46  ;;  %v510_v58 = vunpack.c.l.bf16 %v526_v47  ;;  %v511_v59 = vunpack.c.h.bf16 %v526_v47 }
  0x2b   : > { %366 = vst.msk [vmem:[%s609_s25 + $0xa0] sm:$0xff] %vm345_vm0, %v333_v48  ;;  %367 = vst.msk [vmem:[%s609_s25 + $0xa8] sm:$0xff] %vm345_vm0, %v334_v49  ;;  %v266_v60 = vmul.f32 %v498_v52, %v582_v0  ;;  %v267_v61 = vmul.f32 %v499_v53, %v582_v0  ;;  %v268_v62 = vmul.f32 %v502_v54, %v582_v0 }
  0x2c   : > { %368 = vst.msk [vmem:[%s609_s25 + $0xb0] sm:$0xff] %vm345_vm0, %v335_v50  ;;  %369 = vst.msk [vmem:[%s609_s25 + $0xb8] sm:$0xff] %vm345_vm0, %v336_v51  ;;  %v269_v63 = vmul.f32 %v503_v55, %v582_v0  ;;  %v270_v1 = vmul.f32 %v506_v56, %v582_v0  ;;  %v271_v2 = vmul.f32 %v507_v57, %v582_v0 }
  0x2d   : > { %v272_v3 = vmul.f32 %v510_v58, %v582_v0  ;;  %v273_v4 = vmul.f32 %v511_v59, %v582_v0  ;;  %v305_v5 = vadd.f32 %v591_v9, %v266_v60  ;;  %v306_v6 = vadd.f32 %v591_v9, %v267_v61 }
  0x2e   : > { %v307_v7 = vadd.f32 %v591_v9, %v268_v62  ;;  %v308_v8 = vadd.f32 %v591_v9, %v269_v63  ;;  %v309_v10 = vadd.f32 %v591_v9, %v270_v1  ;;  %v310_v11 = vadd.f32 %v591_v9, %v271_v2 }
  0x2f   : > { %v311_v0 = vadd.f32 %v591_v9, %v272_v3  ;;  %v312_v12 = vadd.f32 %v591_v9, %v273_v4  ;;  %v337_v13 = vmax.f32 %v305_v5, 0.0  ;;  %v338_v14 = vmax.f32 %v306_v6, 0.0 }
  0x30   : > { %v339_v15 = vmax.f32 %v307_v7, 0.0  ;;  %v340_v16 = vmax.f32 %v308_v8, 0.0  ;;  %v341_v17 = vmax.f32 %v309_v10, 0.0  ;;  %v342_v18 = vmax.f32 %v310_v11, 0.0 }
  0x31   : > { %v343_v19 = vmax.f32 %v311_v0, 0.0  ;;  %v344_v20 = vmax.f32 %v312_v12, 0.0  ;;  %370 = vst.msk [vmem:[%s609_s25 + $0xc0] sm:$0xff] %vm345_vm0, %v337_v13  ;;  %371 = vst.msk [vmem:[%s609_s25 + $0xc8] sm:$0xff] %vm345_vm0, %v338_v14 }
  0x32   : > { %372 = vst.msk [vmem:[%s609_s25 + $0xd0] sm:$0xff] %vm345_vm0, %v339_v15  ;;  %373 = vst.msk [vmem:[%s609_s25 + $0xd8] sm:$0xff] %vm345_vm0, %v340_v16 }
  0x33   : > { %374 = vst.msk [vmem:[%s609_s25 + $0xe0] sm:$0xff] %vm345_vm0, %v341_v17  ;;  %375 = vst.msk [vmem:[%s609_s25 + $0xe8] sm:$0xff] %vm345_vm0, %v342_v18 }
  0x34   : > { %376 = vst.msk [vmem:[%s609_s25 + $0xf0] sm:$0xff] %vm345_vm0, %v343_v19  ;;  %377 = vst.msk [vmem:[%s609_s25 + $0xf8] sm:$0xff] %vm345_vm0, %v344_v20 }
  0x35 PF: > { %s13_s12 = sadd.s32 1, %s541_s12  }
  0x36   : > { %p10_p4 = scmp.ge.s32.totalorder %s13_s12, 4  }
  0x38   :  { %12 = sbr.rel (!%p10_p4) target bundleno = 1 (0x1), region = 62 }

// kernel: double_conv.3
= control target key start
LH: loop header
LB: loop body
LE: loop exit
PB: predicated region body
PF: predicated region fallthrough
CT: control target
= control target key end

     0   :  { %s3274_s15 = smov 0   ;;  %s4707_s0 = inlined_call_operand.vmem [shape: bf16[2,18,18,4], index: 0, kind: input, shape index: {}]   ;;  %s4708_s1 = inlined_call_operand.vmem [shape: bf16[128,128], index: 1, kind: input, shape index: {}]   ;;  %s4709_s2 = inlined_call_operand.vmem [shape: bf16[2,256,8], index: 2, kind: output, shape index: {0}]   ;;  %s4710_s3 = inlined_call_operand.vmem [shape: f32[2,1,8], index: 3, kind: output, shape index: {1}]   ;;  %s4711_s4 = inlined_call_operand.vmem [shape: f32[2,1,8], index: 4, kind: output, shape index: {2}]  }
   0x1 LB: > { %s2305_s16 = sadd.s32 4294967295, %s3239_s15   ;;  %p2309_p0 = scmp.ge.s32.totalorder %s3239_s15, 1  ;;  %s3239_s15 = sphi %s3274_s15, %s15_s15  }
   0x2   : > { %p167_p1 = scmp.lt.s32.totalorder %s3239_s15, 3 }
   0x4   : > { %p168_p2 = pnand %p2309_p0, %p167_p1 }
   0x6   : > { %171 = sbr.rel (%p168_p2) target bundleno = 642 (0x282), region = 28 }
   0xd   : > { %p199_p3 = scmp.lt.s32.totalorder %s2305_s16, 1  ;;  %vm372_vm0 = vcmask 1046528   ;;  %s3241_s21 = smov 4   ;;  %vm549_vm1 = vcmask 1045504   ;;  %vm1328_vm2 = vcmask 31744   ;;  %vm1361_vm3 = vcmask 64512  }
   0xe   : > { %s3242_s22 = smov 8   ;;  %s3243_s27 = smov 12   ;;  %vm1394_vm4 = vcmask 97280   ;;  %vm1427_vm5 = vcmask 130048   ;;  %vm1460_vm6 = vcmask 162816   ;;  %vm1493_vm7 = vcmask 195584  }
   0xf   : > { %s4915_s16 = smov (!%p199_p3, %s2305_s16), 1  ;;  %s3244_s8 = smov 16   ;;  %vm1526_vm8 = vcmask 228352   ;;  %vm1559_vm9 = vcmask 261120   ;;  %vm1592_vm10 = vcmask 293888   ;;  %vm1994_vm12 = vcmask 60416  }
  0x10   : > { %s2568_s17 = smul.u32 216, %s4915_s16  ;;  %s3245_s11 = smov 20   ;;  %vm4110_vm11 = vmpackc.low %vm1592_vm10, %vm1592_vm10  ;;  %vm2096_vm13 = vcmask 57344  }
  0x11   : > { %s3246_s14 = smov 24   ;;  %s3247_s19 = smov 28  }
  0x12   : > { %s3288_s20 = scalar_lea.vmem %s4707_s0, %s2568_s17  ;;  %s214_s30 = scalar_lea.vmem %s4711_s4, %s4915_s16 }
  0x13   : > { %v2472_v0 = vld [vmem:[%s3288_s20 + $0x18] sm:$0xff]   ;;  %v3292_v1 = vld [vmem:[%s3288_s20 + $0x20] sm:$0x1]  ;;  %v3303_v7 = vld [vmem:[%s3288_s20 + $0x8] sm:$0x1] }
  0x14   : > { %v2437_v2 = vld [vmem:[%s3288_s20] sm:$0xff]   ;;  %v3295_v3 = vunpack.c.l.bf16 %v2472_v0  ;;  %v3297_v4 = vunpack.c.h.bf16 %v2472_v0  ;;  %v4718_v5 = vunpack.c.l.bf16 %v3292_v1  ;;  %v3307_v9 = vld [vmem:[%s3288_s20 + $0x2c] sm:$0x1]  ;;  %v4721_v11 = vunpack.c.l.bf16 %v3303_v7  ;;  %v3328_v23 = vld [vmem:[%s3288_s20 + $0x14] sm:$0x1] }
  0x15   : > { %v3300_v6 = vunpack.c.l.bf16 %v2437_v2  ;;  %v225_v8 = vld [vmem:[%s3288_s20 + $0x24] sm:$0xff]   ;;  %v3309_v10 = vunpack.c.h.bf16 %v2437_v2  ;;  %v219_v14 = vld [vmem:[%s3288_s20 + $0xc] sm:$0xff]   ;;  %v4720_v21 = vunpack.c.l.bf16 %v3307_v9  ;;  %v231_v28 = vld [vmem:[%s3288_s20 + $0x3c] sm:$0xff]   ;;  %v4722_v37 = vunpack.c.l.bf16 %v3328_v23 }
  0x16   : > { %v3312_v12 = vunpack.c.l.bf16 %v225_v8  ;;  %v3314_v13 = vunpack.c.h.bf16 %v225_v8  ;;  %v383_v15 = vrot.slane %v3295_v3, 1  ;;  %v384_v16 = vrot.slane %v3297_v4, 1  ;;  %v3343_v33 = vld [vmem:[%s3288_s20 + $0x44] sm:$0x1]  ;;  %v2473_v38 = vld [vmem:[%s3288_s20 + $0x30] sm:$0xff]   ;;  %v2474_v58 = vld [vmem:[%s3288_s20 + $0x48] sm:$0xff]  }
  0x17   : > { %v386_v17 = vrot.slane %v4718_v5, 1  ;;  %v373_v18 = vrot.slane %v3300_v6, 1  ;;  %v374_v19 = vrot.slane %v3309_v10, 1  ;;  %v376_v20 = vrot.slane %v4721_v11, 1  ;;  %v3359_v43 = vld [vmem:[%s3288_s20 + $0x38] sm:$0x1] }
  0x18   : > { %v388_v22 = vrot.slane %v3312_v12, 1  ;;  %v385_v24 = vsel %vm372_vm0, %v383_v15, %v384_v16  ;;  %v389_v26 = vrot.slane %v3314_v13, 1  ;;  %v3333_v27 = vunpack.c.l.bf16 %v219_v14  ;;  %v237_v52 = vld [vmem:[%s3288_s20 + $0x54] sm:$0xff]   ;;  %v3381_v57 = vld [vmem:[%s3288_s20 + $0x5c] sm:$0x1] }
  0x19   : > { %v387_v25 = vsel %vm372_vm0, %v384_v16, %v386_v17  ;;  %v375_v30 = vsel %vm372_vm0, %v373_v18, %v374_v19  ;;  %v377_v31 = vsel %vm372_vm0, %v374_v19, %v376_v20  ;;  %v391_v32 = vrot.slane %v4720_v21, 1  ;;  %v243_v19 = vld [vmem:[%s3288_s20 + $0x6c] sm:$0xff]   ;;  %v3510_v5 = vld [vmem:[%s3288_s20 + $0x98] sm:$0x1] }
  0x1a   : > { %4790 = vst [vmem:[#allocation2_spill] sm:$0xff] %v3333_v27  ;;  %v3336_v29 = vpack.i.bf16 %v387_v25, %v385_v24  ;;  %v2585_v34 = vpack.i.bf16 %v377_v31, %v375_v30  ;;  %v390_v35 = vsel %vm372_vm0, %v388_v22, %v389_v26  ;;  %v3346_v36 = vunpack.c.h.bf16 %v219_v14  ;;  %v3399_v14 = vld [vmem:[%s3288_s20 + $0x50] sm:$0x1]  ;;  %v261_v21 = vld [vmem:[%s3288_s20 + $0xb4] sm:$0xff]  }
  0x1b   : > { %v392_v39 = vsel %vm372_vm0, %v389_v26, %v391_v32  ;;  %v378_v40 = vrot.slane %v3333_v27, 1  ;;  %v3354_v41 = vunpack.c.l.bf16 %v231_v28  ;;  %v3356_v42 = vunpack.c.h.bf16 %v231_v28  ;;  %v3416_v26 = vld [vmem:[%s3288_s20 + $0x74] sm:$0x1]  ;;  %v2475_v28 = vld [vmem:[%s3288_s20 + $0x60] sm:$0xff]  }
  0x1c   : > { %4791 = vst [vmem:[#allocation3_spill] sm:$0xff] %v3336_v29  ;;  %4792 = vst [vmem:[#allocation4_spill] sm:$0xff] %v3346_v36  ;;  %2596 = vrot.lane.b32.xlu1 %v3336_v29, %s3241_s21  ;;  %2586 = vrot.lane.b32.xlu0 %v2585_v34, %s3241_s21  ;;  %v3362_v44 = vpack.i.bf16 %v392_v39, %v390_v35  ;;  %v379_v45 = vrot.slane %v3346_v36, 1  ;;  %v381_v46 = vrot.slane %v4722_v37, 1  ;;  %v4717_v47 = vunpack.c.l.bf16 %v3343_v33 }
  0x1d   : > { %v398_v48 = vrot.slane %v3354_v41, 1  ;;  %v399_v49 = vrot.slane %v3356_v42, 1  ;;  %v3370_v50 = vunpack.c.l.bf16 %v2473_v38  ;;  %v3372_v51 = vunpack.c.h.bf16 %v2473_v38 }
  0x1e   : > { %4793 = vst [vmem:[#allocation5_spill] sm:$0xff] %v3362_v44  ;;  %v380_v53 = vsel %vm372_vm0, %v378_v40, %v379_v45  ;;  %v382_v54 = vsel %vm372_vm0, %v379_v45, %v381_v46  ;;  %v401_v55 = vrot.slane %v4717_v47, 1  ;;  %v4716_v56 = vunpack.c.l.bf16 %v3359_v43  ;;  %v3434_v45 = vld [vmem:[%s3288_s20 + $0x68] sm:$0x1] }
  0x1f   : > { %4794 = vst [vmem:[#allocation6_spill] sm:$0xff] %v3370_v50  ;;  %v3386_v59 = vpack.i.bf16 %v382_v54, %v380_v53  ;;  %v400_v60 = vsel %vm372_vm0, %v398_v48, %v399_v49  ;;  %v393_v61 = vrot.slane %v3370_v50, 1  ;;  %v394_v62 = vrot.slane %v3372_v51, 1  ;;  %v249_v53 = vld [vmem:[%s3288_s20 + $0x84] sm:$0xff]  }
  0x20   : > { %2601 = vrot.lane.b32.xlu1 %v3362_v44, %s3241_s21  ;;  %v402_v63 = vsel %vm372_vm0, %v399_v49, %v401_v55  ;;  %v396_v0 = vrot.slane %v4716_v56, 1  ;;  %v3394_v2 = vunpack.c.l.bf16 %v237_v52  ;;  %v3396_v8 = vunpack.c.h.bf16 %v237_v52 }
  0x21   : > { %4795 = vst [vmem:[#allocation7_spill] sm:$0xff] %v3386_v59  ;;  %2591 = vrot.lane.b32.xlu0 %v3386_v59, %s3241_s21  ;;  %v3403_v15 = vpack.i.bf16 %v402_v63, %v400_v60  ;;  %v395_v16 = vsel %vm372_vm0, %v393_v61, %v394_v62  ;;  %v4715_v17 = vunpack.c.l.bf16 %v3381_v57  ;;  %v3407_v18 = vunpack.c.l.bf16 %v2474_v58 }
  0x22   : > { %4796 = vst [vmem:[#allocation8_spill] sm:$0xff] %v3394_v2  ;;  %4797 = vst [vmem:[#allocation9_spill] sm:$0xff] %v3396_v8  ;;  %v397_v20 = vsel %vm372_vm0, %v394_v62, %v396_v0  ;;  %v408_v22 = vrot.slane %v3394_v2, 1  ;;  %v409_v24 = vrot.slane %v3396_v8, 1  ;;  %v3413_v25 = vunpack.c.h.bf16 %v2474_v58 }
  0x23   : > { %4798 = vst [vmem:[#allocation10_spill] sm:$0xff] %v3403_v15  ;;  %v3421_v30 = vpack.i.bf16 %v397_v20, %v395_v16  ;;  %v411_v31 = vrot.slane %v4715_v17, 1  ;;  %v4714_v32 = vunpack.c.l.bf16 %v3399_v14  ;;  %v403_v34 = vrot.slane %v3407_v18, 1  ;;  %v3457_v16 = vld [vmem:[%s3288_s20 + $0x8c] sm:$0x1] }
  0x24   : > { %2611 = vrot.lane.b32.xlu1 %v3403_v15, %s3241_s21  ;;  %v410_v35 = vsel %vm372_vm0, %v408_v22, %v409_v24  ;;  %v404_v38 = vrot.slane %v3413_v25, 1  ;;  %v3429_v39 = vunpack.c.l.bf16 %v243_v19  ;;  %v3431_v40 = vunpack.c.h.bf16 %v243_v19  ;;  %v2476_v19 = vld [vmem:[%s3288_s20 + $0x78] sm:$0xff]  }
  0x25   : > { %4799 = vst [vmem:[#allocation11_spill] sm:$0xff] %v3421_v30  ;;  %2606 = vrot.lane.b32.xlu0 %v3421_v30, %s3241_s21  ;;  %v412_v46 = vsel %vm372_vm0, %v409_v24, %v411_v31  ;;  %v406_v48 = vrot.slane %v4714_v32, 1  ;;  %v4713_v49 = vunpack.c.l.bf16 %v3416_v26  ;;  %v3442_v52 = vunpack.c.l.bf16 %v2475_v28  ;;  %v3492_v32 = vld [vmem:[%s3288_s20 + $0xa4] sm:$0x1]  ;;  %v3551_v30 = vld [vmem:[%s3288_s20 + $0xb0] sm:$0x1] }
  0x26   : > { %4800 = vst [vmem:[#allocation12_spill] sm:$0xff] %v3429_v39  ;;  %4801 = vst [vmem:[#allocation13_spill] sm:$0xff] %v3431_v40  ;;  %v3445_v54 = vpack.i.bf16 %v412_v46, %v410_v35  ;;  %v405_v55 = vsel %vm372_vm0, %v403_v34, %v404_v38  ;;  %v418_v58 = vrot.slane %v3429_v39, 1  ;;  %v419_v60 = vrot.slane %v3431_v40, 1  ;;  %v3475_v46 = vld [vmem:[%s3288_s20 + $0x80] sm:$0x1] }
  0x27   : > { %4802 = vst [vmem:[#allocation14_spill] sm:$0xff] %v3442_v52  ;;  %v407_v61 = vsel %vm372_vm0, %v404_v38, %v406_v48  ;;  %v421_v62 = vrot.slane %v4713_v49, 1  ;;  %v3453_v63 = vunpack.c.h.bf16 %v2475_v28  ;;  %v4712_v0 = vunpack.c.l.bf16 %v3434_v45 }
  0x28   : > { %4803 = vst [vmem:[#allocation15_spill] sm:$0xff] %v3445_v54  ;;  %2621 = vrot.lane.b32.xlu1 %v3445_v54, %s3241_s21  ;;  %v3462_v20 = vpack.i.bf16 %v407_v61, %v405_v55  ;;  %v420_v22 = vsel %vm372_vm0, %v418_v58, %v419_v60  ;;  %v413_v24 = vrot.slane %v3442_v52, 1  ;;  %v3466_v31 = vunpack.c.l.bf16 %v249_v53  ;;  %v255_v61 = vld [vmem:[%s3288_s20 + $0x9c] sm:$0xff]  }
  0x29   : > { %4804 = vst [vmem:[#allocation16_spill] sm:$0xff] %v3453_v63  ;;  %v422_v28 = vsel %vm372_vm0, %v419_v60, %v421_v62  ;;  %v414_v34 = vrot.slane %v3453_v63, 1  ;;  %v416_v35 = vrot.slane %v4712_v0, 1  ;;  %v3472_v38 = vunpack.c.h.bf16 %v249_v53  ;;  %v3533_v54 = vld [vmem:[%s3288_s20 + $0xbc] sm:$0x1] }
  0x2a   : > { %4805 = vst [vmem:[#allocation17_spill] sm:$0xff] %v3462_v20  ;;  %4806 = vst [vmem:[#allocation18_spill] sm:$0xff] %v3466_v31  ;;  %2616 = vrot.lane.b32.xlu0 %v3462_v20, %s3241_s21  ;;  %v3479_v48 = vpack.i.bf16 %v422_v28, %v420_v22  ;;  %v4719_v55 = vunpack.c.l.bf16 %v3457_v16  ;;  %v428_v58 = vrot.slane %v3466_v31, 1  ;;  %v3483_v60 = vunpack.c.l.bf16 %v2476_v19  ;;  %v2477_v22 = vld [vmem:[%s3288_s20 + $0x90] sm:$0xff]  }
  0x2b   : > { %4807 = vst [vmem:[#allocation19_spill] sm:$0xff] %v3472_v38  ;;  %v415_v62 = vsel %vm372_vm0, %v413_v24, %v414_v34  ;;  %v417_v53 = vsel %vm372_vm0, %v414_v34, %v416_v35  ;;  %v429_v0 = vrot.slane %v3472_v38, 1  ;;  %v3489_v49 = vunpack.c.h.bf16 %v2476_v19 }
  0x2c   : > { %4808 = vst [vmem:[#allocation20_spill] sm:$0xff] %v3479_v48  ;;  %4809 = vst [vmem:[#allocation21_spill] sm:$0xff] %v3483_v60  ;;  %2631 = vrot.lane.b32.xlu1 %v3479_v48, %s3241_s21  ;;  %v3497_v28 = vpack.i.bf16 %v417_v53, %v415_v62  ;;  %v431_v17 = vrot.slane %v4719_v55, 1  ;;  %v4727_v24 = vunpack.c.l.bf16 %v3475_v46  ;;  %v423_v34 = vrot.slane %v3483_v60, 1 }
  0x2d   : > { %4810 = vst [vmem:[#allocation22_spill] sm:$0xff] %v3489_v49  ;;  %v430_v35 = vsel %vm372_vm0, %v428_v58, %v429_v0  ;;  %v424_v19 = vrot.slane %v3489_v49, 1  ;;  %v3505_v56 = vunpack.c.l.bf16 %v255_v61  ;;  %v3507_v47 = vunpack.c.h.bf16 %v255_v61 }
  0x2e   : > { %4811 = vst [vmem:[#allocation23_spill] sm:$0xff] %v3497_v28  ;;  %2626 = vrot.lane.b32.xlu0 %v3497_v28, %s3241_s21  ;;  %v432_v62 = vsel %vm372_vm0, %v429_v0, %v431_v17  ;;  %v426_v53 = vrot.slane %v4727_v24, 1  ;;  %v4732_v58 = vunpack.c.l.bf16 %v3492_v32  ;;  %v3518_v55 = vunpack.c.l.bf16 %v2477_v22 }
  0x2f   : > { %4812 = vst [vmem:[#allocation24_spill] sm:$0xff] %v3505_v56  ;;  %4813 = vst [vmem:[#allocation25_spill] sm:$0xff] %v3507_v47  ;;  %v3521_v61 = vpack.i.bf16 %v432_v62, %v430_v35  ;;  %v425_v11 = vsel %vm372_vm0, %v423_v34, %v424_v19  ;;  %v438_v37 = vrot.slane %v3505_v56, 1  ;;  %v439_v48 = vrot.slane %v3507_v47, 1  ;;  %v2478_v35 = vld [vmem:[%s3288_s20 + $0xa8] sm:$0xff]  }
  0x30   : > { %4814 = vst [vmem:[#allocation26_spill] sm:$0xff] %v3518_v55  ;;  %v427_v28 = vsel %vm372_vm0, %v424_v19, %v426_v53  ;;  %v441_v17 = vrot.slane %v4732_v58, 1  ;;  %v3529_v0 = vunpack.c.h.bf16 %v2477_v22  ;;  %v4739_v24 = vunpack.c.l.bf16 %v3510_v5 }
  0x31   : > { %4815 = vst [vmem:[#allocation27_spill] sm:$0xff] %v3521_v61  ;;  %2641 = vrot.lane.b32.xlu1 %v3521_v61, %s3241_s21  ;;  %v3538_v34 = vpack.i.bf16 %v427_v28, %v425_v11  ;;  %v440_v62 = vsel %vm372_vm0, %v438_v37, %v439_v48  ;;  %v433_v20 = vrot.slane %v3518_v55, 1  ;;  %v3542_v19 = vunpack.c.l.bf16 %v261_v21 }
  0x32   : > { %4816 = vst [vmem:[#allocation28_spill] sm:$0xff] %v3529_v0  ;;  %v442_v53 = vsel %vm372_vm0, %v439_v48, %v441_v17  ;;  %v434_v22 = vrot.slane %v3529_v0, 1  ;;  %v436_v58 = vrot.slane %v4739_v24, 1  ;;  %v3548_v15 = vunpack.c.h.bf16 %v261_v21 }
  0x33   : > { %4817 = vst [vmem:[#allocation29_spill] sm:$0xff] %v3538_v34  ;;  %2636 = vrot.lane.b32.xlu0 %v3538_v34, %s3241_s21  ;;  %v3555_v11 = vpack.i.bf16 %v442_v53, %v440_v62  ;;  %v4744_v37 = vunpack.c.l.bf16 %v3533_v54  ;;  %v448_v28 = vrot.slane %v3542_v19, 1  ;;  %v3559_v61 = vunpack.c.l.bf16 %v2478_v35 }
  0x34   : > { %v435_v48 = vsel %vm372_vm0, %v433_v20, %v434_v22  ;;  %v437_v17 = vsel %vm372_vm0, %v434_v22, %v436_v58  ;;  %v449_v21 = vrot.slane %v3548_v15, 1  ;;  %v3564_v24 = vunpack.c.h.bf16 %v2478_v35 }
  0x35   : > { %4818 = vst [vmem:[#allocation30_spill] sm:$0xff] %v3555_v11  ;;  %2651 = vrot.lane.b32.xlu1 %v3555_v11, %s3241_s21  ;;  %v3568_v34 = vpack.i.bf16 %v437_v17, %v435_v48  ;;  %v451_v62 = vrot.slane %v4744_v37, 1  ;;  %v4756_v53 = vunpack.c.l.bf16 %v3551_v30  ;;  %v443_v44 = vrot.slane %v3559_v61, 1 }
  0x36   : > { %v450_v20 = vsel %vm372_vm0, %v448_v28, %v449_v21  ;;  %v444_v58 = vrot.slane %v3564_v24, 1  ;;  %v555_v22 = vrot.slane %v3333_v27, 2  ;;  %v556_v35 = vrot.slane %v3346_v36, 2 }
  0x37   : > { %4819 = vst [vmem:[#allocation31_spill] sm:$0xff] %v3568_v34  ;;  %2646 = vrot.lane.b32.xlu0 %v3568_v34, %s3241_s21  ;;  %v452_v48 = vsel %vm372_vm0, %v449_v21, %v451_v62  ;;  %v446_v17 = vrot.slane %v4756_v53, 1  ;;  %v4820_v37 = vunpack.c.l.bf16 %v3328_v23  ;;  %v550_v29 = vrot.slane %v3300_v6, 2 }
  0x38   : > { %v3586_v28 = vpack.i.bf16 %v452_v48, %v450_v20  ;;  %v445_v59 = vsel %vm372_vm0, %v443_v44, %v444_v58  ;;  %v557_v27 = vsel %vm549_vm1, %v555_v22, %v556_v35  ;;  %v551_v36 = vrot.slane %v3309_v10, 2 }
  0x39   : > { %v558_v11 = vrot.slane %v4820_v37, 2  ;;  %v447_v34 = vsel %vm372_vm0, %v444_v58, %v446_v17  ;;  %v4821_v62 = vunpack.c.l.bf16 %v3303_v7  ;;  %v565_v23 = vrot.slane %v3312_v12, 2 }
  0x3a   : > { %2661 = vrot.lane.b32.xlu1 %v3586_v28, %s3241_s21  ;;  %v3598_v37 = vpack.i.bf16 %v447_v34, %v445_v59  ;;  %v552_v44 = vsel %vm549_vm1, %v550_v29, %v551_v36  ;;  %v566_v22 = vrot.slane %v3314_v13, 2  ;;  %v560_v7 = vrot.slane %v3295_v3, 2 }
  0x3b   : > { %v559_v21 = vsel %vm549_vm1, %v556_v35, %v558_v11  ;;  %v553_v53 = vrot.slane %v4821_v62, 2  ;;  %v4822_v11 = vunpack.c.l.bf16 %v3307_v9  ;;  %v561_v48 = vrot.slane %v3297_v4, 2 }
  0x3c   : > { %v3600_v20 = vpack.i.bf16 %v559_v21, %v557_v27  ;;  %2656 = vrot.lane.b32.xlu0 %v3598_v37, %s3241_s21  ;;  %v567_v27 = vsel %vm549_vm1, %v565_v23, %v566_v22  ;;  %v4823_v34 = vunpack.c.l.bf16 %v3292_v1  ;;  %v575_v17 = vrot.slane %v3354_v41, 2  ;;  %s3248_s21 = smov 32  }
  0x3d   : > { %v554_v58 = vsel %vm549_vm1, %v551_v36, %v553_v53  ;;  %v568_v35 = vrot.slane %v4822_v11, 2  ;;  %v562_v9 = vsel %vm549_vm1, %v560_v7, %v561_v48  ;;  %v576_v53 = vrot.slane %v3356_v42, 2 }
  0x3e   : > { %v2665_v59 = vpack.i.bf16 %v554_v58, %v552_v44  ;;  %v563_v29 = vrot.slane %v4823_v34, 2  ;;  %v4824_v21 = vunpack.c.l.bf16 %v3343_v33  ;;  %2671 = vrot.lane.b32.xlu1 %v3600_v20, %s3242_s22  ;;  %v570_v23 = vrot.slane %v3370_v50, 2 }
  0x3f   : > { %v569_v36 = vsel %vm549_vm1, %v566_v22, %v568_v35  ;;  %v571_v58 = vrot.slane %v3372_v51, 2  ;;  %v577_v22 = vsel %vm549_vm1, %v575_v17, %v576_v53  ;;  %v4825_v35 = vunpack.c.l.bf16 %v3359_v43 }
  0x40   : > { %v578_v62 = vrot.slane %v4824_v21, 2  ;;  %v3622_v44 = vpack.i.bf16 %v569_v36, %v567_v27  ;;  %v564_v1 = vsel %vm549_vm1, %v561_v48, %v563_v29  ;;  %2666 = vrot.lane.b32.xlu0 %v2665_v59, %s3242_s22  ;;  %v585_v34 = vrot.slane %v3394_v2, 2 }
  0x41   : > { %v573_v33 = vrot.slane %v4825_v35, 2  ;;  %v3632_v7 = vpack.i.bf16 %v564_v1, %v562_v9  ;;  %v572_v27 = vsel %vm549_vm1, %v570_v23, %v571_v58  ;;  %v586_v48 = vrot.slane %v3396_v8, 2 }
  0x42   : > { %v579_v11 = vsel %vm549_vm1, %v576_v53, %v578_v62  ;;  %v4826_v36 = vunpack.c.l.bf16 %v3381_v57  ;;  %v580_v53 = vrot.slane %v3407_v18, 2  ;;  %v581_v43 = vrot.slane %v3413_v25, 2  ;;  %2681 = vrot.lane.b32.xlu1 %v3622_v44, %s3242_s22 }
  0x43   : > { %v574_v29 = vsel %vm549_vm1, %v571_v58, %v573_v33  ;;  %v3644_v59 = vpack.i.bf16 %v579_v11, %v577_v22  ;;  %v587_v9 = vsel %vm549_vm1, %v585_v34, %v586_v48  ;;  %v4827_v21 = vunpack.c.l.bf16 %v3399_v14 }
  0x44   : > { %v588_v17 = vrot.slane %v4826_v36, 2  ;;  %v595_v1 = vrot.slane %v3429_v39, 2  ;;  %v596_v57 = vrot.slane %v3431_v40, 2  ;;  %v4828_v58 = vunpack.c.l.bf16 %v3416_v26  ;;  %2676 = vrot.lane.b32.xlu0 %v3632_v7, %s3242_s22 }
  0x45   : > { %v583_v62 = vrot.slane %v4827_v21, 2  ;;  %v3656_v33 = vpack.i.bf16 %v574_v29, %v572_v27  ;;  %v582_v22 = vsel %vm549_vm1, %v580_v53, %v581_v43  ;;  %v590_v11 = vrot.slane %v3442_v52, 2 }
  0x46   : > { %v589_v23 = vsel %vm549_vm1, %v586_v48, %v588_v17  ;;  %v598_v35 = vrot.slane %v4828_v58, 2  ;;  %v591_v14 = vrot.slane %v3453_v63, 2  ;;  %v597_v36 = vsel %vm549_vm1, %v595_v1, %v596_v57  ;;  %2691 = vrot.lane.b32.xlu1 %v3644_v59, %s3242_s22 }
  0x47   : > { %v3661_v34 = vpack.i.bf16 %v589_v23, %v587_v9  ;;  %v584_v48 = vsel %vm549_vm1, %v581_v43, %v583_v62  ;;  %v4829_v26 = vunpack.c.l.bf16 %v3434_v45  ;;  %v605_v53 = vrot.slane %v3466_v31, 2 }
  0x48   : > { %v599_v27 = vsel %vm549_vm1, %v596_v57, %v598_v35  ;;  %v592_v29 = vsel %vm549_vm1, %v590_v11, %v591_v14  ;;  %v606_v21 = vrot.slane %v3472_v38, 2  ;;  %v4830_v43 = vunpack.c.l.bf16 %v3457_v16  ;;  %2686 = vrot.lane.b32.xlu0 %v3656_v33, %s3242_s22 }
  0x49   : > { %v593_v17 = vrot.slane %v4829_v26, 2  ;;  %v600_v1 = vrot.slane %v3483_v60, 2  ;;  %v601_v45 = vrot.slane %v3489_v49, 2  ;;  %v3680_v23 = vpack.i.bf16 %v584_v48, %v582_v22 }
  0x4a   : > { %v608_v62 = vrot.slane %v4830_v43, 2  ;;  %v4831_v57 = vunpack.c.l.bf16 %v3475_v46  ;;  %2701 = vrot.lane.b32.xlu1 %v3661_v34, %s3242_s22  ;;  %v3686_v35 = vpack.i.bf16 %v599_v27, %v597_v36  ;;  %v607_v16 = vsel %vm549_vm1, %v605_v53, %v606_v21 }
  0x4b   : > { %v594_v9 = vsel %vm549_vm1, %v591_v14, %v593_v17  ;;  %v615_v14 = vrot.slane %v3505_v56, 2  ;;  %v602_v17 = vsel %vm549_vm1, %v600_v1, %v601_v45  ;;  %v616_v22 = vrot.slane %v3507_v47, 2 }
  0x4c   : > { %v603_v58 = vrot.slane %v4831_v57, 2  ;;  %v3688_v11 = vpack.i.bf16 %v594_v9, %v592_v29  ;;  %v609_v26 = vsel %vm549_vm1, %v606_v21, %v608_v62  ;;  %v4832_v46 = vunpack.c.l.bf16 %v3492_v32  ;;  %2696 = vrot.lane.b32.xlu0 %v3680_v23, %s3242_s22 }
  0x4d   : > { %v610_v27 = vrot.slane %v3518_v55, 2  ;;  %v611_v29 = vrot.slane %v3529_v0, 2  ;;  %v4833_v53 = vunpack.c.l.bf16 %v3510_v5  ;;  %v3706_v21 = vpack.i.bf16 %v609_v26, %v607_v16 }
  0x4e   : > { %v618_v48 = vrot.slane %v4832_v46, 2  ;;  %v604_v36 = vsel %vm549_vm1, %v601_v45, %v603_v58  ;;  %2711 = vrot.lane.b32.xlu1 %v3686_v35, %s3242_s22  ;;  %v625_v32 = vrot.slane %v3542_v19, 2  ;;  %v626_v43 = vrot.slane %v3548_v15, 2 }
  0x4f   : > { %v613_v9 = vrot.slane %v4833_v53, 2  ;;  %v4834_v62 = vunpack.c.l.bf16 %v3533_v54  ;;  %v3712_v45 = vpack.i.bf16 %v604_v36, %v602_v17  ;;  %v617_v57 = vsel %vm549_vm1, %v615_v14, %v616_v22 }
  0x50   : > { %v619_v58 = vsel %vm549_vm1, %v616_v22, %v618_v48  ;;  %2706 = vrot.lane.b32.xlu0 %v3688_v11, %s3242_s22  ;;  %v612_v5 = vsel %vm549_vm1, %v610_v27, %v611_v29  ;;  %v620_v26 = vrot.slane %v3559_v61, 2  ;;  %v621_v46 = vrot.slane %v3564_v24, 2 }
  0x51   : > { %v628_v1 = vrot.slane %v4834_v62, 2  ;;  %v614_v16 = vsel %vm549_vm1, %v611_v29, %v613_v9  ;;  %v4835_v54 = vunpack.c.l.bf16 %v3551_v30  ;;  %v3726_v14 = vpack.i.bf16 %v619_v58, %v617_v57  ;;  %v3225_v29 = vld [vmem:[%s4708_s1] sm:$0xff]  }
  0x52   : > { %2721 = vrot.lane.b32.xlu1 %v3706_v21, %s3242_s22  ;;  %v627_v17 = vsel %vm549_vm1, %v625_v32, %v626_v43  ;;  %v3730_v48 = vpack.i.bf16 %v614_v16, %v612_v5  ;;  %v622_v36 = vsel %vm549_vm1, %v620_v26, %v621_v46  ;;  %2504 = vmatprep.subr.bf16.mxu0 %v3225_v29  ;;  %v4836_v62 = vld [vmem:[#allocation2_spill] sm:$0xff]  ;;  %v3227_v5 = vld [vmem:[%s4708_s1 + $0x10] sm:$0xff]  }
  0x53   : > { %v623_v53 = vrot.slane %v4835_v54, 2  ;;  %v629_v22 = vsel %vm549_vm1, %v626_v43, %v628_v1  ;;  %v2750_v32 = vpack.i.bf16 %v3297_v4, %v3295_v3  ;;  %2505 = vmatpush3.bf16.msra.mxu0 %v3225_v29  ;;  %v3226_v43 = vld [vmem:[%s4708_s1 + $0x8] sm:$0xff]   ;;  %2552 = vmatprep.subr.bf16.mxu1 %v3225_v29  ;;  %v4837_v1 = vld [vmem:[#allocation4_spill] sm:$0xff]  ;;  %v2760_v58 = vpack.i.bf16 %v3372_v51, %v3370_v50 }
  0x54   : > { %2716 = vrot.lane.b32.xlu0 %v3712_v45, %s3242_s22  ;;  %v3735_v27 = vpack.i.bf16 %v629_v22, %v627_v17  ;;  %v2745_v57 = vpack.i.bf16 %v4837_v1, %v4836_v62  ;;  %2506 = vmatprep.subr.bf16.mxu0 %v3226_v43  ;;  %v2755_v16 = vpack.i.bf16 %v3314_v13, %v3312_v12  ;;  %v4838_v22 = vld [vmem:[#allocation7_spill] sm:$0xff] }
  0x55   : > { %v624_v30 = vsel %vm549_vm1, %v621_v46, %v623_v53  ;;  %2560 = vmatpush3.bf16.msra.mxu1 %v3225_v29  ;;  %v3770_v26 = vpack.i.bf16 %v3413_v25, %v3407_v18  ;;  %v3228_v46 = vld [vmem:[%s4708_s1 + $0x18] sm:$0xff]   ;;  %v2765_v54 = vpack.i.bf16 %v3356_v42, %v3354_v41  ;;  %v3229_v53 = vld [vmem:[%s4708_s1 + $0x20] sm:$0xff]   ;;  %v2775_v17 = vpack.i.bf16 %v3396_v8, %v3394_v2  ;;  %v4839_v29 = vld [vmem:[#allocation3_spill] sm:$0xff] }
  0x56   : > { %2731 = vrot.lane.b32.xlu1 %v3726_v14, %s3242_s22  ;;  %v3745_v9 = vpack.i.bf16 %v624_v30, %v622_v36  ;;  %2553 = vmatprep.subr.bf16.mxu1 %v3226_v43  ;;  %v3230_v36 = vld [vmem:[%s4708_s1 + $0x28] sm:$0xff]   ;;  %v3231_v30 = vld [vmem:[%s4708_s1 + $0x30] sm:$0xff]  }
  0x57   : > { %2507 = vmatpush3.bf16.msra.mxu0 %v3226_v43 }
  0x58   : > { %2726 = vrot.lane.b32.xlu0 %v3730_v48, %s3242_s22  ;;  %2508 = vmatprep.subr.bf16.mxu0 %v3227_v5 }
  0x59   : > { %2561 = vmatpush3.bf16.msra.mxu1 %v3226_v43  ;;  %v3232_v43 = vld [vmem:[%s4708_s1 + $0x38] sm:$0xff]  }
  0x5a   : > { %2741 = vrot.lane.b32.xlu1 %v3735_v27, %s3242_s22  ;;  %2554 = vmatprep.subr.bf16.mxu1 %v3227_v5 }
  0x5b   : > { %2509 = vmatpush3.bf16.msra.mxu0 %v3227_v5 }
  0x5c   : > { %2736 = vrot.lane.b32.xlu0 %v3745_v9, %s3242_s22  ;;  %2510 = vmatprep.subr.bf16.mxu0 %v3228_v46 }
  0x5d   : > { %2562 = vmatpush3.bf16.msra.mxu1 %v3227_v5 }
  0x5e   : > { %2751 = vrot.lane.b32.xlu1 %v2750_v32, %s3243_s27  ;;  %2555 = vmatprep.subr.bf16.mxu1 %v3228_v46 }
  0x5f   : > { %2511 = vmatpush3.bf16.msra.mxu0 %v3228_v46 }
  0x60   : > { %2746 = vrot.lane.b32.xlu0 %v2745_v57, %s3243_s27  ;;  %2512 = vmatprep.subr.bf16.mxu0 %v3229_v53 }
  0x61   : > { %2563 = vmatpush3.bf16.msra.mxu1 %v3228_v46  ;;  %v4843_v46 = vld [vmem:[#allocation17_spill] sm:$0xff] }
  0x62   : > { %2761 = vrot.lane.b32.xlu1 %v2760_v58, %s3243_s27  ;;  %2556 = vmatprep.subr.bf16.mxu1 %v3229_v53 }
  0x63   : > { %2513 = vmatpush3.bf16.msra.mxu0 %v3229_v53 }
  0x64   : > { %2756 = vrot.lane.b32.xlu0 %v2755_v16, %s3243_s27  ;;  %2514 = vmatprep.subr.bf16.mxu0 %v3230_v36 }
  0x65   : > { %2564 = vmatpush3.bf16.msra.mxu1 %v3229_v53 }
  0x66   : > { %2771 = vrot.lane.b32.xlu1 %v3770_v26, %s3243_s27  ;;  %2557 = vmatprep.subr.bf16.mxu1 %v3230_v36 }
  0x67   : > { %2515 = vmatpush3.bf16.msra.mxu0 %v3230_v36 }
  0x68   : > { %2766 = vrot.lane.b32.xlu0 %v2765_v54, %s3243_s27  ;;  %2516 = vmatprep.subr.bf16.mxu0 %v3231_v30 }
  0x69   : > { %2565 = vmatpush3.bf16.msra.mxu1 %v3230_v36 }
  0x6a   : > { %2781 = vrot.lane.b32.xlu1 %v4838_v22, %s3244_s8  ;;  %2558 = vmatprep.subr.bf16.mxu1 %v3231_v30 }
  0x6b   : > { %2517 = vmatpush3.bf16.msra.mxu0 %v3231_v30 }
  0x6c   : > { %2776 = vrot.lane.b32.xlu0 %v2775_v17, %s3243_s27  ;;  %2518 = vmatprep.subr.bf16.mxu0 %v3232_v43 }
  0x6d   : > { %2566 = vmatpush3.bf16.msra.mxu1 %v3231_v30  ;;  %v4848_v30 = vld [vmem:[#allocation15_spill] sm:$0xff] }
  0x6e   : > { %2791 = vrot.lane.b32.xlu1 %v3600_v20, %s3245_s11  ;;  %2559 = vmatprep.subr.bf16.mxu1 %v3232_v43  ;;  %v4840_v20 = vld [vmem:[#allocation5_spill] sm:$0xff] }
  0x6f   : > { %2519 = vmatpush3.bf16.msra.mxu0 %v3232_v43 }
  0x70   : > { %2786 = vrot.lane.b32.xlu0 %v4839_v29, %s3244_s8 }
  0x71   : > { %2567 = vmatpush3.bf16.msra.mxu1 %v3232_v43 }
  0x72   : > { %2801 = vrot.lane.b32.xlu1 %v2750_v32, %s3246_s14  ;;  %v4841_v32 = vld [vmem:[#allocation11_spill] sm:$0xff] }
  0x74   : > { %2796 = vrot.lane.b32.xlu0 %v3632_v7, %s3245_s11 }
  0x76   : > { %2811 = vrot.lane.b32.xlu1 %v4839_v29, %s3247_s19 }
  0x78   : > { %2806 = vrot.lane.b32.xlu0 %v2755_v16, %s3246_s14 }
  0x7a   : > { %2821 = vrot.lane.b32.xlu1 %v3632_v7, %s3248_s21 }
  0x7c   : > { %2816 = vrot.lane.b32.xlu0 %v4840_v20, %s3247_s19 }
  0x7e   : > { %2831 = vrot.lane.b32.xlu1 %v4840_v20, %s3244_s8 }
  0x80   : > { %2826 = vrot.lane.b32.xlu0 %v3622_v44, %s3248_s21 }
  0x82   : > { %2841 = vrot.lane.b32.xlu1 %v3622_v44, %s3245_s11  ;;  %v4842_v44 = vld [vmem:[#allocation10_spill] sm:$0xff] }
  0x84   : > { %2836 = vrot.lane.b32.xlu0 %v4841_v32, %s3244_s8 }
  0x86   : > { %2851 = vrot.lane.b32.xlu1 %v2760_v58, %s3246_s14 }
  0x88   : > { %2846 = vrot.lane.b32.xlu0 %v3656_v33, %s3245_s11 }
  0x8a   : > { %2861 = vrot.lane.b32.xlu1 %v4841_v32, %s3247_s19 }
  0x8c   : > { %2856 = vrot.lane.b32.xlu0 %v2765_v54, %s3246_s14 }
  0x8e   : > { %v3826_v7 = vpop.permute.xlu1 %2596  ;;  %2871 = vrot.lane.b32.xlu1 %v3656_v33, %s3248_s21  ;;  %v3830_v57 = vpop.permute.xlu0 %2586 }
  0x90   : > { %2866 = vrot.lane.b32.xlu0 %v4842_v44, %s3247_s19 }
  0x92   : > { %v3834_v5 = vpop.permute.xlu1 %2601  ;;  %2881 = vrot.lane.b32.xlu1 %v4842_v44, %s3244_s8  ;;  %v2960_v44 = vpack.i.bf16 %v3431_v40, %v3429_v39  ;;  %v4857_v40 = vld [vmem:[#allocation29_spill] sm:$0xff] }
  0x93   : > { %v3838_v58 = vpop.permute.xlu0 %2591 }
  0x94   : > { %2876 = vrot.lane.b32.xlu0 %v3644_v59, %s3248_s21 }
  0x96   : > { %v3842_v16 = vpop.permute.xlu1 %2611  ;;  %2891 = vrot.lane.b32.xlu1 %v3644_v59, %s3245_s11 }
  0x97   : > { %v3846_v33 = vpop.permute.xlu0 %2606 }
  0x98   : > { %2886 = vrot.lane.b32.xlu0 %v4843_v46, %s3244_s8 }
  0x9a   : > { %2901 = vrot.lane.b32.xlu1 %v3770_v26, %s3246_s14  ;;  %v3852_v54 = vpop.permute.xlu1 %2621  ;;  %v2930_v26 = vpack.i.bf16 %v3453_v63, %v3442_v52 }
  0x9b   : > { %4844 = vst [vmem:[#allocation2_spill] sm:$0xff] %v3852_v54 }
  0x9c   : > { %2896 = vrot.lane.b32.xlu0 %v3680_v23, %s3245_s11  ;;  %v3856_v53 = vpop.permute.xlu0 %2616 }
  0x9e   : > { %2911 = vrot.lane.b32.xlu1 %v4843_v46, %s3247_s19  ;;  %v3860_v22 = vpop.permute.xlu1 %2631 }
  0x9f   : > { %4845 = vst [vmem:[#allocation4_spill] sm:$0xff] %v3860_v22 }
  0xa0   : > { %2906 = vrot.lane.b32.xlu0 %v2775_v17, %s3246_s14  ;;  %v3863_v59 = vpop.permute.xlu0 %2626 }
  0xa1   : > { %4846 = vst [vmem:[#allocation7_spill] sm:$0xff] %v3863_v59 }
  0xa2   : > { %2921 = vrot.lane.b32.xlu1 %v3680_v23, %s3248_s21  ;;  %v4852_v23 = vld [vmem:[#allocation23_spill] sm:$0xff] }
  0xa3   : > { %v3869_v36 = vpop.permute.xlu1 %2641 }
  0xa4   : > { %4847 = vst [vmem:[#allocation3_spill] sm:$0xff] %v3869_v36  ;;  %2916 = vrot.lane.b32.xlu0 %v4848_v30, %s3247_s19 }
  0xa5   : > { %v3873_v29 = vpop.permute.xlu0 %2636 }
  0xa6   : > { %4849 = vst [vmem:[#allocation5_spill] sm:$0xff] %v3873_v29  ;;  %2931 = vrot.lane.b32.xlu1 %v2930_v26, %s3243_s27  ;;  %v4853_v29 = vld [vmem:[#allocation20_spill] sm:$0xff] }
  0xa7   : > { %v3876_v43 = vpop.permute.xlu1 %2651 }
  0xa8   : > { %4850 = vst [vmem:[#allocation11_spill] sm:$0xff] %v3876_v43  ;;  %2926 = vrot.lane.b32.xlu0 %v3661_v34, %s3248_s21 }
  0xa9   : > { %v3880_v17 = vpop.permute.xlu0 %2646 }
  0xaa   : > { %4851 = vst [vmem:[#allocation10_spill] sm:$0xff] %v3880_v17  ;;  %2941 = vrot.lane.b32.xlu1 %v4852_v23, %s3244_s8 }
  0xac   : > { %2936 = vrot.lane.b32.xlu0 %v4848_v30, %s3244_s8  ;;  %v2662_v20 = vpop.permute.xlu1 %2661 }
  0xae   : > { %v2657_v32 = vpop.permute.xlu0 %2656  ;;  %2951 = vrot.lane.b32.xlu1 %v3688_v11, %s3245_s11 }
  0xb0   : > { %2946 = vrot.lane.b32.xlu0 %v3661_v34, %s3245_s11  ;;  %v3892_v46 = vpop.permute.xlu1 %2671 }
  0xb2   : > { %v3894_v17 = vpop.permute.xlu0 %2666  ;;  %2961 = vrot.lane.b32.xlu1 %v2960_v44, %s3246_s14 }
  0xb4   : > { %2956 = vrot.lane.b32.xlu0 %v2930_v26, %s3246_s14  ;;  %v3898_v30 = vpop.permute.xlu1 %2681  ;;  %v2990_v26 = vpack.i.bf16 %v3489_v49, %v3483_v60 }
  0xb6   : > { %v3900_v43 = vpop.permute.xlu0 %2676  ;;  %2971 = vrot.lane.b32.xlu1 %v4853_v29, %s3247_s19 }
  0xb8   : > { %2966 = vrot.lane.b32.xlu0 %v4852_v23, %s3247_s19  ;;  %v3906_v36 = vpop.permute.xlu1 %2691 }
  0xba   : > { %v3908_v34 = vpop.permute.xlu0 %2686  ;;  %2981 = vrot.lane.b32.xlu1 %v3686_v35, %s3248_s21 }
  0xbc   : > { %2976 = vrot.lane.b32.xlu0 %v3688_v11, %s3248_s21  ;;  %v3916_v52 = vpop.permute.xlu1 %2701 }
  0xbd   : > { %4854 = vst [vmem:[#allocation17_spill] sm:$0xff] %v3916_v52 }
  0xbe   : > { %v3918_v63 = vpop.permute.xlu0 %2696  ;;  %2991 = vrot.lane.b32.xlu1 %v2990_v26, %s3243_s27 }
  0xc0   : > { %2986 = vrot.lane.b32.xlu0 %v2960_v44, %s3243_s27  ;;  %v3922_v23 = vpop.permute.xlu1 %2711  ;;  %v3020_v44 = vpack.i.bf16 %v3472_v38, %v3466_v31 }
  0xc1   : > { %4855 = vst [vmem:[#allocation15_spill] sm:$0xff] %v3922_v23  ;;  %v2663_v23 = vunpack.i.l.bf16 %v2662_v20 }
  0xc2   : > { %v3924_v39 = vpop.permute.xlu0 %2706  ;;  %3001 = vrot.lane.b32.xlu1 %v4857_v40, %s3244_s8 }
  0xc3   : > { %4856 = vst [vmem:[#allocation23_spill] sm:$0xff] %v3924_v39  ;;  %v2664_v39 = vunpack.i.h.bf16 %v2662_v20 }
  0xc4   : > { %2996 = vrot.lane.b32.xlu0 %v4853_v29, %s3244_s8  ;;  %v3930_v60 = vpop.permute.xlu1 %2721  ;;  %v2659_v29 = vunpack.i.h.bf16 %v2657_v32 }
  0xc5   : > { %4858 = vst [vmem:[#allocation20_spill] sm:$0xff] %v3930_v60  ;;  %v2658_v60 = vunpack.i.l.bf16 %v2657_v32  ;;  %v1360_v31 = vsel %vm1328_vm2, %v3548_v15, %v2664_v39 }
  0xc6   : > { %v3932_v11 = vpop.permute.xlu0 %2716  ;;  %3011 = vrot.lane.b32.xlu1 %v3712_v45, %s3245_s11  ;;  %v1358_v39 = vsel %vm1328_vm2, %v3564_v24, %v2659_v29  ;;  %v3050_v29 = vpack.i.bf16 %v3529_v0, %v3518_v55  ;;  %v4010_v55 = vld [vmem:[%s3288_s20 + $0xc8] sm:$0x1] }
  0xc7   : > { %4859 = vst [vmem:[#allocation29_spill] sm:$0xff] %v3932_v11 }
  0xc8   : > { %3006 = vrot.lane.b32.xlu0 %v3686_v35, %s3245_s11  ;;  %v3940_v49 = vpop.permute.xlu1 %2731  ;;  %v1359_v35 = vsel %vm1328_vm2, %v3542_v19, %v2663_v23  ;;  %v1357_v23 = vsel %vm1328_vm2, %v3559_v61, %v2658_v60 }
  0xc9   : > { %4860 = vst [vmem:[#allocation32_spill] sm:$0xff] %v3940_v49 }
  0xca   : > { %v3942_v59 = vpop.permute.xlu0 %2726  ;;  %3021 = vrot.lane.b32.xlu1 %v3020_v44, %s3246_s14 }
  0xcb   : > { %4861 = vst [vmem:[#allocation33_spill] sm:$0xff] %v3942_v59  ;;  %v4862_v59 = vld [vmem:[#allocation27_spill] sm:$0xff] }
  0xcc   : > { %3016 = vrot.lane.b32.xlu0 %v2990_v26, %s3246_s14  ;;  %v2742_v11 = vpop.permute.xlu1 %2741 }
  0xcd   : > { %v2744_v22 = vunpack.i.h.bf16 %v2742_v11  ;;  %v2743_v2 = vunpack.i.l.bf16 %v2742_v11 }
  0xce   : > { %v2737_v20 = vpop.permute.xlu0 %2736  ;;  %3031 = vrot.lane.b32.xlu1 %v4862_v59, %s3247_s19 }
  0xcf   : > { %v3953_v49 = vsel %vm1361_vm3, %v1360_v31, %v2744_v22  ;;  %v3956_v32 = vsel %vm1361_vm3, %v1359_v35, %v2743_v2  ;;  %v2739_v26 = vunpack.i.h.bf16 %v2737_v20  ;;  %v2738_v38 = vunpack.i.l.bf16 %v2737_v20  ;;  %v2479_v35 = vld [vmem:[%s3288_s20 + $0xc0] sm:$0xff]  }
  0xd0   : > { %4863 = vst [vmem:[#allocation27_spill] sm:$0xff] %v3953_v49  ;;  %4864 = vst [vmem:[#allocation34_spill] sm:$0xff] %v3956_v32  ;;  %3026 = vrot.lane.b32.xlu0 %v4857_v40, %s3247_s19  ;;  %v3964_v11 = vpop.permute.xlu1 %2751  ;;  %v4005_v32 = vpack.i.bf16 %v3507_v47, %v3505_v56  ;;  %v4007_v49 = vunpack.c.h.bf16 %v2479_v35 }
  0xd1   : > { %v3967_v31 = vsel %vm1361_vm3, %v1357_v23, %v2738_v38  ;;  %v3970_v2 = vsel %vm1361_vm3, %v1358_v39, %v2739_v26  ;;  %v4869_v26 = vld [vmem:[#allocation31_spill] sm:$0xff]  ;;  %v2619_v39 = vunpack.i.h.bf16 %v3856_v53  ;;  %v2699_v23 = vunpack.i.h.bf16 %v3918_v63 }
  0xd2   : > { %4865 = vst [vmem:[#allocation35_spill] sm:$0xff] %v3967_v31  ;;  %4866 = vst [vmem:[#allocation36_spill] sm:$0xff] %v3970_v2  ;;  %v3972_v22 = vpop.permute.xlu0 %2746  ;;  %3041 = vrot.lane.b32.xlu1 %v3706_v21, %s3248_s21  ;;  %v2698_v2 = vunpack.i.l.bf16 %v3918_v63  ;;  %v4001_v31 = vunpack.c.l.bf16 %v2479_v35  ;;  %v4016_v63 = vpack.i.bf16 %v3564_v24, %v3559_v61  ;;  %v4784_v24 = vunpack.c.l.bf16 %v4010_v55 }
  0xd4   : > { %3036 = vrot.lane.b32.xlu0 %v3712_v45, %s3248_s21  ;;  %v3980_v40 = vpop.permute.xlu1 %2761  ;;  %v2618_v45 = vunpack.i.l.bf16 %v3856_v53  ;;  %v825_v61 = vrot.slane %v4001_v31, 1 }
  0xd6   : > { %v3982_v60 = vpop.permute.xlu0 %2756  ;;  %3051 = vrot.lane.b32.xlu1 %v3050_v29, %s3243_s27  ;;  %v1341_v0 = vsel %vm1328_vm2, %v3407_v18, %v2618_v45 }
  0xd7   : > { %v1374_v35 = vsel %vm1361_vm3, %v1341_v0, %v2698_v2  ;;  %v4785_v0 = vrot.slane %v4007_v49, 1  ;;  %v2588_v2 = vunpack.i.l.bf16 %v3830_v57 }
  0xd8   : > { %3046 = vrot.lane.b32.xlu0 %v3020_v44, %s3243_s27  ;;  %v3986_v38 = vpop.permute.xlu1 %2771 }
  0xd9   : > { %4867 = vst [vmem:[#allocation37_spill] sm:$0xff] %v3986_v38 }
  0xda   : > { %v3989_v20 = vpop.permute.xlu0 %2766  ;;  %3061 = vrot.lane.b32.xlu1 %v4869_v26, %s3244_s8 }
  0xdb   : > { %4868 = vst [vmem:[#allocation38_spill] sm:$0xff] %v3989_v20 }
  0xdc   : > { %3056 = vrot.lane.b32.xlu0 %v4862_v59, %s3244_s8  ;;  %v3999_v44 = vpop.permute.xlu1 %2781  ;;  %v1342_v59 = vsel %vm1328_vm2, %v3413_v25, %v2619_v39  ;;  %v2589_v25 = vunpack.i.h.bf16 %v3830_v57  ;;  %v2674_v57 = vunpack.i.h.bf16 %v3892_v46 }
  0xdd   : > { %v1375_v8 = vsel %vm1361_vm3, %v1342_v59, %v2699_v23  ;;  %v2673_v23 = vunpack.i.l.bf16 %v3892_v46  ;;  %v2668_v59 = vunpack.i.l.bf16 %v3894_v17  ;;  %v4065_v46 = vsel %vm372_vm0, %v825_v61, %v4785_v0 }
  0xde   : > { %v2777_v53 = vpop.permute.xlu0 %2776  ;;  %3071 = vrot.lane.b32.xlu1 %v3730_v48, %s3245_s11  ;;  %v2753_v61 = vunpack.i.l.bf16 %v3964_v11  ;;  %v2784_v0 = vunpack.i.h.bf16 %v3999_v44 }
  0xdf   : > { %v2779_v56 = vunpack.i.h.bf16 %v2777_v53  ;;  %v2778_v47 = vunpack.i.l.bf16 %v2777_v53 }
  0xe0   : > { %3066 = vrot.lane.b32.xlu0 %v3706_v21, %s3245_s11  ;;  %v2792_v52 = vpop.permute.xlu1 %2791  ;;  %v2594_v21 = vunpack.i.h.bf16 %v3838_v58 }
  0xe1   : > { %v4030_v39 = vsel %vm1394_vm4, %v1374_v35, %v2778_v47  ;;  %v4033_v18 = vsel %vm1394_vm4, %v1375_v8, %v2779_v56  ;;  %v4044_v47 = vpack.i.bf16 %v3548_v15, %v3542_v19  ;;  %v2593_v56 = vunpack.i.l.bf16 %v3838_v58 }
  0xe2   : > { %4870 = vst [vmem:[#allocation31_spill] sm:$0xff] %v4030_v39  ;;  %4871 = vst [vmem:[#allocation39_spill] sm:$0xff] %v4033_v18  ;;  %v4038_v45 = vpop.permute.xlu0 %2786  ;;  %3081 = vrot.lane.b32.xlu1 %v4005_v32, %s3246_s14  ;;  %v4049_v8 = vpack.i.bf16 %v4007_v49, %v4001_v31  ;;  %v4056_v15 = vrot.slane %v4784_v24, 1  ;;  %v1330_v19 = vsel %vm1328_vm2, %v3309_v10, %v2589_v25  ;;  %v2669_v58 = vunpack.i.h.bf16 %v3894_v17  ;;  %v4872_v25 = vld [vmem:[#allocation30_spill] sm:$0xff] }
  0xe3   : > { %v1332_v35 = vsel %vm1328_vm2, %v4837_v1, %v2594_v21  ;;  %v2749_v24 = vunpack.i.h.bf16 %v3972_v22  ;;  %v2748_v18 = vunpack.i.l.bf16 %v3972_v22  ;;  %v1331_v17 = vsel %vm1328_vm2, %v4836_v62, %v2593_v56 }
  0xe4   : > { %3076 = vrot.lane.b32.xlu0 %v3050_v29, %s3246_s14  ;;  %v2802_v53 = vpop.permute.xlu1 %2801  ;;  %v1329_v29 = vsel %vm1328_vm2, %v3300_v6, %v2588_v2  ;;  %v2783_v6 = vunpack.i.l.bf16 %v3999_v44  ;;  %v1364_v2 = vsel %vm1361_vm3, %v1331_v17, %v2673_v23  ;;  %v1365_v1 = vsel %vm1361_vm3, %v1332_v35, %v2674_v57 }
  0xe5   : > { %v2794_v21 = vunpack.i.h.bf16 %v2792_v52  ;;  %v2793_v39 = vunpack.i.l.bf16 %v2792_v52  ;;  %v1362_v54 = vsel %vm1361_vm3, %v1329_v29, %v2668_v59  ;;  %v1363_v62 = vsel %vm1361_vm3, %v1330_v19, %v2669_v58 }
  0xe6   : > { %v2797_v10 = vpop.permute.xlu0 %2796  ;;  %3091 = vrot.lane.b32.xlu1 %v4872_v25, %s3247_s19  ;;  %v2804_v56 = vunpack.i.h.bf16 %v2802_v53  ;;  %v2803_v38 = vunpack.i.l.bf16 %v2802_v53  ;;  %v1395_v20 = vsel %vm1394_vm4, %v1362_v54, %v2748_v18  ;;  %v1396_v44 = vsel %vm1394_vm4, %v1363_v62, %v2749_v24 }
  0xe7   : > { %v2754_v52 = vunpack.i.h.bf16 %v3964_v11  ;;  %v1428_v57 = vsel %vm1427_vm5, %v1395_v20, %v2783_v6  ;;  %v1429_v19 = vsel %vm1427_vm5, %v1396_v44, %v2784_v0  ;;  %v2789_v24 = vunpack.i.h.bf16 %v4038_v45 }
  0xe8   : > { %3086 = vrot.lane.b32.xlu0 %v4869_v26, %s3247_s19  ;;  %v2812_v22 = vpop.permute.xlu1 %2811  ;;  %v1397_v26 = vsel %vm1394_vm4, %v1364_v2, %v2753_v61  ;;  %v1461_v53 = vsel %vm1460_vm6, %v1428_v57, %v2793_v39  ;;  %v1462_v54 = vsel %vm1460_vm6, %v1429_v19, %v2794_v21  ;;  %v2788_v18 = vunpack.i.l.bf16 %v4038_v45 }
  0xe9   : > { %v2814_v50 = vunpack.i.h.bf16 %v2812_v22  ;;  %v2813_v23 = vunpack.i.l.bf16 %v2812_v22  ;;  %v1494_v11 = vsel %vm1493_vm7, %v1461_v53, %v2803_v38  ;;  %v1495_v59 = vsel %vm1493_vm7, %v1462_v54, %v2804_v56 }
  0xea   : > { %v2807_v17 = vpop.permute.xlu0 %2806  ;;  %3101 = vrot.lane.b32.xlu1 %v3726_v14, %s3248_s21  ;;  %v2799_v35 = vunpack.i.h.bf16 %v2797_v10  ;;  %v2798_v0 = vunpack.i.l.bf16 %v2797_v10  ;;  %v1398_v10 = vsel %vm1394_vm4, %v1365_v1, %v2754_v52  ;;  %v1430_v44 = vsel %vm1427_vm5, %v1397_v26, %v2788_v18 }
  0xeb   : > { %v1527_v39 = vsel %vm1526_vm8, %v1494_v11, %v2813_v23  ;;  %v1528_v45 = vsel %vm1526_vm8, %v1495_v59, %v2814_v50  ;;  %v2809_v6 = vunpack.i.h.bf16 %v2807_v17  ;;  %v2808_v2 = vunpack.i.l.bf16 %v2807_v17  ;;  %v4139_v11 = vld [vmem:[%s3288_s20 + $0xd4] sm:$0x1] }
  0xec   : > { %3096 = vrot.lane.b32.xlu0 %v3730_v48, %s3248_s21  ;;  %v2822_v58 = vpop.permute.xlu1 %2821  ;;  %v1431_v23 = vsel %vm1427_vm5, %v1398_v10, %v2789_v24  ;;  %v4875_v17 = vrot.slane %v4007_v49, 1  ;;  %v926_v1 = vrot.slane %v4001_v31, 2  ;;  %v1463_v52 = vsel %vm1460_vm6, %v1430_v44, %v2798_v0  ;;  %v267_v24 = vld [vmem:[%s3288_s20 + $0xcc] sm:$0xff]   ;;  %s2403_s20 = sshll.u32 %s4915_s16, 7 }
  0xed   : > { %v2824_v29 = vunpack.i.h.bf16 %v2822_v58  ;;  %v2823_v20 = vunpack.i.l.bf16 %v2822_v58  ;;  %v1464_v19 = vsel %vm1460_vm6, %v1431_v23, %v2799_v35  ;;  %v927_v26 = vrot.slane %v4007_v49, 2  ;;  %s4566_s24 = scalar_lea.vmem %s4709_s2, %s2403_s20 }
  0xee   : > { %v2817_v61 = vpop.permute.xlu0 %2816  ;;  %3111 = vrot.lane.b32.xlu1 %v4016_v63, %s3243_s27  ;;  %v829_v57 = vsel %vm372_vm0, %v4875_v17, %v4056_v15  ;;  %v4876_v53 = vunpack.c.l.bf16 %v4010_v55  ;;  %v1496_v15 = vsel %vm1493_vm7, %v1463_v52, %v2808_v2  ;;  %v1497_v31 = vsel %vm1493_vm7, %v1464_v19, %v2809_v6 }
  0xef   : > { %v1560_v48 = vsel %vm1559_vm9, %v1527_v39, %v2823_v20  ;;  %v1561_v38 = vsel %vm1559_vm9, %v1528_v45, %v2824_v29  ;;  %v2819_v22 = vunpack.i.h.bf16 %v2817_v61  ;;  %v2818_v62 = vunpack.i.l.bf16 %v2817_v61 }
  0xf0   : > { %3106 = vrot.lane.b32.xlu0 %v4005_v32, %s3243_s27  ;;  %v4117_v50 = vpop.permute.xlu1 %2831  ;;  %v2322_v56 = vpack.c.bf16 %v1561_v38, %v1560_v48  ;;  %v929_v54 = vrot.slane %v4876_v53, 2  ;;  %v2599_v59 = vunpack.i.h.bf16 %v3826_v7  ;;  %v2598_v29 = vunpack.i.l.bf16 %v3826_v7 }
  0xf1   : > { %v1529_v20 = vsel %vm1526_vm8, %v1496_v15, %v2818_v62  ;;  %v1530_v49 = vsel %vm1526_vm8, %v1497_v31, %v2819_v22  ;;  %v4149_v61 = vunpack.c.l.bf16 %v267_v24  ;;  %v4151_v39 = vunpack.c.h.bf16 %v267_v24 }
  0xf2   : > { %v2827_v32 = vpop.permute.xlu0 %2826  ;;  %3121 = vrot.lane.b32.xlu1 %v3598_v37, %s3244_s8  ;;  %2520 = vmatprep.mubr.msk.bf16.mxu0 %vm4110_vm11, %v2322_v56  ;;  %v2604_v45 = vunpack.i.h.bf16 %v3834_v5  ;;  %v4159_v2 = vpack.i.bf16 %v829_v57, %v4065_v46  ;;  %v2603_v48 = vunpack.i.l.bf16 %v3834_v5  ;;  %v4164_v38 = vsel %vm549_vm1, %v926_v1, %v927_v26 }
  0xf3   : > { %v2829_v18 = vunpack.i.h.bf16 %v2827_v32  ;;  %v2828_v58 = vunpack.i.l.bf16 %v2827_v32  ;;  %v4167_v10 = vsel %vm549_vm1, %v927_v26, %v929_v54  ;;  %v1334_v22 = vsel %vm1328_vm2, %v3297_v4, %v2599_v59 }
  0xf4   : > { %3116 = vrot.lane.b32.xlu0 %v4872_v25, %s3244_s8  ;;  %v2842_v55 = vpop.permute.xlu1 %2841  ;;  %v323_v25 = vunpack.c.l.bf16 %v4139_v11  ;;  %v1333_v62 = vsel %vm1328_vm2, %v3295_v3, %v2598_v29  ;;  %v2684_v56 = vunpack.i.h.bf16 %v3898_v30  ;;  %v2683_v46 = vunpack.i.l.bf16 %v3898_v30 }
  0xf5   : > { %v1562_v35 = vsel %vm1559_vm9, %v1529_v20, %v2828_v58  ;;  %v1563_v0 = vsel %vm1559_vm9, %v1530_v49, %v2829_v18  ;;  %v2679_v44 = vunpack.i.h.bf16 %v3900_v43  ;;  %v2678_v23 = vunpack.i.l.bf16 %v3900_v43 }
  0xf6   : > { %v2325_v6 = vpack.c.bf16 %v1563_v0, %v1562_v35  ;;  %v4154_v7 = vpop.permute.xlu0 %2836  ;;  %3131 = vrot.lane.b32.xlu1 %v3745_v9, %s3245_s11  ;;  %v1126_v4 = vrot.slane %v4149_v61, 1  ;;  %v1127_v17 = vrot.slane %v4151_v39, 1  ;;  %v1336_v3 = vsel %vm1328_vm2, %v3314_v13, %v2604_v45 }
  0xf7   : > { %v2759_v30 = vunpack.i.h.bf16 %v3982_v60  ;;  %v2758_v57 = vunpack.i.l.bf16 %v3982_v60  ;;  %v1129_v1 = vrot.slane %v323_v25, 1  ;;  %v1335_v43 = vsel %vm1328_vm2, %v3312_v12, %v2603_v48 }
  0xf8   : > { %3126 = vrot.lane.b32.xlu0 %v3726_v14, %s3245_s11  ;;  %2521 = vmatmul.mubr.msk.bf16.vlgmr.msra.gmra.mrb[0].mxu0 %vm4110_vm11, %v2325_v6  ;;  %v2852_v5 = vpop.permute.xlu1 %2851  ;;  %v2763_v52 = vunpack.i.l.bf16 %v3980_v40  ;;  %v2834_v19 = vunpack.i.h.bf16 %v4117_v50  ;;  %v2833_v13 = vunpack.i.l.bf16 %v4117_v50  ;;  %v1369_v32 = vsel %vm1361_vm3, %v1336_v3, %v2684_v56 }
  0xf9   : > { %v1368_v60 = vsel %vm1361_vm3, %v1335_v43, %v2683_v46  ;;  %v2844_v26 = vunpack.i.h.bf16 %v2842_v55  ;;  %v2843_v53 = vunpack.i.l.bf16 %v2842_v55  ;;  %v1367_v24 = vsel %vm1361_vm3, %v1334_v22, %v2679_v44 }
  0xfa   : > { %v2847_v14 = vpop.permute.xlu0 %2846  ;;  %3141 = vrot.lane.b32.xlu1 %v4044_v47, %s3246_s14  ;;  %v1366_v12 = vsel %vm1361_vm3, %v1333_v62, %v2678_v23  ;;  %v2854_v15 = vunpack.i.h.bf16 %v2852_v5  ;;  %v2853_v31 = vunpack.i.l.bf16 %v2852_v5  ;;  %v1400_v50 = vsel %vm1394_vm4, %v1367_v24, %v2759_v30 }
  0xfb   : > { %v1399_v18 = vsel %vm1394_vm4, %v1366_v12, %v2758_v57  ;;  %v2764_v20 = vunpack.i.h.bf16 %v3980_v40  ;;  %v1433_v55 = vsel %vm1427_vm5, %v1400_v50, %v2834_v19  ;;  %v2839_v45 = vunpack.i.h.bf16 %v4154_v7 }
  0xfc   : > { %3136 = vrot.lane.b32.xlu0 %v4016_v63, %s3246_s14  ;;  %v2862_v54 = vpop.permute.xlu1 %2861  ;;  %v1401_v63 = vsel %vm1394_vm4, %v1368_v60, %v2763_v52  ;;  %v1432_v49 = vsel %vm1427_vm5, %v1399_v18, %v2833_v13  ;;  %v1466_v0 = vsel %vm1460_vm6, %v1433_v55, %v2844_v26  ;;  %v2838_v6 = vunpack.i.l.bf16 %v4154_v7 }
  0xfd   : > { %v2864_v58 = vunpack.i.h.bf16 %v2862_v54  ;;  %v2863_v59 = vunpack.i.l.bf16 %v2862_v54  ;;  %v1465_v35 = vsel %vm1460_vm6, %v1432_v49, %v2843_v53  ;;  %v1499_v22 = vsel %vm1493_vm7, %v1466_v0, %v2854_v15 }
  0xfe   : > { %v2857_v29 = vpop.permute.xlu0 %2856  ;;  %3151 = vrot.lane.b32.xlu1 %v3586_v28, %s3247_s19  ;;  %v1498_v40 = vsel %vm1493_vm7, %v1465_v35, %v2853_v31  ;;  %v2849_v46 = vunpack.i.h.bf16 %v2847_v14  ;;  %v2848_v5 = vunpack.i.l.bf16 %v2847_v14  ;;  %v1402_v43 = vsel %vm1394_vm4, %v1369_v32, %v2764_v20 }
  0xff   : > { %v1531_v44 = vsel %vm1526_vm8, %v1498_v40, %v2863_v59  ;;  %v1532_v23 = vsel %vm1526_vm8, %v1499_v22, %v2864_v58  ;;  %v2859_v7 = vunpack.i.h.bf16 %v2857_v29  ;;  %v2858_v30 = vunpack.i.l.bf16 %v2857_v29  ;;  %v4878_v22 = vld [vmem:[#allocation38_spill] sm:$0xff] }
 0x100   : > { %3146 = vrot.lane.b32.xlu0 %v3598_v37, %s3247_s19  ;;  %v2872_v48 = vpop.permute.xlu1 %2871  ;;  %v1435_v60 = vsel %vm1427_vm5, %v1402_v43, %v2839_v45  ;;  %v1434_v26 = vsel %vm1427_vm5, %v1401_v63, %v2838_v6  ;;  %v4232_v53 = vsel %vm372_vm0, %v1126_v4, %v1127_v17  ;;  %v4235_v54 = vsel %vm372_vm0, %v1127_v17, %v1129_v1 }
 0x101   : > { %v2874_v62 = vunpack.i.h.bf16 %v2872_v48  ;;  %v2873_v56 = vunpack.i.l.bf16 %v2872_v48  ;;  %v2614_v32 = vunpack.i.h.bf16 %v3842_v16  ;;  %v1467_v24 = vsel %vm1460_vm6, %v1434_v26, %v2848_v5  ;;  %v4877_v48 = vld [vmem:[#allocation6_spill] sm:$0xff]  ;;  %v4879_v5 = vld [vmem:[#allocation37_spill] sm:$0xff] }
 0x102   : > { %v2867_v3 = vpop.permute.xlu0 %2866  ;;  %3161 = vrot.lane.b32.xlu1 %v3735_v27, %s3248_s21  ;;  %v1468_v12 = vsel %vm1460_vm6, %v1435_v60, %v2849_v46  ;;  %v1500_v4 = vsel %vm1493_vm7, %v1467_v24, %v2858_v30  ;;  %v1228_v59 = vrot.slane %v4151_v39, 2  ;;  %v1230_v29 = vrot.slane %v323_v25, 2 }
 0x103   : > { %v1564_v37 = vsel %vm1559_vm9, %v1531_v44, %v2873_v56  ;;  %v1565_v57 = vsel %vm1559_vm9, %v1532_v23, %v2874_v62  ;;  %v2869_v19 = vunpack.i.h.bf16 %v2867_v3  ;;  %v2868_v13 = vunpack.i.l.bf16 %v2867_v3 }
 0x104   : > { %v2328_v52 = vpack.c.bf16 %v1565_v57, %v1564_v37  ;;  %3156 = vrot.lane.b32.xlu0 %v3745_v9, %s3248_s21  ;;  %v4227_v14 = vpop.permute.xlu1 %2881  ;;  %v1227_v9 = vrot.slane %v4149_v61, 2  ;;  %v1501_v17 = vsel %vm1493_vm7, %v1468_v12, %v2859_v7  ;;  %v2613_v20 = vunpack.i.l.bf16 %v3842_v16 }
 0x105   : > { %v1533_v18 = vsel %vm1526_vm8, %v1500_v4, %v2868_v13  ;;  %v1534_v50 = vsel %vm1526_vm8, %v1501_v17, %v2869_v19  ;;  %v2609_v63 = vunpack.i.h.bf16 %v3846_v33  ;;  %v2608_v35 = vunpack.i.l.bf16 %v3846_v33 }
 0x106   : > { %v2877_v15 = vpop.permute.xlu0 %2876  ;;  %3171 = vrot.lane.b32.xlu1 %v4049_v8, %s3243_s27  ;;  %2524 = vmatprep.mubr.msk.bf16.mxu0 %vm4110_vm11, %v2328_v52  ;;  %v3200_v16 = vpack.i.bf16 %v4151_v39, %v4149_v61  ;;  %v1340_v11 = vsel %vm1328_vm2, %v3356_v42, %v2614_v32  ;;  %v3210_v25 = vpack.i.bf16 %v4235_v54, %v4232_v53  ;;  %v2694_v33 = vunpack.i.h.bf16 %v3906_v36 }
 0x107   : > { %v2879_v1 = vunpack.i.h.bf16 %v2877_v15  ;;  %v2878_v31 = vunpack.i.l.bf16 %v2877_v15  ;;  %v2693_v6 = vunpack.i.l.bf16 %v3906_v36  ;;  %v4283_v61 = vsel %vm549_vm1, %v1228_v59, %v1230_v29 }
 0x108   : > { %3166 = vrot.lane.b32.xlu0 %v4044_v47, %s3243_s27  ;;  %v2892_v58 = vpop.permute.xlu1 %2891  ;;  %v4265_v47 = vpack.i.bf16 %v4167_v10, %v4164_v38  ;;  %v4280_v10 = vsel %vm549_vm1, %v1227_v9, %v1228_v59  ;;  %v1339_v42 = vsel %vm1328_vm2, %v3354_v41, %v2613_v20  ;;  %v1338_v39 = vsel %vm1328_vm2, %v3372_v51, %v2609_v63  ;;  %s211_s27 = scalar_lea.vmem %s4710_s3, %s4915_s16 }
 0x109   : > { %v1566_v49 = vsel %vm1559_vm9, %v1533_v18, %v2878_v31  ;;  %v1567_v55 = vsel %vm1559_vm9, %v1534_v50, %v2879_v1  ;;  %v2689_v36 = vunpack.i.h.bf16 %v3908_v34  ;;  %v1337_v40 = vsel %vm1328_vm2, %v4877_v48, %v2608_v35 }
 0x10a   : > { %v2331_v0 = vpack.c.bf16 %v1567_v55, %v1566_v49  ;;  %v4259_v45 = vpop.permute.xlu0 %2886  ;;  %3181 = vrot.lane.b32.xlu1 %v4159_v2, %s3244_s8  ;;  %v2769_v62 = vunpack.i.h.bf16 %v4878_v22  ;;  %v2768_v56 = vunpack.i.l.bf16 %v4878_v22  ;;  %v2773_v41 = vunpack.i.l.bf16 %v4879_v5 }
 0x10b   : > { %v2884_v44 = vunpack.i.h.bf16 %v4227_v14  ;;  %v2883_v51 = vunpack.i.l.bf16 %v4227_v14  ;;  %v1373_v23 = vsel %vm1361_vm3, %v1340_v11, %v2694_v33  ;;  %v1372_v3 = vsel %vm1361_vm3, %v1339_v42, %v2693_v6 }
 0x10c   : > { %3176 = vrot.lane.b32.xlu0 %v3586_v28, %s3244_s8  ;;  %2525 = vmatmul.mubr.msk.bf16.gmra.mrb[4].mxu0 %vm4110_vm11, %v2331_v0  ;;  %v2902_v38 = vpop.permute.xlu1 %2901  ;;  %v2688_v28 = vunpack.i.l.bf16 %v3908_v34  ;;  %v3220_v34 = vpack.i.bf16 %v4283_v61, %v4280_v10  ;;  %v2894_v7 = vunpack.i.h.bf16 %v2892_v58  ;;  %v2893_v30 = vunpack.i.l.bf16 %v2892_v58 }
 0x10d   : > { %v1371_v43 = vsel %vm1361_vm3, %v1338_v39, %v2689_v36  ;;  %v2904_v52 = vunpack.i.h.bf16 %v2902_v38  ;;  %v2903_v19 = vunpack.i.l.bf16 %v2902_v38  ;;  %v2774_v54 = vunpack.i.h.bf16 %v4879_v5 }
 0x10e   : > { %v2897_v46 = vpop.permute.xlu0 %2896  ;;  %3191 = vrot.lane.b32.xlu1 %v4265_v47, %s3245_s11  ;;  %v1370_v57 = vsel %vm1361_vm3, %v1337_v40, %v2688_v28  ;;  %v1404_v14 = vsel %vm1394_vm4, %v1371_v43, %v2769_v62  ;;  %v2889_v9 = vunpack.i.h.bf16 %v4259_v45  ;;  %v2888_v4 = vunpack.i.l.bf16 %v4259_v45 }
 0x10f   : > { %v1403_v13 = vsel %vm1394_vm4, %v1370_v57, %v2768_v56  ;;  %v1437_v24 = vsel %vm1427_vm5, %v1404_v14, %v2884_v44  ;;  %v2899_v58 = vunpack.i.h.bf16 %v2897_v46  ;;  %v2898_v59 = vunpack.i.l.bf16 %v2897_v46  ;;  %v4882_v57 = vld [vmem:[#allocation9_spill] sm:$0xff] }
 0x110   : > { %3186 = vrot.lane.b32.xlu0 %v3735_v27, %s3245_s11  ;;  %v2912_v37 = vpop.permute.xlu1 %2911  ;;  %v1405_v27 = vsel %vm1394_vm4, %v1372_v3, %v2773_v41  ;;  %v1436_v32 = vsel %vm1427_vm5, %v1403_v13, %v2883_v51  ;;  %v1470_v15 = vsel %vm1460_vm6, %v1437_v24, %v2894_v7  ;;  %v1406_v0 = vsel %vm1394_vm4, %v1373_v23, %v2774_v54  ;;  %v4880_v41 = vld [vmem:[#allocation2_spill] sm:$0xff] }
 0x111   : > { %v2914_v60 = vunpack.i.h.bf16 %v2912_v37  ;;  %v2913_v26 = vunpack.i.l.bf16 %v2912_v37  ;;  %v1469_v12 = vsel %vm1460_vm6, %v1436_v32, %v2893_v30  ;;  %v1503_v31 = vsel %vm1493_vm7, %v1470_v15, %v2904_v52  ;;  %v4883_v52 = vld [vmem:[#allocation8_spill] sm:$0xff] }
 0x112   : > { %v2907_v53 = vpop.permute.xlu0 %2906  ;;  %3201 = vrot.lane.b32.xlu1 %v3200_v16, %s3246_s14  ;;  %v1502_v1 = vsel %vm1493_vm7, %v1469_v12, %v2903_v19  ;;  %v1439_v6 = vsel %vm1427_vm5, %v1406_v0, %v2889_v9  ;;  %v1438_v38 = vsel %vm1427_vm5, %v1405_v27, %v2888_v4  ;;  %v2624_v44 = vunpack.i.h.bf16 %v4880_v41 }
 0x113   : > { %v1535_v29 = vsel %vm1526_vm8, %v1502_v1, %v2913_v26  ;;  %v1536_v20 = vsel %vm1526_vm8, %v1503_v31, %v2914_v60  ;;  %v2909_v49 = vunpack.i.h.bf16 %v2907_v53  ;;  %v2908_v55 = vunpack.i.l.bf16 %v2907_v53 }
 0x114   : > { %3196 = vrot.lane.b32.xlu0 %v4049_v8, %s3246_s14  ;;  %v2922_v17 = vpop.permute.xlu1 %2921  ;;  %v1472_v10 = vsel %vm1460_vm6, %v1439_v6, %v2899_v58  ;;  %v2623_v51 = vunpack.i.l.bf16 %v4880_v41  ;;  %v1344_v43 = vsel %vm1328_vm2, %v4882_v57, %v2624_v44 }
 0x115   : > { %v2924_v18 = vunpack.i.h.bf16 %v2922_v17  ;;  %v2923_v50 = vunpack.i.l.bf16 %v2922_v17  ;;  %v1505_v39 = vsel %vm1493_vm7, %v1472_v10, %v2909_v49  ;;  %v4884_v49 = vld [vmem:[#allocation31_spill] sm:$0xff] }
 0x116   : > { %v2917_v63 = vpop.permute.xlu0 %2916  ;;  %3211 = vrot.lane.b32.xlu1 %v3210_v25, %s3247_s19  ;;  %v1471_v25 = vsel %vm1460_vm6, %v1438_v38, %v2898_v59  ;;  %v1343_v19 = vsel %vm1328_vm2, %v4883_v52, %v2623_v51 }
 0x117   : > { %v1568_v8 = vsel %vm1559_vm9, %v1535_v29, %v2923_v50  ;;  %v1569_v35 = vsel %vm1559_vm9, %v1536_v20, %v2924_v18  ;;  %v2919_v16 = vunpack.i.h.bf16 %v2917_v63  ;;  %v2918_v11 = vunpack.i.l.bf16 %v2917_v63 }
 0x118   : > { %v2334_v45 = vpack.c.bf16 %v1569_v35, %v1568_v8  ;;  %3206 = vrot.lane.b32.xlu0 %v4159_v2, %s3247_s19  ;;  %v2932_v33 = vpop.permute.xlu1 %2931  ;;  %v1504_v42 = vsel %vm1493_vm7, %v1471_v25, %v2908_v55  ;;  %v4885_v8 = vld [vmem:[#allocation39_spill] sm:$0xff] }
 0x119   : > { %v1537_v28 = vsel %vm1526_vm8, %v1504_v42, %v2918_v11  ;;  %v1538_v48 = vsel %vm1526_vm8, %v1505_v39, %v2919_v16  ;;  %v2934_v7 = vunpack.i.h.bf16 %v2932_v33  ;;  %v2933_v30 = vunpack.i.l.bf16 %v2932_v33 }
 0x11a   : > { %v2927_v61 = vpop.permute.xlu0 %2926  ;;  %3221 = vrot.lane.b32.xlu1 %v3220_v34, %s3248_s21  ;;  %2528 = vmatprep.mubr.msk.bf16.mxu0 %vm4110_vm11, %v2334_v45  ;;  %v4881_v34 = vld [vmem:[#allocation17_spill] sm:$0xff] }
 0x11b   : > { %v2929_v2 = vunpack.i.h.bf16 %v2927_v61  ;;  %v2928_v36 = vunpack.i.l.bf16 %v2927_v61  ;;  %v2704_v23 = vunpack.i.h.bf16 %v4881_v34  ;;  %v2703_v3 = vunpack.i.l.bf16 %v4881_v34 }
 0x11c   : > { %3216 = vrot.lane.b32.xlu0 %v4265_v47, %s3248_s21  ;;  %v2942_v40 = vpop.permute.xlu1 %2941 }
 0x11d   : > { %v1570_v22 = vsel %vm1559_vm9, %v1537_v28, %v2928_v36  ;;  %v1571_v62 = vsel %vm1559_vm9, %v1538_v48, %v2929_v2  ;;  %v2944_v13 = vunpack.i.h.bf16 %v2942_v40  ;;  %v2943_v14 = vunpack.i.l.bf16 %v2942_v40 }
 0x11e   : > { %v2337_v56 = vpack.c.bf16 %v1571_v62, %v1570_v22  ;;  %v2937_v46 = vpop.permute.xlu0 %2936  ;;  %v1377_v60 = vsel %vm1361_vm3, %v1344_v43, %v2704_v23  ;;  %v1376_v26 = vsel %vm1361_vm3, %v1343_v19, %v2703_v3  ;;  %v4887_v43 = vld [vmem:[#allocation7_spill] sm:$0xff] }
 0x11f   : > { %v2939_v54 = vunpack.i.h.bf16 %v2937_v46  ;;  %v2938_v27 = vunpack.i.l.bf16 %v2937_v46  ;;  %v1410_v12 = vsel %vm1394_vm4, %v1377_v60, %v2934_v7  ;;  %v1409_v15 = vsel %vm1394_vm4, %v1376_v26, %v2933_v30  ;;  %v4886_v30 = vld [vmem:[#allocation4_spill] sm:$0xff] }
 0x120   : > { %2529 = vmatmul.mubr.msk.bf16.gmra.mrb[8].mxu0 %vm4110_vm11, %v2337_v56  ;;  %v2952_v5 = vpop.permute.xlu1 %2951  ;;  %v1442_v1 = vsel %vm1427_vm5, %v1409_v15, %v2943_v14  ;;  %v1443_v31 = vsel %vm1427_vm5, %v1410_v12, %v2944_v13  ;;  %v2633_v57 = vunpack.i.l.bf16 %v4886_v30  ;;  %v2629_v52 = vunpack.i.h.bf16 %v4887_v43  ;;  %v4888_v14 = vld [vmem:[#allocation15_spill] sm:$0xff]  ;;  %v4890_v15 = vld [vmem:[#allocation13_spill] sm:$0xff] }
 0x121   : > { %v2954_v32 = vunpack.i.h.bf16 %v2952_v5  ;;  %v2953_v24 = vunpack.i.l.bf16 %v2952_v5  ;;  %v1440_v55 = vsel %vm1427_vm5, %v4884_v49, %v2938_v27  ;;  %v1441_v35 = vsel %vm1427_vm5, %v4885_v8, %v2939_v54 }
 0x122   : > { %v2947_v47 = vpop.permute.xlu0 %2946  ;;  %v2628_v19 = vunpack.i.l.bf16 %v4887_v43  ;;  %v2714_v60 = vunpack.i.h.bf16 %v4888_v14  ;;  %v2713_v26 = vunpack.i.l.bf16 %v4888_v14 }
 0x123   : > { %v2949_v9 = vunpack.i.h.bf16 %v2947_v47  ;;  %v2948_v4 = vunpack.i.l.bf16 %v2947_v47  ;;  %v1475_v0 = vsel %vm1460_vm6, %v1442_v1, %v2953_v24  ;;  %v1476_v45 = vsel %vm1460_vm6, %v1443_v31, %v2954_v32  ;;  %v4892_v1 = vld [vmem:[#allocation16_spill] sm:$0xff] }
 0x124   : > { %v2962_v37 = vpop.permute.xlu1 %2961  ;;  %v1346_v31 = vsel %vm1328_vm2, %v4892_v1, %v2629_v52 }
 0x125   : > { %v2964_v18 = vunpack.i.h.bf16 %v2962_v37  ;;  %v2963_v50 = vunpack.i.l.bf16 %v2962_v37  ;;  %v1473_v16 = vsel %vm1460_vm6, %v1440_v55, %v2948_v4  ;;  %v1474_v11 = vsel %vm1460_vm6, %v1441_v35, %v2949_v9  ;;  %v4891_v4 = vld [vmem:[#allocation12_spill] sm:$0xff] }
 0x126   : > { %v2957_v53 = vpop.permute.xlu0 %2956  ;;  %v2634_v37 = vunpack.i.h.bf16 %v4886_v30 }
 0x127   : > { %v2959_v58 = vunpack.i.h.bf16 %v2957_v53  ;;  %v2958_v59 = vunpack.i.l.bf16 %v2957_v53  ;;  %v1508_v25 = vsel %vm1493_vm7, %v1475_v0, %v2963_v50  ;;  %v1509_v10 = vsel %vm1493_vm7, %v1476_v45, %v2964_v18  ;;  %v4889_v53 = vld [vmem:[#allocation23_spill] sm:$0xff]  ;;  %v4893_v18 = vld [vmem:[#allocation14_spill] sm:$0xff] }
 0x128   : > { %v2972_v17 = vpop.permute.xlu1 %2971  ;;  %v2709_v54 = vunpack.i.h.bf16 %v4889_v53  ;;  %v2708_v27 = vunpack.i.l.bf16 %v4889_v53  ;;  %v1348_v9 = vsel %vm1328_vm2, %v4890_v15, %v2634_v37  ;;  %v1345_v50 = vsel %vm1328_vm2, %v4893_v18, %v2628_v19 }
 0x129   : > { %v2974_v29 = vunpack.i.h.bf16 %v2972_v17  ;;  %v2973_v20 = vunpack.i.l.bf16 %v2972_v17  ;;  %v1506_v39 = vsel %vm1493_vm7, %v1473_v16, %v2958_v59  ;;  %v1507_v2 = vsel %vm1493_vm7, %v1474_v11, %v2959_v58 }
 0x12a   : > { %v2967_v63 = vpop.permute.xlu0 %2966  ;;  %v1347_v17 = vsel %vm1328_vm2, %v4891_v4, %v2633_v57  ;;  %v1378_v8 = vsel %vm1361_vm3, %v1345_v50, %v2708_v27  ;;  %v1379_v35 = vsel %vm1361_vm3, %v1346_v31, %v2709_v54  ;;  %v4894_v50 = vld [vmem:[#allocation3_spill] sm:$0xff] }
 0x12b   : > { %v2969_v33 = vunpack.i.h.bf16 %v2967_v63  ;;  %v2968_v6 = vunpack.i.l.bf16 %v2967_v63  ;;  %v1541_v36 = vsel %vm1526_vm8, %v1508_v25, %v2973_v20  ;;  %v1542_v28 = vsel %vm1526_vm8, %v1509_v10, %v2974_v29 }
 0x12c   : > { %v2982_v38 = vpop.permute.xlu1 %2981  ;;  %v1381_v20 = vsel %vm1361_vm3, %v1348_v9, %v2714_v60  ;;  %v1380_v63 = vsel %vm1361_vm3, %v1347_v17, %v2713_v26 }
 0x12d   : > { %v2984_v61 = vunpack.i.h.bf16 %v2982_v38  ;;  %v2983_v42 = vunpack.i.l.bf16 %v2982_v38  ;;  %v1539_v46 = vsel %vm1526_vm8, %v1506_v39, %v2968_v6  ;;  %v1540_v5 = vsel %vm1526_vm8, %v1507_v2, %v2969_v33 }
 0x12e   : > { %v2977_v48 = vpop.permute.xlu0 %2976 }
 0x12f   : > { %v1574_v40 = vsel %vm1559_vm9, %v1541_v36, %v2983_v42  ;;  %v1575_v22 = vsel %vm1559_vm9, %v1542_v28, %v2984_v61  ;;  %v2979_v62 = vunpack.i.h.bf16 %v2977_v48  ;;  %v2978_v56 = vunpack.i.l.bf16 %v2977_v48 }
 0x130   : > { %v2992_v41 = vpop.permute.xlu1 %2991  ;;  %v2343_v44 = vpack.c.bf16 %v1575_v22, %v1574_v40 }
 0x131   : > { %v1572_v51 = vsel %vm1559_vm9, %v1539_v46, %v2978_v56  ;;  %v1573_v34 = vsel %vm1559_vm9, %v1540_v5, %v2979_v62  ;;  %v2994_v32 = vunpack.i.h.bf16 %v2992_v41  ;;  %v2993_v24 = vunpack.i.l.bf16 %v2992_v41 }
 0x132   : > { %v2340_v23 = vpack.c.bf16 %v1573_v34, %v1572_v51  ;;  %v2987_v3 = vpop.permute.xlu0 %2986 }
 0x133   : > { %v2989_v58 = vunpack.i.h.bf16 %v2987_v3  ;;  %v2988_v59 = vunpack.i.l.bf16 %v2987_v3  ;;  %v1414_v0 = vsel %vm1394_vm4, %v1381_v20, %v2994_v32  ;;  %v1413_v45 = vsel %vm1394_vm4, %v1380_v63, %v2993_v24 }
 0x134   : > { %2532 = vmatprep.mubr.msk.bf16.mxu0 %vm4110_vm11, %v2340_v23  ;;  %v3002_v47 = vpop.permute.xlu1 %3001 }
 0x135   : > { %2533 = vmatmul.mubr.msk.bf16.gmra.mrb[12].mxu0 %vm4110_vm11, %v2343_v44  ;;  %v3004_v49 = vunpack.i.h.bf16 %v3002_v47  ;;  %v3003_v55 = vunpack.i.l.bf16 %v3002_v47  ;;  %v1411_v25 = vsel %vm1394_vm4, %v1378_v8, %v2988_v59  ;;  %v1412_v10 = vsel %vm1394_vm4, %v1379_v35, %v2989_v58 }
 0x136   : > { %v2997_v7 = vpop.permute.xlu0 %2996  ;;  %v2644_v58 = vunpack.i.h.bf16 %v4894_v50  ;;  %v2643_v59 = vunpack.i.l.bf16 %v4894_v50 }
 0x137   : > { %v2999_v11 = vunpack.i.h.bf16 %v2997_v7  ;;  %v2998_v33 = vunpack.i.l.bf16 %v2997_v7  ;;  %v1446_v2 = vsel %vm1427_vm5, %v1413_v45, %v3003_v55  ;;  %v1447_v36 = vsel %vm1427_vm5, %v1414_v0, %v3004_v49  ;;  %v4896_v55 = vld [vmem:[#allocation20_spill] sm:$0xff]  ;;  %v4897_v0 = vld [vmem:[#allocation29_spill] sm:$0xff] }
 0x138   : > { %v3012_v13 = vpop.permute.xlu1 %3011  ;;  %v2724_v8 = vunpack.i.h.bf16 %v4896_v55  ;;  %v2723_v35 = vunpack.i.l.bf16 %v4896_v55  ;;  %v2719_v45 = vunpack.i.h.bf16 %v4897_v0 }
 0x139   : > { %v3014_v6 = vunpack.i.h.bf16 %v3012_v13  ;;  %v3013_v38 = vunpack.i.l.bf16 %v3012_v13  ;;  %v1444_v5 = vsel %vm1427_vm5, %v1411_v25, %v2998_v33  ;;  %v1445_v41 = vsel %vm1427_vm5, %v1412_v10, %v2999_v11  ;;  %v4899_v10 = vld [vmem:[#allocation18_spill] sm:$0xff] }
 0x13a   : > { %v3007_v12 = vpop.permute.xlu0 %3006 }
 0x13b   : > { %v3009_v61 = vunpack.i.h.bf16 %v3007_v12  ;;  %v3008_v42 = vunpack.i.l.bf16 %v3007_v12  ;;  %v1479_v44 = vsel %vm1460_vm6, %v1446_v2, %v3013_v38  ;;  %v1480_v51 = vsel %vm1460_vm6, %v1447_v36, %v3014_v6  ;;  %v4898_v38 = vld [vmem:[#allocation19_spill] sm:$0xff]  ;;  %v4901_v2 = vld [vmem:[#allocation21_spill] sm:$0xff] }
 0x13c   : > { %v3022_v29 = vpop.permute.xlu1 %3021  ;;  %v1352_v25 = vsel %vm1328_vm2, %v4898_v38, %v2644_v58 }
 0x13d   : > { %v3024_v28 = vunpack.i.h.bf16 %v3022_v29  ;;  %v3023_v48 = vunpack.i.l.bf16 %v3022_v29  ;;  %v1477_v34 = vsel %vm1460_vm6, %v1444_v5, %v3008_v42  ;;  %v1478_v23 = vsel %vm1460_vm6, %v1445_v41, %v3009_v61  ;;  %v4895_v29 = vld [vmem:[#allocation5_spill] sm:$0xff]  ;;  %v4900_v42 = vld [vmem:[#allocation22_spill] sm:$0xff] }
 0x13e   : > { %v3017_v16 = vpop.permute.xlu0 %3016  ;;  %v2639_v20 = vunpack.i.h.bf16 %v4895_v29  ;;  %v2638_v63 = vunpack.i.l.bf16 %v4895_v29  ;;  %v1351_v61 = vsel %vm1328_vm2, %v4899_v10, %v2643_v59 }
 0x13f   : > { %v3019_v40 = vunpack.i.h.bf16 %v3017_v16  ;;  %v3018_v22 = vunpack.i.l.bf16 %v3017_v16  ;;  %v1512_v30 = vsel %vm1493_vm7, %v1479_v44, %v3023_v48  ;;  %v1513_v37 = vsel %vm1493_vm7, %v1480_v51, %v3024_v28 }
 0x140   : > { %v3032_v39 = vpop.permute.xlu1 %3031  ;;  %v2718_v16 = vunpack.i.l.bf16 %v4897_v0  ;;  %v1349_v36 = vsel %vm1328_vm2, %v4901_v2, %v2638_v63 }
 0x141   : > { %v3034_v62 = vunpack.i.h.bf16 %v3032_v39  ;;  %v3033_v56 = vunpack.i.l.bf16 %v3032_v39  ;;  %v1510_v52 = vsel %vm1493_vm7, %v1477_v34, %v3018_v22  ;;  %v1511_v19 = vsel %vm1493_vm7, %v1478_v23, %v3019_v40 }
 0x142   : > { %v3027_v46 = vpop.permute.xlu0 %3026  ;;  %v1350_v39 = vsel %vm1328_vm2, %v4900_v42, %v2639_v20  ;;  %v1385_v22 = vsel %vm1361_vm3, %v1352_v25, %v2724_v8  ;;  %v1382_v5 = vsel %vm1361_vm3, %v1349_v36, %v2718_v16  ;;  %v4902_v36 = vld [vmem:[#allocation11_spill] sm:$0xff] }
 0x143   : > { %v3029_v3 = vunpack.i.h.bf16 %v3027_v46  ;;  %v3028_v47 = vunpack.i.l.bf16 %v3027_v46  ;;  %v1545_v13 = vsel %vm1526_vm8, %v1512_v30, %v3033_v56  ;;  %v1546_v14 = vsel %vm1526_vm8, %v1513_v37, %v3034_v62 }
 0x144   : > { %v3042_v7 = vpop.permute.xlu1 %3041  ;;  %v1384_v62 = vsel %vm1361_vm3, %v1351_v61, %v2723_v35  ;;  %v1383_v41 = vsel %vm1361_vm3, %v1350_v39, %v2719_v45 }
 0x145   : > { %v3044_v57 = vunpack.i.h.bf16 %v3042_v7  ;;  %v3043_v43 = vunpack.i.l.bf16 %v3042_v7  ;;  %v1543_v24 = vsel %vm1526_vm8, %v1510_v52, %v3028_v47  ;;  %v1544_v12 = vsel %vm1526_vm8, %v1511_v19, %v3029_v3 }
 0x146   : > { %v3037_v60 = vpop.permute.xlu0 %3036 }
 0x147   : > { %v1578_v26 = vsel %vm1559_vm9, %v1545_v13, %v3043_v43  ;;  %v1579_v53 = vsel %vm1559_vm9, %v1546_v14, %v3044_v57  ;;  %v3039_v54 = vunpack.i.h.bf16 %v3037_v60  ;;  %v3038_v27 = vunpack.i.l.bf16 %v3037_v60 }
 0x148   : > { %v3052_v32 = vpop.permute.xlu1 %3051  ;;  %v2349_v15 = vpack.c.bf16 %v1579_v53, %v1578_v26 }
 0x149   : > { %v1576_v9 = vsel %vm1559_vm9, %v1543_v24, %v3038_v27  ;;  %v1577_v4 = vsel %vm1559_vm9, %v1544_v12, %v3039_v54  ;;  %v3054_v11 = vunpack.i.h.bf16 %v3052_v32  ;;  %v3053_v33 = vunpack.i.l.bf16 %v3052_v32 }
 0x14a   : > { %v3047_v17 = vpop.permute.xlu0 %3046  ;;  %v2346_v1 = vpack.c.bf16 %v1577_v4, %v1576_v9 }
 0x14b   : > { %v3049_v28 = vunpack.i.h.bf16 %v3047_v17  ;;  %v3048_v48 = vunpack.i.l.bf16 %v3047_v17  ;;  %v1418_v44 = vsel %vm1394_vm4, %v1385_v22, %v3054_v11  ;;  %v1417_v51 = vsel %vm1394_vm4, %v1384_v62, %v3053_v33 }
 0x14c   : > { %2536 = vmatprep.mubr.msk.bf16.mxu1 %vm4110_vm11, %v2346_v1  ;;  %v3062_v31 = vpop.permute.xlu1 %3061 }
 0x14d   : > { %2537 = vmatmul.mubr.msk.bf16.vlgmr.msra.gmra.mrb[0].mxu1 %vm4110_vm11, %v2349_v15  ;;  %v3064_v56 = vunpack.i.h.bf16 %v3062_v31  ;;  %v3063_v46 = vunpack.i.l.bf16 %v3062_v31  ;;  %v1415_v30 = vsel %vm1394_vm4, %v1382_v5, %v3048_v48  ;;  %v1416_v37 = vsel %vm1394_vm4, %v1383_v41, %v3049_v28 }
 0x14e   : > { %v3057_v18 = vpop.permute.xlu0 %3056  ;;  %v2654_v28 = vunpack.i.h.bf16 %v4902_v36  ;;  %v2653_v48 = vunpack.i.l.bf16 %v4902_v36 }
 0x14f   : > { %v3059_v23 = vunpack.i.h.bf16 %v3057_v18  ;;  %v3058_v3 = vunpack.i.l.bf16 %v3057_v18  ;;  %v1450_v19 = vsel %vm1427_vm5, %v1417_v51, %v3063_v46  ;;  %v1451_v13 = vsel %vm1427_vm5, %v1418_v44, %v3064_v56  ;;  %v4904_v46 = vld [vmem:[#allocation32_spill] sm:$0xff]  ;;  %v4905_v44 = vld [vmem:[#allocation33_spill] sm:$0xff] }
 0x150   : > { %v3072_v49 = vpop.permute.xlu1 %3071  ;;  %v2734_v5 = vunpack.i.h.bf16 %v4904_v46  ;;  %v2733_v41 = vunpack.i.l.bf16 %v4904_v46  ;;  %v2729_v51 = vunpack.i.h.bf16 %v4905_v44 }
 0x151   : > { %v3074_v47 = vunpack.i.h.bf16 %v3072_v49  ;;  %v3073_v7 = vunpack.i.l.bf16 %v3072_v49  ;;  %v1448_v24 = vsel %vm1427_vm5, %v1415_v30, %v3058_v3  ;;  %v1449_v12 = vsel %vm1427_vm5, %v1416_v37, %v3059_v23  ;;  %v4907_v37 = vld [vmem:[#allocation24_spill] sm:$0xff] }
 0x152   : > { %v3067_v6 = vpop.permute.xlu0 %3066 }
 0x153   : > { %v3069_v57 = vunpack.i.h.bf16 %v3067_v6  ;;  %v3068_v43 = vunpack.i.l.bf16 %v3067_v6  ;;  %v1483_v15 = vsel %vm1460_vm6, %v1450_v19, %v3073_v7  ;;  %v1484_v9 = vsel %vm1460_vm6, %v1451_v13, %v3074_v47  ;;  %v4906_v7 = vld [vmem:[#allocation25_spill] sm:$0xff]  ;;  %v4909_v19 = vld [vmem:[#allocation26_spill] sm:$0xff] }
 0x154   : > { %v3082_v40 = vpop.permute.xlu1 %3081  ;;  %v1356_v30 = vsel %vm1328_vm2, %v4906_v7, %v2654_v28 }
 0x155   : > { %v3084_v14 = vunpack.i.h.bf16 %v3082_v40  ;;  %v3083_v60 = vunpack.i.l.bf16 %v3082_v40  ;;  %v1481_v4 = vsel %vm1460_vm6, %v1448_v24, %v3068_v43  ;;  %v1482_v17 = vsel %vm1460_vm6, %v1449_v12, %v3069_v57  ;;  %v4903_v40 = vld [vmem:[#allocation10_spill] sm:$0xff]  ;;  %v4908_v43 = vld [vmem:[#allocation28_spill] sm:$0xff] }
 0x156   : > { %v3077_v34 = vpop.permute.xlu0 %3076  ;;  %v2649_v22 = vunpack.i.h.bf16 %v4903_v40  ;;  %v2648_v62 = vunpack.i.l.bf16 %v4903_v40  ;;  %v1355_v57 = vsel %vm1328_vm2, %v4907_v37, %v2653_v48 }
 0x157   : > { %v3079_v26 = vunpack.i.h.bf16 %v3077_v34  ;;  %v3078_v53 = vunpack.i.l.bf16 %v3077_v34  ;;  %v1516_v50 = vsel %vm1493_vm7, %v1483_v15, %v3083_v60  ;;  %v1517_v58 = vsel %vm1493_vm7, %v1484_v9, %v3084_v14 }
 0x158   : > { %v3092_v52 = vpop.permute.xlu1 %3091  ;;  %v2728_v34 = vunpack.i.l.bf16 %v4905_v44  ;;  %v1353_v13 = vsel %vm1328_vm2, %v4909_v19, %v2648_v62 }
 0x159   : > { %v3094_v54 = vunpack.i.h.bf16 %v3092_v52  ;;  %v3093_v27 = vunpack.i.l.bf16 %v3092_v52  ;;  %v1514_v20 = vsel %vm1493_vm7, %v1481_v4, %v3078_v53  ;;  %v1515_v63 = vsel %vm1493_vm7, %v1482_v17, %v3079_v26 }
 0x15a   : > { %v3087_v32 = vpop.permute.xlu0 %3086  ;;  %v1354_v52 = vsel %vm1328_vm2, %v4908_v43, %v2649_v22  ;;  %v1389_v53 = vsel %vm1361_vm3, %v1356_v30, %v2734_v5  ;;  %v1386_v24 = vsel %vm1361_vm3, %v1353_v13, %v2728_v34 }
 0x15b   : > { %v3089_v1 = vunpack.i.h.bf16 %v3087_v32  ;;  %v3088_v31 = vunpack.i.l.bf16 %v3087_v32  ;;  %v1549_v49 = vsel %vm1526_vm8, %v1516_v50, %v3093_v27  ;;  %v1550_v55 = vsel %vm1526_vm8, %v1517_v58, %v3094_v54 }
 0x15c   : > { %v3102_v18 = vpop.permute.xlu1 %3101  ;;  %v1388_v54 = vsel %vm1361_vm3, %v1355_v57, %v2733_v41  ;;  %v1387_v12 = vsel %vm1361_vm3, %v1354_v52, %v2729_v51 }
 0x15d   : > { %v3104_v59 = vunpack.i.h.bf16 %v3102_v18  ;;  %v3103_v29 = vunpack.i.l.bf16 %v3102_v18  ;;  %v1547_v11 = vsel %vm1526_vm8, %v1514_v20, %v3088_v31  ;;  %v1548_v33 = vsel %vm1526_vm8, %v1515_v63, %v3089_v1 }
 0x15e   : > { %v3097_v8 = vpop.permute.xlu0 %3096 }
 0x15f   : > { %v1582_v35 = vsel %vm1559_vm9, %v1549_v49, %v3103_v29  ;;  %v1583_v0 = vsel %vm1559_vm9, %v1550_v55, %v3104_v59  ;;  %v3099_v45 = vunpack.i.h.bf16 %v3097_v8  ;;  %v3098_v16 = vunpack.i.l.bf16 %v3097_v8 }
 0x160   : > { %v3112_v6 = vpop.permute.xlu1 %3111  ;;  %v2355_v38 = vpack.c.bf16 %v1583_v0, %v1582_v35 }
 0x161   : > { %v1580_v25 = vsel %vm1559_vm9, %v1547_v11, %v3098_v16  ;;  %v1581_v10 = vsel %vm1559_vm9, %v1548_v33, %v3099_v45  ;;  %v3114_v23 = vunpack.i.h.bf16 %v3112_v6  ;;  %v3113_v3 = vunpack.i.l.bf16 %v3112_v6 }
 0x162   : > { %v2352_v61 = vpack.c.bf16 %v1581_v10, %v1580_v25  ;;  %v3107_v42 = vpop.permute.xlu0 %3106 }
 0x163   : > { %v3109_v14 = vunpack.i.h.bf16 %v3107_v42  ;;  %v3108_v60 = vunpack.i.l.bf16 %v3107_v42  ;;  %v1422_v15 = vsel %vm1394_vm4, %v1389_v53, %v3114_v23  ;;  %v1421_v9 = vsel %vm1394_vm4, %v1388_v54, %v3113_v3 }
 0x164   : > { %2540 = vmatprep.mubr.msk.bf16.mxu1 %vm4110_vm11, %v2352_v61  ;;  %v3122_v39 = vpop.permute.xlu1 %3121 }
 0x165   : > { %2541 = vmatmul.mubr.msk.bf16.gmra.mrb[4].mxu1 %vm4110_vm11, %v2355_v38  ;;  %v3124_v27 = vunpack.i.h.bf16 %v3122_v39  ;;  %v3123_v32 = vunpack.i.l.bf16 %v3122_v39  ;;  %v1419_v50 = vsel %vm1394_vm4, %v1386_v24, %v3108_v60  ;;  %v1420_v58 = vsel %vm1394_vm4, %v1387_v12, %v3109_v14  ;;  %v4910_v12 = vld [vmem:[#allocation27_spill] sm:$0xff] }
 0x166   : > { %v3117_v2 = vpop.permute.xlu0 %3116 }
 0x167   : > { %v3119_v17 = vunpack.i.h.bf16 %v3117_v2  ;;  %v3118_v1 = vunpack.i.l.bf16 %v3117_v2  ;;  %v1454_v63 = vsel %vm1427_vm5, %v1421_v9, %v3123_v32  ;;  %v1455_v49 = vsel %vm1427_vm5, %v1422_v15, %v3124_v27  ;;  %v4911_v9 = vld [vmem:[#allocation34_spill] sm:$0xff] }
 0x168   : > { %v3132_v56 = vpop.permute.xlu1 %3131 }
 0x169   : > { %v3134_v31 = vunpack.i.h.bf16 %v3132_v56  ;;  %v3133_v18 = vunpack.i.l.bf16 %v3132_v56  ;;  %v1452_v33 = vsel %vm1427_vm5, %v1419_v50, %v3118_v1  ;;  %v1453_v6 = vsel %vm1427_vm5, %v1420_v58, %v3119_v17  ;;  %v4912_v58 = vld [vmem:[#allocation35_spill] sm:$0xff] }
 0x16a   : > { %v3127_v47 = vpop.permute.xlu0 %3126 }
 0x16b   : > { %v3129_v59 = vunpack.i.h.bf16 %v3127_v47  ;;  %v3128_v29 = vunpack.i.l.bf16 %v3127_v47  ;;  %v1487_v38 = vsel %vm1460_vm6, %v1454_v63, %v3133_v18  ;;  %v1488_v25 = vsel %vm1460_vm6, %v1455_v49, %v3134_v31 }
 0x16c   : > { %v3142_v26 = vpop.permute.xlu1 %3141 }
 0x16d   : > { %v3144_v55 = vunpack.i.h.bf16 %v3142_v26  ;;  %v3143_v8 = vunpack.i.l.bf16 %v3142_v26  ;;  %v1485_v10 = vsel %vm1460_vm6, %v1452_v33, %v3128_v29  ;;  %v1486_v61 = vsel %vm1460_vm6, %v1453_v6, %v3129_v59  ;;  %v4913_v29 = vld [vmem:[#allocation36_spill] sm:$0xff] }
 0x16e   : > { %v3137_v4 = vpop.permute.xlu0 %3136 }
 0x16f   : > { %v3139_v35 = vunpack.i.h.bf16 %v3137_v4  ;;  %v3138_v0 = vunpack.i.l.bf16 %v3137_v4  ;;  %v1520_v36 = vsel %vm1493_vm7, %v1487_v38, %v3143_v8  ;;  %v1521_v28 = vsel %vm1493_vm7, %v1488_v25, %v3144_v55 }
 0x170   : > { %v3152_v20 = vpop.permute.xlu1 %3151 }
 0x171   : > { %v3154_v45 = vunpack.i.h.bf16 %v3152_v20  ;;  %v3153_v16 = vunpack.i.l.bf16 %v3152_v20  ;;  %v1518_v22 = vsel %vm1493_vm7, %v1485_v10, %v3138_v0  ;;  %v1519_v62 = vsel %vm1493_vm7, %v1486_v61, %v3139_v35 }
 0x172   : > { %v3147_v11 = vpop.permute.xlu0 %3146 }
 0x173   : > { %v3149_v42 = vunpack.i.h.bf16 %v3147_v11  ;;  %v3148_v39 = vunpack.i.l.bf16 %v3147_v11  ;;  %v1553_v56 = vsel %vm1526_vm8, %v1520_v36, %v3153_v16  ;;  %v1554_v46 = vsel %vm1526_vm8, %v1521_v28, %v3154_v45 }
 0x174   : > { %v3162_v2 = vpop.permute.xlu1 %3161 }
 0x175   : > { %v3164_v48 = vunpack.i.h.bf16 %v3162_v2  ;;  %v3163_v40 = vunpack.i.l.bf16 %v3162_v2  ;;  %v1551_v23 = vsel %vm1526_vm8, %v1518_v22, %v3148_v39  ;;  %v1552_v3 = vsel %vm1526_vm8, %v1519_v62, %v3149_v42 }
 0x176   : > { %v3157_v5 = vpop.permute.xlu0 %3156 }
 0x177   : > { %v1586_v41 = vsel %vm1559_vm9, %v1553_v56, %v3163_v40  ;;  %v1587_v44 = vsel %vm1559_vm9, %v1554_v46, %v3164_v48  ;;  %v3159_v51 = vunpack.i.h.bf16 %v3157_v5  ;;  %v3158_v34 = vunpack.i.l.bf16 %v3157_v5 }
 0x178   : > { %v3172_v47 = vpop.permute.xlu1 %3171  ;;  %v2361_v7 = vpack.c.bf16 %v1587_v44, %v1586_v41 }
 0x179   : > { %v1584_v30 = vsel %vm1559_vm9, %v1551_v23, %v3158_v34  ;;  %v1585_v37 = vsel %vm1559_vm9, %v1552_v3, %v3159_v51  ;;  %v3174_v14 = vunpack.i.h.bf16 %v3172_v47  ;;  %v3173_v60 = vunpack.i.l.bf16 %v3172_v47 }
 0x17a   : > { %v2358_v57 = vpack.c.bf16 %v1585_v37, %v1584_v30  ;;  %v3167_v43 = vpop.permute.xlu0 %3166 }
 0x17b   : > { %v3169_v53 = vunpack.i.h.bf16 %v3167_v43  ;;  %v3168_v54 = vunpack.i.l.bf16 %v3167_v43  ;;  %v1426_v15 = vsel %vm1394_vm4, %v4910_v12, %v3174_v14  ;;  %v1425_v4 = vsel %vm1394_vm4, %v4911_v9, %v3173_v60 }
 0x17c   : > { %2544 = vmatprep.mubr.msk.bf16.mxu1 %vm4110_vm11, %v2358_v57  ;;  %v3182_v52 = vpop.permute.xlu1 %3181 }
 0x17d   : > { %2545 = vmatmul.mubr.msk.bf16.gmra.mrb[8].mxu1 %vm4110_vm11, %v2361_v7  ;;  %v3184_v32 = vunpack.i.h.bf16 %v3182_v52  ;;  %v3183_v24 = vunpack.i.l.bf16 %v3182_v52  ;;  %v1423_v59 = vsel %vm1394_vm4, %v4912_v58, %v3168_v54  ;;  %v1424_v20 = vsel %vm1394_vm4, %v4913_v29, %v3169_v53 }
 0x17e   : > { %v3177_v19 = vpop.permute.xlu0 %3176 }
 0x17f   : > { %v3179_v1 = vunpack.i.h.bf16 %v3177_v19  ;;  %v3178_v31 = vunpack.i.l.bf16 %v3177_v19  ;;  %v1458_v8 = vsel %vm1427_vm5, %v1425_v4, %v3183_v24  ;;  %v1459_v35 = vsel %vm1427_vm5, %v1426_v15, %v3184_v32 }
 0x180   : > { %v3192_v13 = vpop.permute.xlu1 %3191 }
 0x181   : > { %v3194_v18 = vunpack.i.h.bf16 %v3192_v13  ;;  %v3193_v50 = vunpack.i.l.bf16 %v3192_v13  ;;  %v1456_v25 = vsel %vm1427_vm5, %v1423_v59, %v3178_v31  ;;  %v1457_v10 = vsel %vm1427_vm5, %v1424_v20, %v3179_v1 }
 0x182   : > { %v3187_v26 = vpop.permute.xlu0 %3186 }
 0x183   : > { %v3189_v63 = vunpack.i.h.bf16 %v3187_v26  ;;  %v3188_v49 = vunpack.i.l.bf16 %v3187_v26  ;;  %v1491_v61 = vsel %vm1460_vm6, %v1458_v8, %v3193_v50  ;;  %v1492_v42 = vsel %vm1460_vm6, %v1459_v35, %v3194_v18 }
 0x184   : > { %v3202_v27 = vpop.permute.xlu1 %3201 }
 0x185   : > { %v3204_v0 = vunpack.i.h.bf16 %v3202_v27  ;;  %v3203_v45 = vunpack.i.l.bf16 %v3202_v27  ;;  %v1489_v39 = vsel %vm1460_vm6, %v1456_v25, %v3188_v49  ;;  %v1490_v2 = vsel %vm1460_vm6, %v1457_v10, %v3189_v63 }
 0x186   : > { %v3197_v17 = vpop.permute.xlu0 %3196 }
 0x187   : > { %v3199_v16 = vunpack.i.h.bf16 %v3197_v17  ;;  %v3198_v11 = vunpack.i.l.bf16 %v3197_v17  ;;  %v1524_v40 = vsel %vm1493_vm7, %v1491_v61, %v3203_v45  ;;  %v1525_v22 = vsel %vm1493_vm7, %v1492_v42, %v3204_v0 }
 0x188   : > { %v3212_v55 = vpop.permute.xlu1 %3211 }
 0x189   : > { %v3214_v33 = vunpack.i.h.bf16 %v3212_v55  ;;  %v3213_v6 = vunpack.i.l.bf16 %v3212_v55  ;;  %v1522_v46 = vsel %vm1493_vm7, %v1489_v39, %v3198_v11  ;;  %v1523_v5 = vsel %vm1493_vm7, %v1490_v2, %v3199_v16 }
 0x18a   : > { %v3207_v38 = vpop.permute.xlu0 %3206 }
 0x18b   : > { %v3209_v36 = vunpack.i.h.bf16 %v3207_v38  ;;  %v3208_v28 = vunpack.i.l.bf16 %v3207_v38  ;;  %v1557_v41 = vsel %vm1526_vm8, %v1524_v40, %v3213_v6  ;;  %v1558_v44 = vsel %vm1526_vm8, %v1525_v22, %v3214_v33 }
 0x18c   : > { %v3222_v48 = vpop.permute.xlu1 %3221 }
 0x18d   : > { %v3224_v62 = vunpack.i.h.bf16 %v3222_v48  ;;  %v3223_v56 = vunpack.i.l.bf16 %v3222_v48  ;;  %v1555_v7 = vsel %vm1526_vm8, %v1522_v46, %v3208_v28  ;;  %v1556_v30 = vsel %vm1526_vm8, %v1523_v5, %v3209_v36 }
 0x18e   : > { %v3217_v51 = vpop.permute.xlu0 %3216 }
 0x18f   : > { %v1590_v34 = vsel %vm1559_vm9, %v1557_v41, %v3223_v56  ;;  %v1591_v23 = vsel %vm1559_vm9, %v1558_v44, %v3224_v62  ;;  %v3219_v3 = vunpack.i.h.bf16 %v3217_v51  ;;  %v3218_v47 = vunpack.i.l.bf16 %v3217_v51 }
 0x190   : > { %v2367_v37 = vpack.c.bf16 %v1591_v23, %v1590_v34 }
 0x191   : > { %v1588_v57 = vsel %vm1559_vm9, %v1555_v7, %v3218_v47  ;;  %v1589_v43 = vsel %vm1559_vm9, %v1556_v30, %v3219_v3 }
 0x192   : > { %v2364_v52 = vpack.c.bf16 %v1589_v43, %v1588_v57 }
 0x194   : > { %2548 = vmatprep.mubr.msk.bf16.mxu1 %vm4110_vm11, %v2364_v52 }
 0x195   : > { %2549 = vmatmul.mubr.msk.bf16.gmra.mrb[12].mxu1 %vm4110_vm11, %v2367_v37 }
 0x1cb   : > { %v2522_v19 = vpop.f32.mrb[0].mxu0 }
 0x1cc   : > { %v2406_v13 = vpack.c.bf16 %v2522_v19, %v2522_v19  ;;  %v1739_v14 = vpop.f32.mrb[1].mxu0  ;;  %v2100_v21 = vmul.f32 %v2522_v19, %v2522_v19  ;;  %v2030_v4 = vsel %vm1361_vm3, %v2522_v19, 0.0 }
 0x1cd   : > { %v2404_v60 = vpack.c.bf16 %v1739_v14, %v1739_v14  ;;  %v2098_v26 = vmul.f32 %v1739_v14, %v1739_v14  ;;  %v2523_v53 = vpop.f32.mrb[2].mxu0  ;;  %v2027_v32 = vsel %vm1361_vm3, %v1739_v14, 0.0 }
 0x1ce   : > { %1997 = vst.msk [vmem:[%s4566_s24 + $0x8] sm:$0xf] %vm1994_vm12, %v2406_v13  ;;  %v2407_v54 = vpack.c.bf16 %v2523_v53, %v2523_v53  ;;  %v1742_v27 = vpop.f32.mrb[3].mxu0  ;;  %v2101_v1 = vmul.f32 %v2523_v53, %v2523_v53  ;;  %v2133_v58 = vsel %vm1361_vm3, %v2100_v21, 0.0  ;;  %v2032_v59 = vsel %vm1361_vm3, %v2523_v53, 0.0 }
 0x1cf   : > { %1995 = vst.msk [vmem:[%s4566_s24] sm:$0xf] %vm1994_vm12, %v2404_v60  ;;  %v2405_v24 = vpack.c.bf16 %v1742_v27, %v1742_v27  ;;  %v2028_v12 = vsel %vm1361_vm3, %v1742_v27, 0.0  ;;  %v2099_v15 = vmul.f32 %v1742_v27, %v1742_v27  ;;  %v2130_v17 = vsel %vm1361_vm3, %v2098_v26, 0.0 }
 0x1d0   : > { %1998 = vst.msk [vmem:[%s4566_s24 + $0xc] sm:$0xf] %vm1994_vm12, %v2407_v54  ;;  %v2029_v9 = vadd.f32 %v2028_v12, %v2027_v32  ;;  %v2135_v63 = vsel %vm1361_vm3, %v2101_v1, 0.0 }
 0x1d1   : > { %1996 = vst.msk [vmem:[%s4566_s24 + $0x4] sm:$0xf] %vm1994_vm12, %v2405_v24  ;;  %v2131_v31 = vsel %vm1361_vm3, %v2099_v15, 0.0 }
 0x1d2   : > { %v2031_v18 = vadd.f32 %v2030_v4, %v2029_v9  ;;  %v2132_v50 = vadd.f32 %v2131_v31, %v2130_v17 }
 0x1d4   : > { %v2134_v29 = vadd.f32 %v2133_v58, %v2132_v50  ;;  %v2033_v20 = vadd.f32 %v2032_v59, %v2031_v18 }
 0x1d6   : > { %v2136_v49 = vadd.f32 %v2135_v63, %v2134_v29 }
 0x1df   : > { %v2526_v55 = vpop.f32.mrb[4].mxu0 }
 0x1e0   : > { %v2410_v8 = vpack.c.bf16 %v2526_v55, %v2526_v55  ;;  %v1755_v35 = vpop.f32.mrb[5].mxu0  ;;  %v2104_v42 = vmul.f32 %v2526_v55, %v2526_v55  ;;  %v2038_v28 = vsel %vm1361_vm3, %v2526_v55, 0.0 }
 0x1e1   : > { %v2408_v0 = vpack.c.bf16 %v1755_v35, %v1755_v35  ;;  %v2034_v45 = vsel %vm1361_vm3, %v1755_v35, 0.0  ;;  %v2102_v16 = vmul.f32 %v1755_v35, %v1755_v35  ;;  %v2527_v11 = vpop.f32.mrb[6].mxu0 }
 0x1e2   : > { %2001 = vst.msk [vmem:[%s4566_s24 + $0x18] sm:$0xf] %vm1994_vm12, %v2410_v8  ;;  %v2035_v33 = vadd.f32 %v2034_v45, %v2033_v20  ;;  %v2411_v6 = vpack.c.bf16 %v2527_v11, %v2527_v11  ;;  %v1758_v38 = vpop.f32.mrb[7].mxu0  ;;  %v2105_v48 = vmul.f32 %v2527_v11, %v2527_v11  ;;  %v2040_v62 = vsel %vm1361_vm3, %v2527_v11, 0.0 }
 0x1e3   : > { %1999 = vst.msk [vmem:[%s4566_s24 + $0x10] sm:$0xf] %vm1994_vm12, %v2408_v0  ;;  %v2137_v25 = vsel %vm1361_vm3, %v2102_v16, 0.0  ;;  %v2409_v10 = vpack.c.bf16 %v1758_v38, %v1758_v38  ;;  %v2036_v61 = vsel %vm1361_vm3, %v1758_v38, 0.0  ;;  %v2103_v36 = vmul.f32 %v1758_v38, %v1758_v38 }
 0x1e4   : > { %v2138_v39 = vadd.f32 %v2137_v25, %v2136_v49  ;;  %2002 = vst.msk [vmem:[%s4566_s24 + $0x1c] sm:$0xf] %vm1994_vm12, %v2411_v6  ;;  %v2037_v2 = vadd.f32 %v2036_v61, %v2035_v33  ;;  %v2141_v46 = vsel %vm1361_vm3, %v2104_v42, 0.0  ;;  %v2143_v44 = vsel %vm1361_vm3, %v2105_v48, 0.0 }
 0x1e5   : > { %2000 = vst.msk [vmem:[%s4566_s24 + $0x14] sm:$0xf] %vm1994_vm12, %v2409_v10  ;;  %v2139_v22 = vsel %vm1361_vm3, %v2103_v36, 0.0 }
 0x1e6   : > { %v2039_v40 = vadd.f32 %v2038_v28, %v2037_v2  ;;  %v2140_v56 = vadd.f32 %v2139_v22, %v2138_v39 }
 0x1e8   : > { %v2041_v5 = vadd.f32 %v2040_v62, %v2039_v40  ;;  %v2142_v41 = vadd.f32 %v2141_v46, %v2140_v56 }
 0x1ea   : > { %v2144_v51 = vadd.f32 %v2143_v44, %v2142_v41 }
 0x1f3   : > { %v2530_v34 = vpop.f32.mrb[8].mxu0 }
 0x1f4   : > { %v2414_v23 = vpack.c.bf16 %v2530_v34, %v2530_v34  ;;  %v1771_v3 = vpop.f32.mrb[9].mxu0  ;;  %v2108_v60 = vmul.f32 %v2530_v34, %v2530_v34  ;;  %v2046_v54 = vsel %vm1361_vm3, %v2530_v34, 0.0 }
 0x1f5   : > { %v2412_v47 = vpack.c.bf16 %v1771_v3, %v1771_v3  ;;  %v2042_v7 = vsel %vm1361_vm3, %v1771_v3, 0.0  ;;  %v2106_v30 = vmul.f32 %v1771_v3, %v1771_v3  ;;  %v2531_v37 = vpop.f32.mrb[10].mxu0 }
 0x1f6   : > { %2005 = vst.msk [vmem:[%s4566_s24 + $0x28] sm:$0xf] %vm1994_vm12, %v2414_v23  ;;  %v2043_v57 = vadd.f32 %v2042_v7, %v2041_v5  ;;  %v2415_v43 = vpack.c.bf16 %v2531_v37, %v2531_v37  ;;  %v1774_v52 = vpop.f32.mrb[11].mxu0  ;;  %v2109_v27 = vmul.f32 %v2531_v37, %v2531_v37  ;;  %v2048_v12 = vsel %vm1361_vm3, %v2531_v37, 0.0 }
 0x1f7   : > { %2003 = vst.msk [vmem:[%s4566_s24 + $0x20] sm:$0xf] %vm1994_vm12, %v2412_v47  ;;  %v2145_v19 = vsel %vm1361_vm3, %v2106_v30, 0.0  ;;  %v2413_v13 = vpack.c.bf16 %v1774_v52, %v1774_v52  ;;  %v2044_v14 = vsel %vm1361_vm3, %v1774_v52, 0.0  ;;  %v2107_v21 = vmul.f32 %v1774_v52, %v1774_v52 }
 0x1f8   : > { %v2146_v26 = vadd.f32 %v2145_v19, %v2144_v51  ;;  %2006 = vst.msk [vmem:[%s4566_s24 + $0x2c] sm:$0xf] %vm1994_vm12, %v2415_v43  ;;  %v2045_v53 = vadd.f32 %v2044_v14, %v2043_v57  ;;  %v2149_v9 = vsel %vm1361_vm3, %v2108_v60, 0.0  ;;  %v2151_v1 = vsel %vm1361_vm3, %v2109_v27, 0.0 }
 0x1f9   : > { %2004 = vst.msk [vmem:[%s4566_s24 + $0x24] sm:$0xf] %vm1994_vm12, %v2413_v13  ;;  %v2147_v24 = vsel %vm1361_vm3, %v2107_v21, 0.0 }
 0x1fa   : > { %v2047_v32 = vadd.f32 %v2046_v54, %v2045_v53  ;;  %v2148_v15 = vadd.f32 %v2147_v24, %v2146_v26 }
 0x1fc   : > { %v2049_v4 = vadd.f32 %v2048_v12, %v2047_v32  ;;  %v2150_v17 = vadd.f32 %v2149_v9, %v2148_v15 }
 0x1fe   : > { %v2152_v31 = vadd.f32 %v2151_v1, %v2150_v17 }
 0x208   : > { %v2534_v18 = vpop.f32.mrb[12].mxu0 }
 0x209   : > { %v2418_v50 = vpack.c.bf16 %v2534_v18, %v2534_v18  ;;  %v1787_v58 = vpop.f32.mrb[13].mxu0  ;;  %v2112_v16 = vmul.f32 %v2534_v18, %v2534_v18  ;;  %v2054_v38 = vsel %vm1361_vm3, %v2534_v18, 0.0 }
 0x20a   : > { %v2416_v59 = vpack.c.bf16 %v1787_v58, %v1787_v58  ;;  %v2050_v29 = vsel %vm1361_vm3, %v1787_v58, 0.0  ;;  %v2110_v20 = vmul.f32 %v1787_v58, %v1787_v58  ;;  %v2535_v63 = vpop.f32.mrb[14].mxu0 }
 0x20b   : > { %2009 = vst.msk [vmem:[%s4566_s24 + $0x38] sm:$0xf] %vm1994_vm12, %v2418_v50  ;;  %v2051_v49 = vadd.f32 %v2050_v29, %v2049_v4  ;;  %v2419_v55 = vpack.c.bf16 %v2535_v63, %v2535_v63  ;;  %v1790_v8 = vpop.f32.mrb[15].mxu0  ;;  %v2113_v25 = vmul.f32 %v2535_v63, %v2535_v63  ;;  %v2056_v42 = vsel %vm1361_vm3, %v2535_v63, 0.0 }
 0x20c   : > { %2007 = vst.msk [vmem:[%s4566_s24 + $0x30] sm:$0xf] %vm1994_vm12, %v2416_v59  ;;  %v2153_v35 = vsel %vm1361_vm3, %v2110_v20, 0.0  ;;  %v2417_v0 = vpack.c.bf16 %v1790_v8, %v1790_v8  ;;  %v2052_v45 = vsel %vm1361_vm3, %v1790_v8, 0.0  ;;  %v2111_v6 = vmul.f32 %v1790_v8, %v1790_v8 }
 0x20d   : > { %v2154_v11 = vadd.f32 %v2153_v35, %v2152_v31  ;;  %2010 = vst.msk [vmem:[%s4566_s24 + $0x3c] sm:$0xf] %vm1994_vm12, %v2419_v55  ;;  %v2053_v33 = vadd.f32 %v2052_v45, %v2051_v49  ;;  %v2157_v2 = vsel %vm1361_vm3, %v2112_v16, 0.0  ;;  %v2159_v48 = vsel %vm1361_vm3, %v2113_v25, 0.0 }
 0x20e   : > { %2008 = vst.msk [vmem:[%s4566_s24 + $0x34] sm:$0xf] %vm1994_vm12, %v2417_v0  ;;  %v2155_v61 = vsel %vm1361_vm3, %v2111_v6, 0.0 }
 0x20f   : > { %v2055_v10 = vadd.f32 %v2054_v38, %v2053_v33  ;;  %v2156_v39 = vadd.f32 %v2155_v61, %v2154_v11 }
 0x211   : > { %v2057_v36 = vadd.f32 %v2056_v42, %v2055_v10  ;;  %v2158_v28 = vadd.f32 %v2157_v2, %v2156_v39 }
 0x213   : > { %v2160_v40 = vadd.f32 %v2159_v48, %v2158_v28 }
 0x220   : > { %v2538_v22 = vpop.f32.mrb[0].mxu1 }
 0x221   : > { %v2422_v62 = vpack.c.bf16 %v2538_v22, %v2538_v22  ;;  %v1803_v56 = vpop.f32.mrb[1].mxu1  ;;  %v2116_v30 = vmul.f32 %v2538_v22, %v2538_v22  ;;  %v2062_v52 = vsel %vm1361_vm3, %v2538_v22, 0.0 }
 0x222   : > { %v2420_v46 = vpack.c.bf16 %v1803_v56, %v1803_v56  ;;  %v2058_v5 = vsel %vm1361_vm3, %v1803_v56, 0.0  ;;  %v2114_v41 = vmul.f32 %v1803_v56, %v1803_v56  ;;  %v2539_v44 = vpop.f32.mrb[2].mxu1 }
 0x223   : > { %2013 = vst.msk [vmem:[%s4566_s24 + $0x48] sm:$0xf] %vm1994_vm12, %v2422_v62  ;;  %v2059_v51 = vadd.f32 %v2058_v5, %v2057_v36  ;;  %v2423_v34 = vpack.c.bf16 %v2539_v44, %v2539_v44  ;;  %v1806_v23 = vpop.f32.mrb[3].mxu1  ;;  %v2117_v19 = vmul.f32 %v2539_v44, %v2539_v44  ;;  %v2064_v60 = vsel %vm1361_vm3, %v2539_v44, 0.0 }
 0x224   : > { %2011 = vst.msk [vmem:[%s4566_s24 + $0x40] sm:$0xf] %vm1994_vm12, %v2420_v46  ;;  %v2161_v3 = vsel %vm1361_vm3, %v2114_v41, 0.0  ;;  %v2421_v47 = vpack.c.bf16 %v1806_v23, %v1806_v23  ;;  %v2060_v7 = vsel %vm1361_vm3, %v1806_v23, 0.0  ;;  %v2115_v43 = vmul.f32 %v1806_v23, %v1806_v23 }
 0x225   : > { %v2162_v37 = vadd.f32 %v2161_v3, %v2160_v40  ;;  %2014 = vst.msk [vmem:[%s4566_s24 + $0x4c] sm:$0xf] %vm1994_vm12, %v2423_v34  ;;  %v2061_v57 = vadd.f32 %v2060_v7, %v2059_v51  ;;  %v2165_v53 = vsel %vm1361_vm3, %v2116_v30, 0.0  ;;  %v2167_v27 = vsel %vm1361_vm3, %v2117_v19, 0.0 }
 0x226   : > { %2012 = vst.msk [vmem:[%s4566_s24 + $0x44] sm:$0xf] %vm1994_vm12, %v2421_v47  ;;  %v2163_v14 = vsel %vm1361_vm3, %v2115_v43, 0.0 }
 0x227   : > { %v2063_v13 = vadd.f32 %v2062_v52, %v2061_v57  ;;  %v2164_v26 = vadd.f32 %v2163_v14, %v2162_v37 }
 0x229   : > { %v2065_v21 = vadd.f32 %v2064_v60, %v2063_v13  ;;  %v2166_v54 = vadd.f32 %v2165_v53, %v2164_v26 }
 0x22b   : > { %v2168_v32 = vadd.f32 %v2167_v27, %v2166_v54 }
 0x238   : > { %v2542_v24 = vpop.f32.mrb[4].mxu1 }
 0x239   : > { %v2426_v12 = vpack.c.bf16 %v2542_v24, %v2542_v24  ;;  %v1819_v15 = vpop.f32.mrb[5].mxu1  ;;  %v2120_v20 = vmul.f32 %v2542_v24, %v2542_v24  ;;  %v2070_v8 = vsel %vm1361_vm3, %v2542_v24, 0.0 }
 0x23a   : > { %v2424_v9 = vpack.c.bf16 %v1819_v15, %v1819_v15  ;;  %v2066_v4 = vsel %vm1361_vm3, %v1819_v15, 0.0  ;;  %v2118_v17 = vmul.f32 %v1819_v15, %v1819_v15  ;;  %v2543_v1 = vpop.f32.mrb[6].mxu1 }
 0x23b   : > { %2017 = vst.msk [vmem:[%s4566_s24 + $0x58] sm:$0xf] %vm1994_vm12, %v2426_v12  ;;  %v2067_v31 = vadd.f32 %v2066_v4, %v2065_v21  ;;  %v2427_v18 = vpack.c.bf16 %v2543_v1, %v2543_v1  ;;  %v1822_v50 = vpop.f32.mrb[7].mxu1  ;;  %v2121_v35 = vmul.f32 %v2543_v1, %v2543_v1  ;;  %v2072_v16 = vsel %vm1361_vm3, %v2543_v1, 0.0 }
 0x23c   : > { %2015 = vst.msk [vmem:[%s4566_s24 + $0x50] sm:$0xf] %vm1994_vm12, %v2424_v9  ;;  %v2169_v58 = vsel %vm1361_vm3, %v2118_v17, 0.0  ;;  %v2425_v59 = vpack.c.bf16 %v1822_v50, %v1822_v50  ;;  %v2068_v29 = vsel %vm1361_vm3, %v1822_v50, 0.0  ;;  %v2119_v55 = vmul.f32 %v1822_v50, %v1822_v50 }
 0x23d   : > { %v2170_v63 = vadd.f32 %v2169_v58, %v2168_v32  ;;  %2018 = vst.msk [vmem:[%s4566_s24 + $0x5c] sm:$0xf] %vm1994_vm12, %v2427_v18  ;;  %v2069_v49 = vadd.f32 %v2068_v29, %v2067_v31  ;;  %v2173_v33 = vsel %vm1361_vm3, %v2120_v20, 0.0  ;;  %v2175_v25 = vsel %vm1361_vm3, %v2121_v35, 0.0 }
 0x23e   : > { %2016 = vst.msk [vmem:[%s4566_s24 + $0x54] sm:$0xf] %vm1994_vm12, %v2425_v59  ;;  %v2171_v45 = vsel %vm1361_vm3, %v2119_v55, 0.0 }
 0x23f   : > { %v2071_v0 = vadd.f32 %v2070_v8, %v2069_v49  ;;  %v2172_v11 = vadd.f32 %v2171_v45, %v2170_v63 }
 0x241   : > { %v2073_v6 = vadd.f32 %v2072_v16, %v2071_v0  ;;  %v2174_v38 = vadd.f32 %v2173_v33, %v2172_v11 }
 0x243   : > { %v2176_v10 = vadd.f32 %v2175_v25, %v2174_v38 }
 0x250   : > { %v2546_v61 = vpop.f32.mrb[8].mxu1 }
 0x251   : > { %v2430_v42 = vpack.c.bf16 %v2546_v61, %v2546_v61  ;;  %v1835_v39 = vpop.f32.mrb[9].mxu1  ;;  %v2124_v41 = vmul.f32 %v2546_v61, %v2546_v61  ;;  %v2078_v23 = vsel %vm1361_vm3, %v2546_v61, 0.0 }
 0x252   : > { %v2428_v2 = vpack.c.bf16 %v1835_v39, %v1835_v39  ;;  %v2074_v36 = vsel %vm1361_vm3, %v1835_v39, 0.0  ;;  %v2122_v28 = vmul.f32 %v1835_v39, %v1835_v39  ;;  %v2547_v48 = vpop.f32.mrb[10].mxu1 }
 0x253   : > { %2021 = vst.msk [vmem:[%s4566_s24 + $0x68] sm:$0xf] %vm1994_vm12, %v2430_v42  ;;  %v2075_v40 = vadd.f32 %v2074_v36, %v2073_v6  ;;  %v2431_v22 = vpack.c.bf16 %v2547_v48, %v2547_v48  ;;  %v1838_v62 = vpop.f32.mrb[11].mxu1  ;;  %v2125_v3 = vmul.f32 %v2547_v48, %v2547_v48  ;;  %v2080_v30 = vsel %vm1361_vm3, %v2547_v48, 0.0 }
 0x254   : > { %2019 = vst.msk [vmem:[%s4566_s24 + $0x60] sm:$0xf] %vm1994_vm12, %v2428_v2  ;;  %v2177_v56 = vsel %vm1361_vm3, %v2122_v28, 0.0  ;;  %v2429_v46 = vpack.c.bf16 %v1838_v62, %v1838_v62  ;;  %v2076_v5 = vsel %vm1361_vm3, %v1838_v62, 0.0  ;;  %v2123_v34 = vmul.f32 %v1838_v62, %v1838_v62 }
 0x255   : > { %v2178_v44 = vadd.f32 %v2177_v56, %v2176_v10  ;;  %2022 = vst.msk [vmem:[%s4566_s24 + $0x6c] sm:$0xf] %vm1994_vm12, %v2431_v22  ;;  %v2077_v51 = vadd.f32 %v2076_v5, %v2075_v40  ;;  %v2181_v57 = vsel %vm1361_vm3, %v2124_v41, 0.0  ;;  %v2183_v19 = vsel %vm1361_vm3, %v2125_v3, 0.0 }
 0x256   : > { %2020 = vst.msk [vmem:[%s4566_s24 + $0x64] sm:$0xf] %vm1994_vm12, %v2429_v46  ;;  %v2179_v7 = vsel %vm1361_vm3, %v2123_v34, 0.0 }
 0x257   : > { %v2079_v47 = vadd.f32 %v2078_v23, %v2077_v51  ;;  %v2180_v37 = vadd.f32 %v2179_v7, %v2178_v44 }
 0x259   : > { %v2081_v43 = vadd.f32 %v2080_v30, %v2079_v47  ;;  %v2182_v52 = vadd.f32 %v2181_v57, %v2180_v37 }
 0x25b   : > { %v2184_v13 = vadd.f32 %v2183_v19, %v2182_v52 }
 0x268   : > { %v2550_v14 = vpop.f32.mrb[12].mxu1 }
 0x269   : > { %v2434_v60 = vpack.c.bf16 %v2550_v14, %v2550_v14  ;;  %v1851_v26 = vpop.f32.mrb[13].mxu1  ;;  %v2128_v17 = vmul.f32 %v2550_v14, %v2550_v14  ;;  %v2086_v50 = vsel %vm1361_vm3, %v2550_v14, 0.0 }
 0x26a   : > { %v2432_v53 = vpack.c.bf16 %v1851_v26, %v1851_v26  ;;  %v2082_v21 = vsel %vm1361_vm3, %v1851_v26, 0.0  ;;  %v2126_v54 = vmul.f32 %v1851_v26, %v1851_v26  ;;  %v2551_v27 = vpop.f32.mrb[14].mxu1 }
 0x26b   : > { %2025 = vst.msk [vmem:[%s4566_s24 + $0x78] sm:$0xf] %vm1994_vm12, %v2434_v60  ;;  %v2083_v32 = vadd.f32 %v2082_v21, %v2081_v43  ;;  %v2435_v24 = vpack.c.bf16 %v2551_v27, %v2551_v27  ;;  %v1854_v12 = vpop.f32.mrb[15].mxu1  ;;  %v2129_v58 = vmul.f32 %v2551_v27, %v2551_v27  ;;  %v2088_v20 = vsel %vm1361_vm3, %v2551_v27, 0.0 }
 0x26c   : > { %2023 = vst.msk [vmem:[%s4566_s24 + $0x70] sm:$0xf] %vm1994_vm12, %v2432_v53  ;;  %v2185_v15 = vsel %vm1361_vm3, %v2126_v54, 0.0  ;;  %v2433_v9 = vpack.c.bf16 %v1854_v12, %v1854_v12  ;;  %v2084_v4 = vsel %vm1361_vm3, %v1854_v12, 0.0  ;;  %v2127_v18 = vmul.f32 %v1854_v12, %v1854_v12 }
 0x26d   : > { %v2186_v1 = vadd.f32 %v2185_v15, %v2184_v13  ;;  %2026 = vst.msk [vmem:[%s4566_s24 + $0x7c] sm:$0xf] %vm1994_vm12, %v2435_v24  ;;  %v2085_v31 = vadd.f32 %v2084_v4, %v2083_v32  ;;  %v2189_v49 = vsel %vm1361_vm3, %v2128_v17, 0.0  ;;  %v2191_v35 = vsel %vm1361_vm3, %v2129_v58, 0.0 }
 0x26e   : > { %2024 = vst.msk [vmem:[%s4566_s24 + $0x74] sm:$0xf] %vm1994_vm12, %v2433_v9  ;;  %v2187_v29 = vsel %vm1361_vm3, %v2127_v18, 0.0 }
 0x26f   : > { %v2087_v59 = vadd.f32 %v2086_v50, %v2085_v31  ;;  %v2188_v63 = vadd.f32 %v2187_v29, %v2186_v1 }
 0x271   : > { %v2089_v55 = vadd.f32 %v2088_v20, %v2087_v59  ;;  %v2190_v8 = vadd.f32 %v2189_v49, %v2188_v63 }
 0x273   : > { %v2090_v0 = vrot.slane %v2089_v55, 4  ;;  %v2192_v45 = vadd.f32 %v2191_v35, %v2190_v8 }
 0x275   : > { %v2091_v16 = vadd.f32 %v2090_v0, %v2089_v55  ;;  %v2193_v11 = vrot.slane %v2192_v45, 4 }
 0x277   : > { %v2092_v33 = vrot.slane %v2091_v16, 2  ;;  %v2194_v6 = vadd.f32 %v2193_v11, %v2192_v45 }
 0x279   : > { %v2093_v38 = vadd.f32 %v2092_v33, %v2091_v16  ;;  %v2195_v25 = vrot.slane %v2194_v6, 2 }
 0x27b   : > { %v2094_v10 = vrot.slane %v2093_v38, 1  ;;  %v2196_v61 = vadd.f32 %v2195_v25, %v2194_v6 }
 0x27d   : > { %v2095_v42 = vadd.f32 %v2094_v10, %v2093_v38  ;;  %v2197_v39 = vrot.slane %v2196_v61, 1 }
 0x27f   : > { %2097 = vst.msk [vmem:[%s211_s27] sm:$0x1] %vm2096_vm13, %v2095_v42  ;;  %v2198_v2 = vadd.f32 %v2197_v39, %v2196_v61 }
 0x281   : > { %2199 = vst.msk [vmem:[%s214_s30] sm:$0x1] %vm2096_vm13, %v2198_v2 }
 0x282 PF: > { %s15_s15 = sadd.s32 1, %s3239_s15  }
 0x283   : > { %p12_p4 = scmp.ge.s32.totalorder %s15_s15, 4  }
 0x285   :  { %14 = sbr.rel (!%p12_p4) target bundleno = 1 (0x1), region = 82 }

// kernel: double_conv.4
= control target key start
LH: loop header
LB: loop body
LE: loop exit
PB: predicated region body
PF: predicated region fallthrough
CT: control target
= control target key end

     0   :  { %s3592_s21 = smov 0   ;;  %s5101_s0 = inlined_call_operand.vmem [shape: bf16[2,18,18,8], index: 0, kind: input, shape index: {}]   ;;  %s5102_s1 = inlined_call_operand.vmem [shape: f32[1,8], index: 1, kind: input, shape index: {}]   ;;  %s5103_s2 = inlined_call_operand.vmem [shape: f32[1,8], index: 2, kind: input, shape index: {}]   ;;  %s5104_s3 = inlined_call_operand.vmem [shape: bf16[128,128], index: 3, kind: input, shape index: {}]   ;;  %s5105_s4 = inlined_call_operand.vmem [shape: bf16[2,256,8], index: 4, kind: output, shape index: {0}]   ;;  %s5106_s5 = inlined_call_operand.vmem [shape: f32[2,1,8], index: 5, kind: output, shape index: {1}]   ;;  %s5107_s6 = inlined_call_operand.vmem [shape: f32[2,1,8], index: 6, kind: output, shape index: {2}]  }
   0x1 LB: > { %s2611_s22 = sadd.s32 4294967295, %s3546_s21   ;;  %p2615_p0 = scmp.ge.s32.totalorder %s3546_s21, 1  ;;  %s3546_s21 = sphi %s3592_s21, %s17_s21  }
   0x2   : > { %p217_p1 = scmp.lt.s32.totalorder %s3546_s21, 3 }
   0x4   : > { %p218_p2 = pnand %p2615_p0, %p217_p1 }
   0x6   : > { %221 = sbr.rel (%p218_p2) target bundleno = 682 (0x2aa), region = 36 }
   0xd   : > { %p253_p3 = scmp.lt.s32.totalorder %s2611_s22, 1  ;;  %v554_v0 = vlaneseq  ;;  %v5108_v1 = vmov 0.0   ;;  %s3549_s24 = smov 8   ;;  %v3616_v6 = vld [vmem:[%s5102_s1] ss:$0 sm:$0xff]  ;;  %vm678_vm2 = vcmask 1046528  }
   0xe   : > { %v679_v2 = vrot.slane %v5108_v1, 1  ;;  %v856_v7 = vrot.slane %v5108_v1, 2  ;;  %v3635_v18 = vld [vmem:[%s5103_s2] ss:$0 sm:$0xff]  ;;  %vm855_vm3 = vcmask 1045504   ;;  %s3550_s8 = smov 16  }
   0xf   : > { %s5279_s22 = smov (!%p253_p3, %s2611_s22), 1  ;;  %v3603_v3 = vshrl.u32 %v554_v0, 7  ;;  %s3551_s13 = smov 24   ;;  %vm1634_vm4 = vcmask 64512   ;;  %vm1667_vm5 = vcmask 130048   ;;  %vm1700_vm6 = vcmask 195584  }
  0x10   : > { %v3605_v4 = vpack.i.bf16 %v679_v2, %v679_v2  ;;  %s2872_s23 = smul.u32 216, %s5279_s22  ;;  %v3677_v54 = vpack.i.bf16 %v856_v7, %v856_v7  ;;  %s3553_s27 = smov 40   ;;  %vm1733_vm7 = vcmask 261120   ;;  %vm1766_vm8 = vcmask 326656  }
  0x11   : > { %5169 = vst [vmem:[#allocation2_spill] sm:$0xff] %v3603_v3  ;;  %v3609_v5 = vadd.s32 16, %v3603_v3  ;;  %vm558_vm0 = vcmp.ge.s32.totalorder %v3603_v3, 1  ;;  %s3554_s7 = smov 48   ;;  %s3556_s9 = smov 64   ;;  %vm1799_vm9 = vcmask 392192  }
  0x12   : > { %5170 = vst [vmem:[#allocation3_spill] sm:$0xff] %v3605_v4  ;;  %2891 = vrot.lane.b32.xlu0 %v3605_v4, %s3549_s24  ;;  %s3621_s29 = scalar_lea.vmem %s5101_s0, %s2872_s23  ;;  %vm1832_vm10 = vcmask 457728   ;;  %vm1865_vm11 = vcmask 523264   ;;  %vm1898_vm12 = vcmask 588800   ;;  %vm2300_vm14 = vcmask 60416   ;;  %s265_s19 = scalar_lea.vmem %s5106_s5, %s5279_s22 }
  0x13   : > { %5171 = vst [vmem:[#allocation4_spill] sm:$0xff] %v3609_v5  ;;  %v2776_v8 = vld [vmem:[%s3621_s29 + $0x18] sm:$0xff]   ;;  %v278_v9 = vld [vmem:[%s3621_s29 + $0x20] sm:$0x1]  ;;  %vm569_vm1 = vcmp.le.s32.totalorder %v3609_v5, 16  ;;  %v273_v10 = vld [vmem:[%s3621_s29 + $0xc] sm:$0xff]  }
  0x14   : > { %v2746_v11 = vunpack.c.l.bf16 %v2776_v8  ;;  %v2747_v12 = vunpack.c.h.bf16 %v2776_v8  ;;  %v332_v13 = vunpack.c.l.bf16 %v278_v9  ;;  %v275_v14 = vld [vmem:[%s3621_s29 + $0x14] sm:$0x1]  ;;  %v327_v15 = vunpack.c.l.bf16 %v273_v10  ;;  %v279_v16 = vld [vmem:[%s3621_s29 + $0x24] sm:$0xff]   ;;  %v281_v17 = vld [vmem:[%s3621_s29 + $0x2c] sm:$0x1] }
  0x15   : > { %v328_v19 = vunpack.c.h.bf16 %v273_v10  ;;  %v329_v20 = vunpack.c.l.bf16 %v275_v14  ;;  %v333_v21 = vunpack.c.l.bf16 %v279_v16  ;;  %v334_v22 = vunpack.c.h.bf16 %v279_v16  ;;  %v2777_v59 = vld [vmem:[%s3621_s29 + $0x30] sm:$0xff]   ;;  %v284_v0 = vld [vmem:[%s3621_s29 + $0x38] sm:$0x1]  ;;  %v285_v10 = vld [vmem:[%s3621_s29 + $0x3c] sm:$0xff]  }
  0x16   : > { %v391_v23 = vmul.f32 %v2746_v11, %v3616_v6  ;;  %v392_v24 = vmul.f32 %v2747_v12, %v3616_v6  ;;  %v393_v25 = vmul.f32 %v3616_v6, %v332_v13  ;;  %v388_v26 = vmul.f32 %v3616_v6, %v327_v15  ;;  %v287_v15 = vld [vmem:[%s3621_s29 + $0x44] sm:$0x1]  ;;  %v309_v4 = vld [vmem:[%s3621_s29 + $0x9c] sm:$0xff]   ;;  %vm4530_vm13 = vmpackc.low %vm1898_vm12, %vm1898_vm12 }
  0x17   : > { %v389_v27 = vmul.f32 %v3616_v6, %v328_v19  ;;  %v390_v28 = vmul.f32 %v3616_v6, %v329_v20  ;;  %v335_v29 = vunpack.c.l.bf16 %v281_v17  ;;  %v394_v30 = vmul.f32 %v3616_v6, %v333_v21 }
  0x18   : > { %v452_v31 = vadd.f32 %v3635_v18, %v391_v23  ;;  %v453_v32 = vadd.f32 %v3635_v18, %v392_v24  ;;  %v454_v33 = vadd.f32 %v3635_v18, %v393_v25  ;;  %v449_v34 = vadd.f32 %v3635_v18, %v388_v26 }
  0x19   : > { %v450_v35 = vadd.f32 %v3635_v18, %v389_v27  ;;  %v451_v36 = vadd.f32 %v3635_v18, %v390_v28  ;;  %v395_v37 = vmul.f32 %v3616_v6, %v334_v22  ;;  %v396_v38 = vmul.f32 %v3616_v6, %v335_v29  ;;  %v2778_v29 = vld [vmem:[%s3621_s29 + $0x48] sm:$0xff]  }
  0x1a   : > { %v506_v39 = vmax.f32 %v452_v31, 0.0  ;;  %v3652_v40 = vmax.f32 %v453_v32, 0.0  ;;  %v508_v41 = vmax.f32 %v454_v33, 0.0  ;;  %v503_v42 = vmax.f32 %v449_v34, 0.0 }
  0x1b   : > { %v3654_v43 = vmax.f32 %v450_v35, 0.0  ;;  %v505_v44 = vmax.f32 %v451_v36, 0.0  ;;  %v455_v45 = vadd.f32 %v3635_v18, %v394_v30  ;;  %v456_v46 = vadd.f32 %v3635_v18, %v395_v37 }
  0x1c   : > { %v3660_v47 = vsel %vm558_vm0, %v506_v39, 0.0  ;;  %v3664_v48 = vsel %vm569_vm1, %v508_v41, 0.0  ;;  %v690_v49 = vrot.slane %v3652_v40, 1  ;;  %v3669_v50 = vsel %vm558_vm0, %v503_v42, 0.0 }
  0x1d   : > { %v689_v51 = vrot.slane %v3660_v47, 1  ;;  %v692_v52 = vrot.slane %v3664_v48, 1  ;;  %v3675_v53 = vsel %vm569_vm1, %v505_v44, 0.0  ;;  %v684_v55 = vrot.slane %v3669_v50, 1 }
  0x1e   : > { %v685_v56 = vrot.slane %v3654_v43, 1  ;;  %v687_v57 = vrot.slane %v3675_v53, 1  ;;  %v457_v58 = vadd.f32 %v3635_v18, %v396_v38  ;;  %v509_v62 = vmax.f32 %v455_v45, 0.0  ;;  %v290_v38 = vld [vmem:[%s3621_s29 + $0x50] sm:$0x1] }
  0x1f   : > { %v691_v60 = vsel %vm678_vm2, %v689_v51, %v690_v49  ;;  %v693_v61 = vsel %vm678_vm2, %v690_v49, %v692_v52  ;;  %v3686_v63 = vmax.f32 %v456_v46, 0.0  ;;  %v2750_v14 = vunpack.c.l.bf16 %v2777_v59 }
  0x20   : > { %v3689_v2 = vpack.i.bf16 %v693_v61, %v691_v60  ;;  %v686_v7 = vsel %vm678_vm2, %v684_v55, %v685_v56  ;;  %v688_v8 = vsel %vm678_vm2, %v685_v56, %v687_v57  ;;  %v511_v9 = vmax.f32 %v457_v58, 0.0 }
  0x21   : > { %v3694_v11 = vpack.i.bf16 %v688_v8, %v686_v7  ;;  %v3698_v12 = vsel %vm558_vm0, %v509_v62, 0.0  ;;  %v695_v13 = vrot.slane %v3686_v63, 1  ;;  %v2751_v19 = vunpack.c.h.bf16 %v2777_v59 }
  0x22   : > { %5172 = vst [vmem:[#allocation5_spill] sm:$0xff] %v3689_v2  ;;  %2901 = vrot.lane.b32.xlu1 %v3689_v2, %s3549_s24  ;;  %v3706_v16 = vsel %vm569_vm1, %v511_v9, 0.0  ;;  %v694_v17 = vrot.slane %v3698_v12, 1  ;;  %v338_v20 = vunpack.c.l.bf16 %v284_v0  ;;  %v397_v22 = vmul.f32 %v2750_v14, %v3616_v6  ;;  %v291_v9 = vld [vmem:[%s3621_s29 + $0x54] sm:$0xff]  }
  0x23   : > { %5173 = vst [vmem:[#allocation6_spill] sm:$0xff] %v3694_v11  ;;  %2896 = vrot.lane.b32.xlu0 %v3694_v11, %s3549_s24  ;;  %v697_v21 = vrot.slane %v3706_v16, 1  ;;  %v339_v23 = vunpack.c.l.bf16 %v285_v10  ;;  %v340_v24 = vunpack.c.h.bf16 %v285_v10  ;;  %v398_v26 = vmul.f32 %v2751_v19, %v3616_v6 }
  0x24   : > { %v696_v25 = vsel %vm678_vm2, %v694_v17, %v695_v13  ;;  %v399_v27 = vmul.f32 %v3616_v6, %v338_v20  ;;  %v341_v28 = vunpack.c.l.bf16 %v287_v15  ;;  %v458_v31 = vadd.f32 %v3635_v18, %v397_v22  ;;  %v293_v22 = vld [vmem:[%s3621_s29 + $0x5c] sm:$0x1] }
  0x25   : > { %v698_v30 = vsel %vm678_vm2, %v695_v13, %v697_v21  ;;  %v400_v32 = vmul.f32 %v3616_v6, %v339_v23  ;;  %v401_v33 = vmul.f32 %v3616_v6, %v340_v24  ;;  %v459_v35 = vadd.f32 %v3635_v18, %v398_v26 }
  0x26   : > { %v3721_v34 = vpack.i.bf16 %v698_v30, %v696_v25  ;;  %v460_v36 = vadd.f32 %v3635_v18, %v399_v27  ;;  %v402_v37 = vmul.f32 %v3616_v6, %v341_v28  ;;  %v512_v39 = vmax.f32 %v458_v31, 0.0  ;;  %v2779_v27 = vld [vmem:[%s3621_s29 + $0x60] sm:$0xff]  }
  0x27   : > { %v461_v41 = vadd.f32 %v3635_v18, %v400_v32  ;;  %v462_v42 = vadd.f32 %v3635_v18, %v401_v33  ;;  %v2754_v44 = vunpack.c.l.bf16 %v2778_v29  ;;  %v3731_v45 = vmax.f32 %v459_v35, 0.0 }
  0x28   : > { %5174 = vst [vmem:[#allocation7_spill] sm:$0xff] %v3721_v34  ;;  %2906 = vrot.lane.b32.xlu1 %v3721_v34, %s3549_s24  ;;  %v514_v46 = vmax.f32 %v460_v36, 0.0  ;;  %v463_v49 = vadd.f32 %v3635_v18, %v402_v37  ;;  %v2755_v51 = vunpack.c.h.bf16 %v2778_v29  ;;  %v3736_v52 = vsel %vm558_vm0, %v512_v39, 0.0  ;;  %v296_v37 = vld [vmem:[%s3621_s29 + $0x68] sm:$0x1] }
  0x29   : > { %v515_v55 = vmax.f32 %v461_v41, 0.0  ;;  %v3738_v56 = vmax.f32 %v462_v42, 0.0  ;;  %v344_v57 = vunpack.c.l.bf16 %v290_v38  ;;  %v699_v59 = vrot.slane %v3736_v52, 1 }
  0x2a   : > { %v3742_v58 = vsel %vm569_vm1, %v514_v46, 0.0  ;;  %v700_v60 = vrot.slane %v3731_v45, 1  ;;  %v517_v61 = vmax.f32 %v463_v49, 0.0  ;;  %v403_v8 = vmul.f32 %v2754_v44, %v3616_v6 }
  0x2b   : > { %v702_v62 = vrot.slane %v3742_v58, 1  ;;  %v3749_v0 = vsel %vm558_vm0, %v515_v55, 0.0  ;;  %v705_v7 = vrot.slane %v3738_v56, 1  ;;  %v404_v15 = vmul.f32 %v2755_v51, %v3616_v6 }
  0x2c   : > { %v701_v10 = vsel %vm678_vm2, %v699_v59, %v700_v60  ;;  %v3757_v13 = vsel %vm569_vm1, %v517_v61, 0.0  ;;  %v704_v14 = vrot.slane %v3749_v0, 1  ;;  %v405_v20 = vmul.f32 %v3616_v6, %v344_v57  ;;  %v297_v61 = vld [vmem:[%s3621_s29 + $0x6c] sm:$0xff]  }
  0x2d   : > { %v703_v17 = vsel %vm678_vm2, %v700_v60, %v702_v62  ;;  %v707_v19 = vrot.slane %v3757_v13, 1  ;;  %v464_v21 = vadd.f32 %v3635_v18, %v403_v8  ;;  %v465_v25 = vadd.f32 %v3635_v18, %v404_v15 }
  0x2e   : > { %v3766_v23 = vpack.i.bf16 %v703_v17, %v701_v10  ;;  %v706_v24 = vsel %vm678_vm2, %v704_v14, %v705_v7  ;;  %v345_v26 = vunpack.c.l.bf16 %v291_v9  ;;  %v466_v29 = vadd.f32 %v3635_v18, %v405_v20 }
  0x2f   : > { %v708_v28 = vsel %vm678_vm2, %v705_v7, %v707_v19  ;;  %v518_v30 = vmax.f32 %v464_v21, 0.0  ;;  %v346_v31 = vunpack.c.h.bf16 %v291_v9  ;;  %v3777_v33 = vmax.f32 %v465_v25, 0.0 }
  0x30   : > { %5175 = vst [vmem:[#allocation8_spill] sm:$0xff] %v3766_v23  ;;  %2911 = vrot.lane.b32.xlu0 %v3766_v23, %s3549_s24  ;;  %v3775_v32 = vpack.i.bf16 %v708_v28, %v706_v24  ;;  %v347_v35 = vunpack.c.l.bf16 %v293_v22  ;;  %v406_v36 = vmul.f32 %v3616_v6, %v345_v26  ;;  %v520_v38 = vmax.f32 %v466_v29, 0.0  ;;  %v299_v22 = vld [vmem:[%s3621_s29 + $0x74] sm:$0x1] }
  0x31   : > { %5177 = vst [vmem:[#allocation10_spill] sm:$0xff] %v3777_v33  ;;  %v3783_v39 = vsel %vm558_vm0, %v518_v30, 0.0  ;;  %v407_v41 = vmul.f32 %v3616_v6, %v346_v31  ;;  %v2758_v42 = vunpack.c.l.bf16 %v2779_v27  ;;  %v710_v46 = vrot.slane %v3777_v33, 1  ;;  %v315_v23 = vld [vmem:[%s3621_s29 + $0xb4] sm:$0xff]  }
  0x32   : > { %5176 = vst [vmem:[#allocation9_spill] sm:$0xff] %v3775_v32  ;;  %5178 = vst [vmem:[#allocation11_spill] sm:$0xff] %v3783_v39  ;;  %2916 = vrot.lane.b32.xlu1 %v3775_v32, %s3549_s24  ;;  %v709_v44 = vrot.slane %v3783_v39, 1  ;;  %v408_v49 = vmul.f32 %v3616_v6, %v347_v35  ;;  %v467_v51 = vadd.f32 %v3635_v18, %v406_v36  ;;  %v3794_v55 = vsel %vm569_vm1, %v520_v38, 0.0  ;;  %v2780_v36 = vld [vmem:[%s3621_s29 + $0x78] sm:$0xff]  }
  0x33   : > { %v468_v57 = vadd.f32 %v3635_v18, %v407_v41  ;;  %v2759_v59 = vunpack.c.h.bf16 %v2779_v27  ;;  %v350_v60 = vunpack.c.l.bf16 %v296_v37  ;;  %v712_v7 = vrot.slane %v3794_v55, 1 }
  0x34   : > { %v711_v62 = vsel %vm678_vm2, %v709_v44, %v710_v46  ;;  %v469_v8 = vadd.f32 %v3635_v18, %v408_v49  ;;  %v521_v9 = vmax.f32 %v467_v51, 0.0  ;;  %v409_v14 = vmul.f32 %v2758_v42, %v3616_v6 }
  0x35   : > { %v3801_v10 = vmax.f32 %v468_v57, 0.0  ;;  %v410_v15 = vmul.f32 %v2759_v59, %v3616_v6  ;;  %v411_v17 = vmul.f32 %v3616_v6, %v350_v60  ;;  %v713_v19 = vsel %vm678_vm2, %v710_v46, %v712_v7 }
  0x36   : > { %v523_v20 = vmax.f32 %v469_v8, 0.0  ;;  %v3809_v21 = vsel %vm558_vm0, %v521_v9, 0.0  ;;  %v351_v24 = vunpack.c.l.bf16 %v297_v61  ;;  %v3812_v25 = vpack.i.bf16 %v713_v19, %v711_v62  ;;  %v302_v62 = vld [vmem:[%s3621_s29 + $0x80] sm:$0x1] }
  0x37   : > { %5179 = vst [vmem:[#allocation12_spill] sm:$0xff] %v3801_v10  ;;  %5180 = vst [vmem:[#allocation13_spill] sm:$0xff] %v3809_v21  ;;  %v714_v26 = vrot.slane %v3809_v21, 1  ;;  %v715_v27 = vrot.slane %v3801_v10, 1  ;;  %v470_v28 = vadd.f32 %v3635_v18, %v409_v14  ;;  %v471_v30 = vadd.f32 %v3635_v18, %v410_v15 }
  0x38   : > { %5181 = vst [vmem:[#allocation14_spill] sm:$0xff] %v3812_v25  ;;  %v3819_v29 = vsel %vm569_vm1, %v523_v20, 0.0  ;;  %v472_v31 = vadd.f32 %v3635_v18, %v411_v17  ;;  %v352_v35 = vunpack.c.h.bf16 %v297_v61  ;;  %2921 = vrot.lane.b32.xlu0 %v3812_v25, %s3549_s24  ;;  %v353_v42 = vunpack.c.l.bf16 %v299_v22 }
  0x39   : > { %v716_v37 = vsel %vm678_vm2, %v714_v26, %v715_v27  ;;  %v717_v38 = vrot.slane %v3819_v29, 1  ;;  %v524_v41 = vmax.f32 %v470_v28, 0.0  ;;  %v3828_v44 = vmax.f32 %v471_v30, 0.0  ;;  %v303_v28 = vld [vmem:[%s3621_s29 + $0x84] sm:$0xff]  }
  0x3a   : > { %v526_v46 = vmax.f32 %v472_v31, 0.0  ;;  %v412_v49 = vmul.f32 %v3616_v6, %v351_v24  ;;  %v413_v51 = vmul.f32 %v3616_v6, %v352_v35  ;;  %v414_v60 = vmul.f32 %v3616_v6, %v353_v42 }
  0x3b   : > { %5182 = vst [vmem:[#allocation15_spill] sm:$0xff] %v3828_v44  ;;  %v718_v57 = vsel %vm678_vm2, %v715_v27, %v717_v38  ;;  %v3835_v59 = vsel %vm558_vm0, %v524_v41, 0.0  ;;  %v2762_v61 = vunpack.c.l.bf16 %v2780_v36  ;;  %v720_v14 = vrot.slane %v3828_v44, 1 }
  0x3c   : > { %5183 = vst [vmem:[#allocation16_spill] sm:$0xff] %v3835_v59  ;;  %v3839_v7 = vpack.i.bf16 %v718_v57, %v716_v37  ;;  %v3843_v8 = vsel %vm569_vm1, %v526_v46, 0.0  ;;  %v719_v9 = vrot.slane %v3835_v59, 1  ;;  %v473_v17 = vadd.f32 %v3635_v18, %v412_v49  ;;  %v305_v49 = vld [vmem:[%s3621_s29 + $0x8c] sm:$0x1] }
  0x3d   : > { %v722_v15 = vrot.slane %v3843_v8, 1  ;;  %v474_v19 = vadd.f32 %v3635_v18, %v413_v51  ;;  %v475_v20 = vadd.f32 %v3635_v18, %v414_v60  ;;  %v2763_v24 = vunpack.c.h.bf16 %v2780_v36 }
  0x3e   : > { %5184 = vst [vmem:[#allocation17_spill] sm:$0xff] %v3839_v7  ;;  %2926 = vrot.lane.b32.xlu1 %v3839_v7, %s3549_s24  ;;  %v721_v22 = vsel %vm678_vm2, %v719_v9, %v720_v14  ;;  %v356_v26 = vunpack.c.l.bf16 %v302_v62  ;;  %v415_v27 = vmul.f32 %v2762_v61, %v3616_v6  ;;  %v527_v31 = vmax.f32 %v473_v17, 0.0  ;;  %v2782_v7 = vld [vmem:[%s3621_s29 + $0xa8] sm:$0xff]  }
  0x3f   : > { %v723_v30 = vsel %vm678_vm2, %v720_v14, %v722_v15  ;;  %v3857_v35 = vmax.f32 %v474_v19, 0.0  ;;  %v529_v37 = vmax.f32 %v475_v20, 0.0  ;;  %v416_v41 = vmul.f32 %v2763_v24, %v3616_v6 }
  0x40   : > { %v3859_v38 = vpack.i.bf16 %v723_v30, %v721_v22  ;;  %v417_v42 = vmul.f32 %v3616_v6, %v356_v26  ;;  %v476_v46 = vadd.f32 %v3635_v18, %v415_v27  ;;  %v3867_v36 = vsel %vm558_vm0, %v527_v31, 0.0  ;;  %v2781_v30 = vld [vmem:[%s3621_s29 + $0x90] sm:$0xff]  }
  0x41   : > { %5185 = vst [vmem:[#allocation18_spill] sm:$0xff] %v3857_v35  ;;  %5187 = vst [vmem:[#allocation20_spill] sm:$0xff] %v3867_v36  ;;  %v3871_v51 = vsel %vm569_vm1, %v529_v37, 0.0  ;;  %v725_v57 = vrot.slane %v3857_v35, 1  ;;  %v357_v60 = vunpack.c.l.bf16 %v303_v28  ;;  %v724_v61 = vrot.slane %v3867_v36, 1 }
  0x42   : > { %5186 = vst [vmem:[#allocation19_spill] sm:$0xff] %v3859_v38  ;;  %2931 = vrot.lane.b32.xlu0 %v3859_v38, %s3549_s24  ;;  %v727_v62 = vrot.slane %v3871_v51, 1  ;;  %v477_v9 = vadd.f32 %v3635_v18, %v416_v41  ;;  %v478_v14 = vadd.f32 %v3635_v18, %v417_v42  ;;  %v530_v15 = vmax.f32 %v476_v46, 0.0  ;;  %v308_v42 = vld [vmem:[%s3621_s29 + $0x98] sm:$0x1] }
  0x43   : > { %v358_v17 = vunpack.c.h.bf16 %v303_v28  ;;  %v359_v19 = vunpack.c.l.bf16 %v305_v49  ;;  %v418_v20 = vmul.f32 %v3616_v6, %v357_v60  ;;  %v726_v22 = vsel %vm678_vm2, %v724_v61, %v725_v57 }
  0x44   : > { %v728_v24 = vsel %vm678_vm2, %v725_v57, %v727_v62  ;;  %v3883_v26 = vmax.f32 %v477_v9, 0.0  ;;  %v532_v27 = vmax.f32 %v478_v14, 0.0  ;;  %v3890_v37 = vsel %vm558_vm0, %v530_v15, 0.0 }
  0x45   : > { %v3886_v31 = vpack.i.bf16 %v728_v24, %v726_v22  ;;  %5190 = vst [vmem:[#allocation23_spill] sm:$0xff] %v3890_v37  ;;  %v419_v41 = vmul.f32 %v3616_v6, %v358_v17  ;;  %v420_v28 = vmul.f32 %v3616_v6, %v359_v19  ;;  %v729_v49 = vrot.slane %v3890_v37, 1 }
  0x46   : > { %5188 = vst [vmem:[#allocation21_spill] sm:$0xff] %v3883_v26  ;;  %v3897_v46 = vsel %vm569_vm1, %v532_v27, 0.0  ;;  %v730_v57 = vrot.slane %v3883_v26, 1  ;;  %v479_v60 = vadd.f32 %v3635_v18, %v418_v20  ;;  %v2766_v14 = vunpack.c.l.bf16 %v2781_v30 }
  0x47   : > { %5189 = vst [vmem:[#allocation22_spill] sm:$0xff] %v3886_v31  ;;  %2936 = vrot.lane.b32.xlu1 %v3886_v31, %s3549_s24  ;;  %v732_v61 = vrot.slane %v3897_v46, 1  ;;  %v480_v62 = vadd.f32 %v3635_v18, %v419_v41  ;;  %v481_v9 = vadd.f32 %v3635_v18, %v420_v28  ;;  %v2767_v19 = vunpack.c.h.bf16 %v2781_v30  ;;  %v311_v30 = vld [vmem:[%s3621_s29 + $0xa4] sm:$0x1] }
  0x48   : > { %v731_v15 = vsel %vm678_vm2, %v729_v49, %v730_v57  ;;  %v533_v17 = vmax.f32 %v479_v60, 0.0  ;;  %v362_v22 = vunpack.c.l.bf16 %v308_v42  ;;  %v421_v1 = vmul.f32 %v2766_v14, %v3616_v6 }
  0x49   : > { %v733_v24 = vsel %vm678_vm2, %v730_v57, %v732_v61  ;;  %v3909_v27 = vmax.f32 %v480_v62, 0.0  ;;  %v535_v20 = vmax.f32 %v481_v9, 0.0  ;;  %v422_v28 = vmul.f32 %v2767_v19, %v3616_v6 }
  0x4a   : > { %v3913_v31 = vpack.i.bf16 %v733_v24, %v731_v15  ;;  %v3917_v41 = vsel %vm558_vm0, %v533_v17, 0.0  ;;  %v423_v49 = vmul.f32 %v3616_v6, %v362_v22  ;;  %v482_v61 = vadd.f32 %v3635_v18, %v421_v1 }
  0x4b   : > { %5191 = vst [vmem:[#allocation24_spill] sm:$0xff] %v3909_v27  ;;  %5193 = vst [vmem:[#allocation26_spill] sm:$0xff] %v3917_v41  ;;  %v3924_v42 = vsel %vm569_vm1, %v535_v20, 0.0  ;;  %v734_v57 = vrot.slane %v3917_v41, 1  ;;  %v735_v60 = vrot.slane %v3909_v27, 1  ;;  %v483_v9 = vadd.f32 %v3635_v18, %v422_v28 }
  0x4c   : > { %5192 = vst [vmem:[#allocation25_spill] sm:$0xff] %v3913_v31  ;;  %2941 = vrot.lane.b32.xlu0 %v3913_v31, %s3549_s24  ;;  %v737_v62 = vrot.slane %v3924_v42, 1  ;;  %v484_v14 = vadd.f32 %v3635_v18, %v423_v49  ;;  %v363_v15 = vunpack.c.l.bf16 %v309_v4  ;;  %v536_v19 = vmax.f32 %v482_v61, 0.0 }
  0x4d   : > { %v736_v17 = vsel %vm678_vm2, %v734_v57, %v735_v60  ;;  %v364_v22 = vunpack.c.h.bf16 %v309_v4  ;;  %v365_v24 = vunpack.c.l.bf16 %v311_v30  ;;  %v3936_v38 = vmax.f32 %v483_v9, 0.0  ;;  %v314_v4 = vld [vmem:[%s3621_s29 + $0xb0] sm:$0x1] }
  0x4e   : > { %v738_v20 = vsel %vm678_vm2, %v735_v60, %v737_v62  ;;  %v538_v1 = vmax.f32 %v484_v14, 0.0  ;;  %v424_v31 = vmul.f32 %v3616_v6, %v363_v15  ;;  %v3944_v28 = vsel %vm558_vm0, %v536_v19, 0.0 }
  0x4f   : > { %5194 = vst [vmem:[#allocation27_spill] sm:$0xff] %v3936_v38  ;;  %v3940_v25 = vpack.i.bf16 %v738_v20, %v736_v17  ;;  %5196 = vst [vmem:[#allocation29_spill] sm:$0xff] %v3944_v28  ;;  %v425_v49 = vmul.f32 %v3616_v6, %v364_v22  ;;  %v426_v57 = vmul.f32 %v3616_v6, %v365_v24  ;;  %v739_v60 = vrot.slane %v3944_v28, 1 }
  0x50   : > { %v3951_v30 = vsel %vm569_vm1, %v538_v1, 0.0  ;;  %v740_v61 = vrot.slane %v3936_v38, 1  ;;  %v485_v62 = vadd.f32 %v3635_v18, %v424_v31  ;;  %v2770_v17 = vunpack.c.l.bf16 %v2782_v7 }
  0x51   : > { %5195 = vst [vmem:[#allocation28_spill] sm:$0xff] %v3940_v25  ;;  %2946 = vrot.lane.b32.xlu1 %v3940_v25, %s3549_s24  ;;  %v742_v9 = vrot.slane %v3951_v30, 1  ;;  %v486_v14 = vadd.f32 %v3635_v18, %v425_v49  ;;  %v487_v15 = vadd.f32 %v3635_v18, %v426_v57  ;;  %v2771_v24 = vunpack.c.h.bf16 %v2782_v7 }
  0x52   : > { %v741_v19 = vsel %vm678_vm2, %v739_v60, %v740_v61  ;;  %v539_v22 = vmax.f32 %v485_v62, 0.0  ;;  %v368_v20 = vunpack.c.l.bf16 %v314_v4  ;;  %v427_v25 = vmul.f32 %v2770_v17, %v3616_v6  ;;  %v317_v4 = vld [vmem:[%s3621_s29 + $0xbc] sm:$0x1] }
  0x53   : > { %v743_v1 = vsel %vm678_vm2, %v740_v61, %v742_v9  ;;  %v3963_v32 = vmax.f32 %v486_v14, 0.0  ;;  %v541_v31 = vmax.f32 %v487_v15, 0.0  ;;  %v428_v57 = vmul.f32 %v2771_v24, %v3616_v6 }
  0x54   : > { %v3967_v34 = vpack.i.bf16 %v743_v1, %v741_v19  ;;  %v3971_v49 = vsel %vm558_vm0, %v539_v22, 0.0  ;;  %v429_v7 = vmul.f32 %v3616_v6, %v368_v20  ;;  %v488_v9 = vadd.f32 %v3635_v18, %v427_v25 }
  0x55   : > { %5197 = vst [vmem:[#allocation30_spill] sm:$0xff] %v3963_v32  ;;  %5199 = vst [vmem:[#allocation32_spill] sm:$0xff] %v3971_v49  ;;  %v3978_v60 = vsel %vm569_vm1, %v541_v31, 0.0  ;;  %v744_v61 = vrot.slane %v3971_v49, 1  ;;  %v745_v62 = vrot.slane %v3963_v32, 1  ;;  %v489_v15 = vadd.f32 %v3635_v18, %v428_v57 }
  0x56   : > { %5198 = vst [vmem:[#allocation31_spill] sm:$0xff] %v3967_v34  ;;  %2951 = vrot.lane.b32.xlu0 %v3967_v34, %s3549_s24  ;;  %v747_v14 = vrot.slane %v3978_v60, 1  ;;  %v490_v17 = vadd.f32 %v3635_v18, %v429_v7  ;;  %v369_v19 = vunpack.c.l.bf16 %v315_v23  ;;  %v542_v24 = vmax.f32 %v488_v9, 0.0 }
  0x57   : > { %v746_v22 = vsel %vm678_vm2, %v744_v61, %v745_v62  ;;  %v370_v20 = vunpack.c.h.bf16 %v315_v23  ;;  %v371_v1 = vunpack.c.l.bf16 %v317_v4  ;;  %v3990_v11 = vmax.f32 %v489_v15, 0.0 }
  0x58   : > { %v748_v31 = vsel %vm678_vm2, %v745_v62, %v747_v14  ;;  %v544_v25 = vmax.f32 %v490_v17, 0.0  ;;  %v430_v2 = vmul.f32 %v3616_v6, %v369_v19  ;;  %v3997_v57 = vsel %vm558_vm0, %v542_v24, 0.0 }
  0x59   : > { %v3993_v34 = vpack.i.bf16 %v748_v31, %v746_v22  ;;  %v431_v7 = vmul.f32 %v3616_v6, %v370_v20  ;;  %v432_v61 = vmul.f32 %v3616_v6, %v371_v1  ;;  %v749_v4 = vrot.slane %v3997_v57, 1 }
  0x5a   : > { %v4003_v23 = vsel %vm569_vm1, %v544_v25, 0.0  ;;  %v750_v62 = vrot.slane %v3990_v11, 1  ;;  %v491_v9 = vadd.f32 %v3635_v18, %v430_v2  ;;  %v861_v6 = vrot.slane %v3669_v50, 2 }
  0x5b   : > { %5200 = vst [vmem:[#allocation33_spill] sm:$0xff] %v3993_v34  ;;  %2956 = vrot.lane.b32.xlu1 %v3993_v34, %s3549_s24  ;;  %v752_v14 = vrot.slane %v4003_v23, 1  ;;  %v492_v15 = vadd.f32 %v3635_v18, %v431_v7  ;;  %v493_v17 = vadd.f32 %v3635_v18, %v432_v61  ;;  %v862_v24 = vrot.slane %v3654_v43, 2 }
  0x5c   : > { %v751_v19 = vsel %vm678_vm2, %v749_v4, %v750_v62  ;;  %v545_v22 = vmax.f32 %v491_v9, 0.0  ;;  %v864_v20 = vrot.slane %v3675_v53, 2  ;;  %v869_v2 = vrot.slane %v3664_v48, 2 }
  0x5d   : > { %v753_v1 = vsel %vm678_vm2, %v750_v62, %v752_v14  ;;  %v4019_v31 = vmax.f32 %v492_v15, 0.0  ;;  %v547_v25 = vmax.f32 %v493_v17, 0.0  ;;  %v863_v7 = vsel %vm855_vm3, %v861_v6, %v862_v24 }
  0x5e   : > { %v4021_v34 = vpack.i.bf16 %v753_v1, %v751_v19  ;;  %v4025_v18 = vsel %vm558_vm0, %v545_v22, 0.0  ;;  %v866_v61 = vrot.slane %v3660_v47, 2  ;;  %v865_v62 = vsel %vm855_vm3, %v862_v24, %v864_v20 }
  0x5f   : > { %v4031_v53 = vsel %vm569_vm1, %v547_v25, 0.0  ;;  %v754_v48 = vrot.slane %v4025_v18, 1  ;;  %v755_v4 = vrot.slane %v4019_v31, 1  ;;  %v867_v14 = vrot.slane %v3652_v40, 2 }
  0x60   : > { %5201 = vst [vmem:[#allocation34_spill] sm:$0xff] %v4021_v34  ;;  %2961 = vrot.lane.b32.xlu0 %v4021_v34, %s3549_s24  ;;  %v757_v9 = vrot.slane %v4031_v53, 1  ;;  %v871_v15 = vrot.slane %v3698_v12, 2  ;;  %v872_v17 = vrot.slane %v3686_v63, 2  ;;  %v874_v19 = vrot.slane %v3706_v16, 2 }
  0x61   : > { %v756_v6 = vsel %vm678_vm2, %v754_v48, %v755_v4  ;;  %v876_v22 = vrot.slane %v3736_v52, 2  ;;  %v877_v1 = vrot.slane %v3731_v45, 2  ;;  %v4047_v20 = vpack.i.bf16 %v865_v62, %v863_v7 }
  0x62   : > { %v758_v24 = vsel %vm678_vm2, %v755_v4, %v757_v9  ;;  %v868_v25 = vsel %vm855_vm3, %v866_v61, %v867_v14  ;;  %v870_v5 = vsel %vm855_vm3, %v867_v14, %v869_v2  ;;  %v873_v48 = vsel %vm855_vm3, %v871_v15, %v872_v17 }
  0x63   : > { %v4051_v34 = vpack.i.bf16 %v758_v24, %v756_v6  ;;  %v4053_v3 = vpack.i.bf16 %v870_v5, %v868_v25  ;;  %v875_v16 = vsel %vm855_vm3, %v872_v17, %v874_v19  ;;  %v878_v4 = vsel %vm855_vm3, %v876_v22, %v877_v1 }
  0x64   : > { %2971 = vrot.lane.b32.xlu0 %v3677_v54, %s3550_s8  ;;  %v879_v7 = vrot.slane %v3742_v58, 2  ;;  %v881_v61 = vrot.slane %v3749_v0, 2  ;;  %v882_v2 = vrot.slane %v3738_v56, 2  ;;  %v884_v5 = vrot.slane %v3757_v13, 2 }
  0x65   : > { %2966 = vrot.lane.b32.xlu1 %v4051_v34, %s3549_s24  ;;  %v886_v62 = vrot.slane %v3783_v39, 2  ;;  %v887_v9 = vrot.slane %v3777_v33, 2  ;;  %v889_v14 = vrot.slane %v3794_v55, 2  ;;  %v4070_v17 = vpack.i.bf16 %v875_v16, %v873_v48  ;;  %s3552_s24 = smov 32  }
  0x66   : > { %v880_v15 = vsel %vm855_vm3, %v877_v1, %v879_v7  ;;  %v883_v58 = vsel %vm855_vm3, %v881_v61, %v882_v2  ;;  %v891_v6 = vrot.slane %v3809_v21, 2  ;;  %v885_v13 = vsel %vm855_vm3, %v882_v2, %v884_v5 }
  0x67   : > { %v4076_v19 = vpack.i.bf16 %v880_v15, %v878_v4  ;;  %v888_v22 = vsel %vm855_vm3, %v886_v62, %v887_v9  ;;  %v892_v24 = vrot.slane %v3801_v10, 2  ;;  %v890_v55 = vsel %vm855_vm3, %v887_v9, %v889_v14 }
  0x68   : > { %2981 = vrot.lane.b32.xlu0 %v4053_v3, %s3550_s8  ;;  %v896_v1 = vrot.slane %v3835_v59, 2  ;;  %v897_v25 = vrot.slane %v3828_v44, 2  ;;  %v899_v48 = vrot.slane %v3843_v8, 2  ;;  %v894_v16 = vrot.slane %v3819_v29, 2 }
  0x69   : > { %2976 = vrot.lane.b32.xlu1 %v4047_v20, %s3550_s8  ;;  %v901_v4 = vrot.slane %v3867_v36, 2  ;;  %v902_v7 = vrot.slane %v3857_v35, 2  ;;  %v904_v61 = vrot.slane %v3871_v51, 2  ;;  %v906_v62 = vrot.slane %v3890_v37, 2 }
  0x6a   : > { %v898_v2 = vsel %vm855_vm3, %v896_v1, %v897_v25  ;;  %v900_v5 = vsel %vm855_vm3, %v897_v25, %v899_v48  ;;  %v907_v9 = vrot.slane %v3883_v26, 2  ;;  %v4097_v8 = vpack.i.bf16 %v890_v55, %v888_v22 }
  0x6b   : > { %v909_v29 = vrot.slane %v3897_v46, 2  ;;  %v4102_v14 = vpack.i.bf16 %v885_v13, %v883_v58  ;;  %v893_v51 = vsel %vm855_vm3, %v891_v6, %v892_v24  ;;  %v895_v15 = vsel %vm855_vm3, %v892_v24, %v894_v16 }
  0x6c   : > { %2991 = vrot.lane.b32.xlu0 %v4076_v19, %s3550_s8  ;;  %v4106_v1 = vpack.i.bf16 %v900_v5, %v898_v2  ;;  %v903_v25 = vsel %vm855_vm3, %v901_v4, %v902_v7  ;;  %v905_v48 = vsel %vm855_vm3, %v902_v7, %v904_v61  ;;  %v908_v22 = vsel %vm855_vm3, %v906_v62, %v907_v9 }
  0x6d   : > { %2986 = vrot.lane.b32.xlu1 %v4070_v17, %s3550_s8  ;;  %v911_v55 = vrot.slane %v3917_v41, 2  ;;  %v912_v46 = vrot.slane %v3909_v27, 2  ;;  %v910_v58 = vsel %vm855_vm3, %v907_v9, %v909_v29  ;;  %v914_v6 = vrot.slane %v3924_v42, 2 }
  0x6e   : > { %v916_v13 = vrot.slane %v3944_v28, 2  ;;  %v917_v24 = vrot.slane %v3936_v38, 2  ;;  %v4121_v16 = vpack.i.bf16 %v895_v15, %v893_v51  ;;  %v919_v4 = vrot.slane %v3951_v30, 2 }
  0x6f   : > { %v4124_v7 = vpack.i.bf16 %v905_v48, %v903_v25  ;;  %v4126_v61 = vpack.i.bf16 %v910_v58, %v908_v22  ;;  %v913_v2 = vsel %vm855_vm3, %v911_v55, %v912_v46  ;;  %v921_v5 = vrot.slane %v3971_v49, 2 }
  0x70   : > { %3001 = vrot.lane.b32.xlu0 %v4097_v8, %s3550_s8  ;;  %v915_v42 = vsel %vm855_vm3, %v912_v46, %v914_v6  ;;  %v918_v62 = vsel %vm855_vm3, %v916_v13, %v917_v24  ;;  %v922_v9 = vrot.slane %v3963_v32, 2  ;;  %v924_v29 = vrot.slane %v3978_v60, 2 }
  0x71   : > { %2996 = vrot.lane.b32.xlu1 %v4102_v14, %s3550_s8  ;;  %v920_v30 = vsel %vm855_vm3, %v917_v24, %v919_v4  ;;  %v926_v51 = vrot.slane %v3997_v57, 2  ;;  %v927_v15 = vrot.slane %v3990_v11, 2  ;;  %v929_v25 = vrot.slane %v4003_v23, 2  ;;  %v3530_v4 = vld [vmem:[%s5104_s3] sm:$0xff]  }
  0x72   : > { %v4144_v48 = vpack.i.bf16 %v915_v42, %v913_v2  ;;  %v4146_v22 = vpack.i.bf16 %v920_v30, %v918_v62  ;;  %v923_v60 = vsel %vm855_vm3, %v921_v5, %v922_v9  ;;  %v925_v55 = vsel %vm855_vm3, %v922_v9, %v924_v29  ;;  %2808 = vmatprep.subr.bf16.mxu0 %v3530_v4  ;;  %v3531_v62 = vld [vmem:[%s5104_s3 + $0x8] sm:$0xff]   ;;  %v3532_v30 = vld [vmem:[%s5104_s3 + $0x10] sm:$0xff]  }
  0x73   : > { %v928_v46 = vsel %vm855_vm3, %v926_v51, %v927_v15  ;;  %v930_v58 = vsel %vm855_vm3, %v927_v15, %v929_v25  ;;  %v931_v23 = vrot.slane %v4025_v18, 2  ;;  %v932_v6 = vrot.slane %v4019_v31, 2  ;;  %2809 = vmatpush3.bf16.msra.mxu0 %v3530_v4  ;;  %2856 = vmatprep.subr.bf16.mxu1 %v3530_v4  ;;  %v3533_v25 = vld [vmem:[%s5104_s3 + $0x18] sm:$0xff]  }
  0x74   : > { %3011 = vrot.lane.b32.xlu0 %v4106_v1, %s3550_s8  ;;  %v934_v13 = vrot.slane %v4031_v53, 2  ;;  %v4159_v24 = vpack.i.bf16 %v930_v58, %v928_v46  ;;  %v4166_v2 = vpack.i.bf16 %v925_v55, %v923_v60  ;;  %v3050_v53 = vpack.i.bf16 %v3654_v43, %v3669_v50  ;;  %2810 = vmatprep.subr.bf16.mxu0 %v3531_v62  ;;  %v3534_v46 = vld [vmem:[%s5104_s3 + $0x20] sm:$0xff]  }
  0x75   : > { %3006 = vrot.lane.b32.xlu1 %v4121_v16, %s3550_s8  ;;  %v933_v5 = vsel %vm855_vm3, %v931_v23, %v932_v6  ;;  %v3060_v29 = vpack.i.bf16 %v3686_v63, %v3698_v12  ;;  %2864 = vmatpush3.bf16.msra.mxu1 %v3530_v4  ;;  %v3055_v51 = vpack.i.bf16 %v3652_v40, %v3660_v47  ;;  %v3535_v23 = vld [vmem:[%s5104_s3 + $0x28] sm:$0xff]   ;;  %v5203_v4 = vld [vmem:[#allocation6_spill] sm:$0xff]  ;;  %vm2402_vm15 = vcmask 57344  }
  0x76   : > { %v935_v42 = vsel %vm855_vm3, %v932_v6, %v934_v13  ;;  %2857 = vmatprep.subr.bf16.mxu1 %v3531_v62  ;;  %v3070_v15 = vpack.i.bf16 %v3738_v56, %v3749_v0  ;;  %v3065_v60 = vpack.i.bf16 %v3731_v45, %v3736_v52  ;;  %v4203_v55 = vpack.i.bf16 %v3801_v10, %v3809_v21  ;;  %v5202_v6 = vld [vmem:[#allocation5_spill] sm:$0xff]  ;;  %v3536_v13 = vld [vmem:[%s5104_s3 + $0x30] sm:$0xff]  }
  0x77   : > { %v4179_v9 = vpack.i.bf16 %v935_v42, %v933_v5  ;;  %2811 = vmatpush3.bf16.msra.mxu0 %v3531_v62  ;;  %v3075_v58 = vpack.i.bf16 %v3777_v33, %v3783_v39  ;;  %v3537_v5 = vld [vmem:[%s5104_s3 + $0x38] sm:$0xff]   ;;  %v5204_v42 = vld [vmem:[#allocation7_spill] sm:$0xff] }
  0x78   : > { %3021 = vrot.lane.b32.xlu0 %v4126_v61, %s3550_s8  ;;  %2812 = vmatprep.subr.bf16.mxu0 %v3532_v30 }
  0x79   : > { %3016 = vrot.lane.b32.xlu1 %v4124_v7, %s3550_s8  ;;  %2865 = vmatpush3.bf16.msra.mxu1 %v3531_v62 }
  0x7a   : > { %2858 = vmatprep.subr.bf16.mxu1 %v3532_v30 }
  0x7b   : > { %2813 = vmatpush3.bf16.msra.mxu0 %v3532_v30 }
  0x7c   : > { %3031 = vrot.lane.b32.xlu0 %v4146_v22, %s3550_s8  ;;  %2814 = vmatprep.subr.bf16.mxu0 %v3533_v25 }
  0x7d   : > { %3026 = vrot.lane.b32.xlu1 %v4144_v48, %s3550_s8  ;;  %2866 = vmatpush3.bf16.msra.mxu1 %v3532_v30  ;;  %v5206_v30 = vld [vmem:[#allocation9_spill] sm:$0xff] }
  0x7e   : > { %2859 = vmatprep.subr.bf16.mxu1 %v3533_v25 }
  0x7f   : > { %2815 = vmatpush3.bf16.msra.mxu0 %v3533_v25 }
  0x80   : > { %3041 = vrot.lane.b32.xlu0 %v4159_v24, %s3550_s8  ;;  %2816 = vmatprep.subr.bf16.mxu0 %v3534_v46 }
  0x81   : > { %3036 = vrot.lane.b32.xlu1 %v4166_v2, %s3550_s8  ;;  %2867 = vmatpush3.bf16.msra.mxu1 %v3533_v25  ;;  %v5207_v25 = vld [vmem:[#allocation14_spill] sm:$0xff] }
  0x82   : > { %2860 = vmatprep.subr.bf16.mxu1 %v3534_v46 }
  0x83   : > { %2817 = vmatpush3.bf16.msra.mxu0 %v3534_v46 }
  0x84   : > { %3051 = vrot.lane.b32.xlu0 %v3050_v53, %s3551_s13  ;;  %2818 = vmatprep.subr.bf16.mxu0 %v3535_v23  ;;  %v4243_v53 = vpop.permute.xlu0 %2891 }
  0x85   : > { %3046 = vrot.lane.b32.xlu1 %v4179_v9, %s3550_s8  ;;  %2868 = vmatpush3.bf16.msra.mxu1 %v3534_v46  ;;  %s3555_s8 = smov 56  }
  0x86   : > { %2861 = vmatprep.subr.bf16.mxu1 %v3535_v23 }
  0x87   : > { %2819 = vmatpush3.bf16.msra.mxu0 %v3535_v23 }
  0x88   : > { %3061 = vrot.lane.b32.xlu0 %v3060_v29, %s3551_s13  ;;  %2820 = vmatprep.subr.bf16.mxu0 %v3536_v13 }
  0x89   : > { %3056 = vrot.lane.b32.xlu1 %v3055_v51, %s3551_s13  ;;  %2869 = vmatpush3.bf16.msra.mxu1 %v3535_v23 }
  0x8a   : > { %2862 = vmatprep.subr.bf16.mxu1 %v3536_v13 }
  0x8b   : > { %2821 = vmatpush3.bf16.msra.mxu0 %v3536_v13 }
  0x8c   : > { %3071 = vrot.lane.b32.xlu0 %v3070_v15, %s3551_s13  ;;  %2822 = vmatprep.subr.bf16.mxu0 %v3537_v5 }
  0x8d   : > { %3066 = vrot.lane.b32.xlu1 %v3065_v60, %s3551_s13  ;;  %2870 = vmatpush3.bf16.msra.mxu1 %v3536_v13 }
  0x8e   : > { %2863 = vmatprep.subr.bf16.mxu1 %v3537_v5 }
  0x8f   : > { %2823 = vmatpush3.bf16.msra.mxu0 %v3537_v5 }
  0x90   : > { %3081 = vrot.lane.b32.xlu0 %v4203_v55, %s3551_s13 }
  0x91   : > { %3076 = vrot.lane.b32.xlu1 %v3075_v58, %s3551_s13  ;;  %2871 = vmatpush3.bf16.msra.mxu1 %v3537_v5  ;;  %v5215_v5 = vld [vmem:[#allocation19_spill] sm:$0xff] }
  0x94   : > { %3091 = vrot.lane.b32.xlu0 %v5202_v6, %s3552_s24  ;;  %v4251_v62 = vpop.permute.xlu1 %2901 }
  0x95   : > { %3086 = vrot.lane.b32.xlu1 %v5203_v4, %s3552_s24 }
  0x98   : > { %3101 = vrot.lane.b32.xlu0 %v4053_v3, %s3553_s27 }
  0x99   : > { %3096 = vrot.lane.b32.xlu1 %v4047_v20, %s3553_s27  ;;  %v5205_v20 = vld [vmem:[#allocation8_spill] sm:$0xff] }
  0x9c   : > { %3111 = vrot.lane.b32.xlu0 %v3060_v29, %s3554_s7  ;;  %v4253_v29 = vpop.permute.xlu0 %2896 }
  0x9d   : > { %3106 = vrot.lane.b32.xlu1 %v3055_v51, %s3554_s7  ;;  %v2899_v21 = vunpack.i.h.bf16 %v4253_v29 }
  0xa0   : > { %3121 = vrot.lane.b32.xlu0 %v5204_v42, %s3555_s8 }
  0xa1   : > { %3116 = vrot.lane.b32.xlu1 %v5202_v6, %s3555_s8  ;;  %v5211_v6 = vld [vmem:[#allocation17_spill] sm:$0xff] }
  0xa2   : > { %v4261_v51 = vpop.permute.xlu0 %2911 }
  0xa4   : > { %3131 = vrot.lane.b32.xlu0 %v4070_v17, %s3556_s9 }
  0xa5   : > { %3126 = vrot.lane.b32.xlu1 %v4053_v3, %s3556_s9  ;;  %v4257_v3 = vpop.permute.xlu1 %2906 }
  0xa8   : > { %3141 = vrot.lane.b32.xlu0 %v5205_v20, %s3552_s24 }
  0xa9   : > { %3136 = vrot.lane.b32.xlu1 %v5204_v42, %s3552_s24 }
  0xac   : > { %3151 = vrot.lane.b32.xlu0 %v4076_v19, %s3553_s27 }
  0xad   : > { %3146 = vrot.lane.b32.xlu1 %v4070_v17, %s3553_s27  ;;  %v4269_v17 = vpop.permute.xlu1 %2916 }
  0xb0   : > { %3161 = vrot.lane.b32.xlu0 %v3070_v15, %s3554_s7  ;;  %v4271_v15 = vpop.permute.xlu0 %2921 }
  0xb1   : > { %3156 = vrot.lane.b32.xlu1 %v3065_v60, %s3554_s7  ;;  %v4277_v60 = vpop.permute.xlu1 %2926 }
  0xb4   : > { %3171 = vrot.lane.b32.xlu0 %v5206_v30, %s3555_s8  ;;  %v4281_v46 = vpop.permute.xlu0 %2931 }
  0xb5   : > { %3166 = vrot.lane.b32.xlu1 %v5205_v20, %s3555_s8  ;;  %5208 = vst [vmem:[#allocation5_spill] sm:$0xff] %v4281_v46  ;;  %v3265_v20 = vpack.i.bf16 %v3857_v35, %v3867_v36 }
  0xb8   : > { %3181 = vrot.lane.b32.xlu0 %v4102_v14, %s3556_s9 }
  0xb9   : > { %3176 = vrot.lane.b32.xlu1 %v4076_v19, %s3556_s9  ;;  %v4288_v19 = vpop.permute.xlu1 %2936 }
  0xba   : > { %5209 = vst [vmem:[#allocation6_spill] sm:$0xff] %v4288_v19 }
  0xbc   : > { %3191 = vrot.lane.b32.xlu0 %v5207_v25, %s3552_s24 }
  0xbd   : > { %3186 = vrot.lane.b32.xlu1 %v5206_v30, %s3552_s24 }
  0xbe   : > { %v4290_v23 = vpop.permute.xlu0 %2941 }
  0xbf   : > { %5210 = vst [vmem:[#allocation7_spill] sm:$0xff] %v4290_v23 }
  0xc0   : > { %3201 = vrot.lane.b32.xlu0 %v4097_v8, %s3553_s27 }
  0xc1   : > { %3196 = vrot.lane.b32.xlu1 %v4102_v14, %s3553_s27 }
  0xc3   : > { %v4296_v13 = vpop.permute.xlu1 %2946 }
  0xc4   : > { %3211 = vrot.lane.b32.xlu0 %v4203_v55, %s3554_s7  ;;  %5212 = vst [vmem:[#allocation8_spill] sm:$0xff] %v4296_v13  ;;  %v3235_v55 = vpack.i.bf16 %v3828_v44, %v3835_v59 }
  0xc5   : > { %3206 = vrot.lane.b32.xlu1 %v3075_v58, %s3554_s7 }
  0xc8   : > { %3221 = vrot.lane.b32.xlu0 %v5211_v6, %s3555_s8  ;;  %v4300_v14 = vpop.permute.xlu0 %2951 }
  0xc9   : > { %3216 = vrot.lane.b32.xlu1 %v5207_v25, %s3555_s8  ;;  %5213 = vst [vmem:[#allocation9_spill] sm:$0xff] %v4300_v14 }
  0xcc   : > { %3231 = vrot.lane.b32.xlu0 %v4121_v16, %s3556_s9 }
  0xcd   : > { %3226 = vrot.lane.b32.xlu1 %v4097_v8, %s3556_s9  ;;  %v4309_v58 = vpop.permute.xlu1 %2956 }
  0xce   : > { %5214 = vst [vmem:[#allocation14_spill] sm:$0xff] %v4309_v58 }
  0xd0   : > { %3241 = vrot.lane.b32.xlu0 %v5211_v6, %s3552_s24 }
  0xd1   : > { %3236 = vrot.lane.b32.xlu1 %v3235_v55, %s3551_s13 }
  0xd2   : > { %v2962_v4 = vpop.permute.xlu0 %2961 }
  0xd3   : > { %v2964_v35 = vunpack.i.h.bf16 %v2962_v4  ;;  %v2963_v59 = vunpack.i.l.bf16 %v2962_v4 }
  0xd4   : > { %3251 = vrot.lane.b32.xlu0 %v4121_v16, %s3553_s27 }
  0xd5   : > { %3246 = vrot.lane.b32.xlu1 %v5215_v5, %s3552_s24  ;;  %v1663_v4 = vsel %vm1634_vm4, %v3997_v57, %v2963_v59 }
  0xd6   : > { %v4315_v42 = vpop.permute.xlu0 %2971 }
  0xd7   : > { %v2967_v8 = vpop.permute.xlu1 %2966 }
  0xd8   : > { %3261 = vrot.lane.b32.xlu0 %v3235_v55, %s3554_s7  ;;  %v5216_v55 = vld [vmem:[#allocation22_spill] sm:$0xff] }
  0xd9   : > { %3256 = vrot.lane.b32.xlu1 %v4106_v1, %s3553_s27 }
  0xda   : > { %v4322_v30 = vpop.permute.xlu0 %2981 }
  0xdb   : > { %v4324_v25 = vpop.permute.xlu1 %2976 }
  0xdc   : > { %3271 = vrot.lane.b32.xlu0 %v5215_v5, %s3555_s8  ;;  %v3295_v5 = vpack.i.bf16 %v3883_v26, %v3890_v37  ;;  %v2979_v39 = vunpack.i.h.bf16 %v4324_v25 }
  0xdd   : > { %3266 = vrot.lane.b32.xlu1 %v3265_v20, %s3554_s7 }
  0xde   : > { %v4329_v16 = vpop.permute.xlu0 %2991 }
  0xdf   : > { %v4331_v6 = vpop.permute.xlu1 %2986 }
  0xe0   : > { %3281 = vrot.lane.b32.xlu0 %v4106_v1, %s3556_s9 }
  0xe1   : > { %3276 = vrot.lane.b32.xlu1 %v5216_v55, %s3555_s8 }
  0xe2   : > { %v4337_v58 = vpop.permute.xlu0 %3001 }
  0xe3   : > { %v4339_v14 = vpop.permute.xlu1 %2996 }
  0xe4   : > { %3291 = vrot.lane.b32.xlu0 %v3265_v20, %s3551_s13  ;;  %v5221_v20 = vld [vmem:[#allocation25_spill] sm:$0xff] }
  0xe5   : > { %3286 = vrot.lane.b32.xlu1 %v4124_v7, %s3556_s9 }
  0xe6   : > { %v4346_v13 = vpop.permute.xlu0 %3011 }
  0xe7   : > { %5217 = vst [vmem:[#allocation17_spill] sm:$0xff] %v4346_v13  ;;  %v4348_v23 = vpop.permute.xlu1 %3006 }
  0xe8   : > { %5218 = vst [vmem:[#allocation19_spill] sm:$0xff] %v4348_v23  ;;  %3301 = vrot.lane.b32.xlu0 %v5216_v55, %s3552_s24  ;;  %v3325_v55 = vpack.i.bf16 %v3909_v27, %v3917_v41 }
  0xe9   : > { %3296 = vrot.lane.b32.xlu1 %v3295_v5, %s3551_s13 }
  0xea   : > { %v4353_v1 = vpop.permute.xlu0 %3021 }
  0xeb   : > { %5219 = vst [vmem:[#allocation22_spill] sm:$0xff] %v4353_v1  ;;  %v4355_v36 = vpop.permute.xlu1 %3016 }
  0xec   : > { %5220 = vst [vmem:[#allocation35_spill] sm:$0xff] %v4355_v36  ;;  %3311 = vrot.lane.b32.xlu0 %v4124_v7, %s3553_s27 }
  0xed   : > { %3306 = vrot.lane.b32.xlu1 %v5221_v20, %s3552_s24 }
  0xee   : > { %v4361_v37 = vpop.permute.xlu0 %3031 }
  0xef   : > { %5222 = vst [vmem:[#allocation25_spill] sm:$0xff] %v4361_v37  ;;  %v4363_v26 = vpop.permute.xlu1 %3026  ;;  %v1664_v37 = vsel %vm1634_vm4, %v3990_v11, %v2964_v35 }
  0xf0   : > { %5223 = vst [vmem:[#allocation36_spill] sm:$0xff] %v4363_v26  ;;  %3321 = vrot.lane.b32.xlu0 %v3295_v5, %s3554_s7  ;;  %v2969_v5 = vunpack.i.h.bf16 %v2967_v8  ;;  %v2968_v26 = vunpack.i.l.bf16 %v2967_v8 }
  0xf1   : > { %3316 = vrot.lane.b32.xlu1 %v4126_v61, %s3553_s27 }
  0xf2   : > { %v3042_v1 = vpop.permute.xlu0 %3041  ;;  %v1666_v8 = vsel %vm1634_vm4, %v4019_v31, %v2969_v5 }
  0xf3   : > { %v4370_v7 = vpop.permute.xlu1 %3036  ;;  %v3044_v44 = vunpack.i.h.bf16 %v3042_v1  ;;  %v3043_v36 = vunpack.i.l.bf16 %v3042_v1 }
  0xf4   : > { %5224 = vst [vmem:[#allocation37_spill] sm:$0xff] %v4370_v7  ;;  %3331 = vrot.lane.b32.xlu0 %v5221_v20, %s3555_s8  ;;  %v5227_v20 = vld [vmem:[#allocation28_spill] sm:$0xff] }
  0xf5   : > { %v4379_v41 = vsel %vm1667_vm5, %v1663_v4, %v3043_v36  ;;  %v4382_v7 = vsel %vm1667_vm5, %v1664_v37, %v3044_v44  ;;  %3326 = vrot.lane.b32.xlu1 %v3325_v55, %s3554_s7  ;;  %v1665_v36 = vsel %vm1634_vm4, %v4025_v18, %v2968_v26  ;;  %v3355_v26 = vpack.i.bf16 %v3936_v38, %v3944_v28 }
  0xf6   : > { %5225 = vst [vmem:[#allocation38_spill] sm:$0xff] %v4379_v41  ;;  %5226 = vst [vmem:[#allocation39_spill] sm:$0xff] %v4382_v7  ;;  %v4385_v1 = vpop.permute.xlu0 %3051  ;;  %v2894_v7 = vunpack.i.h.bf16 %v4243_v53  ;;  %v2893_v28 = vunpack.i.l.bf16 %v4243_v53  ;;  %v2898_v53 = vunpack.i.l.bf16 %v4253_v29  ;;  %v4454_v29 = vpack.i.bf16 %v3990_v11, %v3997_v57 }
  0xf7   : > { %v3047_v35 = vpop.permute.xlu1 %3046  ;;  %v2978_v11 = vunpack.i.l.bf16 %v4324_v25 }
  0xf8   : > { %v3049_v27 = vunpack.i.h.bf16 %v3047_v35  ;;  %v3048_v59 = vunpack.i.l.bf16 %v3047_v35  ;;  %3341 = vrot.lane.b32.xlu0 %v4126_v61, %s3556_s9  ;;  %v2783_v61 = vld [vmem:[%s3621_s29 + $0xc0] sm:$0xff]   ;;  %v1636_v46 = vsel %vm1634_vm4, 0.0, %v2894_v7  ;;  %v1635_v10 = vsel %vm1634_vm4, 0.0, %v2893_v28 }
  0xf9   : > { %3336 = vrot.lane.b32.xlu1 %v5227_v20, %s3555_s8  ;;  %v2974_v28 = vunpack.i.h.bf16 %v4315_v42  ;;  %v1637_v7 = vsel %vm1634_vm4, %v3669_v50, %v2898_v53 }
  0xfa   : > { %v4396_v44 = vsel %vm1667_vm5, %v1666_v8, %v3049_v27  ;;  %v4399_v37 = vsel %vm1667_vm5, %v1665_v36, %v3048_v59  ;;  %v4401_v4 = vpop.permute.xlu0 %3061  ;;  %v2774_v27 = vunpack.c.l.bf16 %v2783_v61  ;;  %v2775_v36 = vunpack.c.h.bf16 %v2783_v61 }
  0xfb   : > { %5228 = vst [vmem:[#allocation28_spill] sm:$0xff] %v4396_v44  ;;  %5229 = vst [vmem:[#allocation40_spill] sm:$0xff] %v4399_v37  ;;  %v4403_v35 = vpop.permute.xlu1 %3056  ;;  %v320_v44 = vld [vmem:[%s3621_s29 + $0xc8] sm:$0x1]  ;;  %s2711_s29 = sshll.u32 %s5279_s22, 7 }
  0xfc   : > { %3351 = vrot.lane.b32.xlu0 %v3325_v55, %s3551_s13  ;;  %v3538_v55 = vld [vmem:[%s5102_s1] ss:$0 sm:$0xff]  ;;  %v374_v38 = vunpack.c.l.bf16 %v320_v44  ;;  %v4446_v44 = vpack.i.bf16 %v3963_v32, %v3971_v49  ;;  %v3058_v50 = vunpack.i.l.bf16 %v4403_v35  ;;  %s4960_s16 = scalar_lea.vmem %s5105_s4, %s2711_s29 }
  0xfd   : > { %3346 = vrot.lane.b32.xlu1 %v4144_v48, %s3556_s9  ;;  %v433_v37 = vmul.f32 %v3538_v55, %v2774_v27  ;;  %v434_v13 = vmul.f32 %v3538_v55, %v2775_v36  ;;  %v3539_v27 = vld [vmem:[%s5103_s2] ss:$0 sm:$0xff] }
  0xfe   : > { %v4411_v5 = vpop.permute.xlu0 %3071  ;;  %v435_v36 = vmul.f32 %v3538_v55, %v374_v38  ;;  %v3054_v55 = vunpack.i.h.bf16 %v4385_v1 }
  0xff   : > { %v4413_v8 = vpop.permute.xlu1 %3066  ;;  %v494_v19 = vadd.f32 %v3539_v27, %v433_v37  ;;  %v495_v49 = vadd.f32 %v3539_v27, %v434_v13  ;;  %v1638_v37 = vsel %vm1634_vm4, %v3654_v43, %v2899_v21  ;;  %v3059_v43 = vunpack.i.h.bf16 %v4403_v35 }
 0x100   : > { %3361 = vrot.lane.b32.xlu0 %v5227_v20, %s3552_s24  ;;  %v5231_v20 = vld [vmem:[#allocation31_spill] sm:$0xff]  ;;  %v4474_v21 = vadd.f32 %v3539_v27, %v435_v36  ;;  %v1669_v13 = vsel %vm1667_vm5, %v1636_v46, %v2974_v28  ;;  %v1670_v35 = vsel %vm1667_vm5, %v1637_v7, %v2978_v11  ;;  %v1671_v38 = vsel %vm1667_vm5, %v1638_v37, %v2979_v39 }
 0x101   : > { %3356 = vrot.lane.b32.xlu1 %v3355_v26, %s3551_s13  ;;  %v548_v32 = vmax.f32 %v494_v19, 0.0  ;;  %v3053_v19 = vunpack.i.l.bf16 %v4385_v1  ;;  %v4478_v1 = vmax.f32 %v495_v49, 0.0  ;;  %v1702_v46 = vsel %vm1700_vm6, %v1669_v13, %v3054_v55 }
 0x102   : > { %v4418_v59 = vpop.permute.xlu0 %3081  ;;  %v1704_v39 = vsel %vm1700_vm6, %v1671_v38, %v3059_v43 }
 0x103   : > { %5230 = vst [vmem:[#allocation41_spill] sm:$0xff] %v4418_v59  ;;  %v4425_v41 = vpop.permute.xlu1 %3076 }
 0x104   : > { %3371 = vrot.lane.b32.xlu0 %v4144_v48, %s3553_s27 }
 0x105   : > { %3366 = vrot.lane.b32.xlu1 %v5231_v20, %s3552_s24 }
 0x106   : > { %v4432_v61 = vpop.permute.xlu0 %3091 }
 0x107   : > { %v4440_v48 = vpop.permute.xlu1 %3086  ;;  %v3094_v33 = vunpack.i.h.bf16 %v4432_v61  ;;  %v3093_v27 = vunpack.i.l.bf16 %v4432_v61  ;;  %v5233_v61 = vld [vmem:[#allocation33_spill] sm:$0xff] }
 0x108   : > { %3381 = vrot.lane.b32.xlu0 %v3355_v26, %s3554_s7  ;;  %v2973_v26 = vunpack.i.l.bf16 %v4315_v42  ;;  %v3089_v49 = vunpack.i.h.bf16 %v4440_v48  ;;  %v3088_v28 = vunpack.i.l.bf16 %v4440_v48 }
 0x109   : > { %3376 = vrot.lane.b32.xlu1 %v4146_v22, %s3553_s27  ;;  %v1737_v48 = vsel %vm1733_vm7, %v1704_v39, %v3094_v33 }
 0x10a   : > { %v3102_v59 = vpop.permute.xlu0 %3101  ;;  %v1668_v25 = vsel %vm1667_vm5, %v1635_v10, %v2973_v26  ;;  %v1735_v38 = vsel %vm1733_vm7, %v1702_v46, %v3089_v49 }
 0x10b   : > { %v3097_v57 = vpop.permute.xlu1 %3096  ;;  %v1701_v10 = vsel %vm1700_vm6, %v1668_v25, %v3053_v19  ;;  %v3104_v37 = vunpack.i.h.bf16 %v3102_v59  ;;  %v3103_v7 = vunpack.i.l.bf16 %v3102_v59 }
 0x10c   : > { %3391 = vrot.lane.b32.xlu0 %v5231_v20, %s3555_s8  ;;  %v4482_v20 = vsel %vm558_vm0, %v548_v32, 0.0  ;;  %v1703_v32 = vsel %vm1700_vm6, %v1670_v35, %v3058_v50  ;;  %v3099_v26 = vunpack.i.h.bf16 %v3097_v57  ;;  %v3098_v11 = vunpack.i.l.bf16 %v3097_v57 }
 0x10d   : > { %3386 = vrot.lane.b32.xlu1 %v4446_v44, %s3554_s7  ;;  %v1736_v13 = vsel %vm1733_vm7, %v1703_v32, %v3093_v27  ;;  %v1734_v50 = vsel %vm1733_vm7, %v1701_v10, %v3088_v28 }
 0x10e   : > { %v3112_v53 = vpop.permute.xlu0 %3111  ;;  %v1769_v57 = vsel %vm1766_vm8, %v1736_v13, %v3103_v7  ;;  %v1767_v33 = vsel %vm1766_vm8, %v1734_v50, %v3098_v11 }
 0x10f   : > { %v3107_v36 = vpop.permute.xlu1 %3106  ;;  %v3114_v42 = vunpack.i.h.bf16 %v3112_v53  ;;  %v3113_v55 = vunpack.i.l.bf16 %v3112_v53  ;;  %v1770_v53 = vsel %vm1766_vm8, %v1737_v48, %v3104_v37 }
 0x110   : > { %3401 = vrot.lane.b32.xlu0 %v4146_v22, %s3556_s9  ;;  %v3109_v25 = vunpack.i.h.bf16 %v3107_v36  ;;  %v3108_v22 = vunpack.i.l.bf16 %v3107_v36  ;;  %v1768_v36 = vsel %vm1766_vm8, %v1735_v38, %v3099_v26  ;;  %v550_v38 = vmax.f32 %v4474_v21, 0.0 }
 0x111   : > { %3396 = vrot.lane.b32.xlu1 %v5233_v61, %s3555_s8  ;;  %v1802_v10 = vsel %vm1799_vm9, %v1769_v57, %v3113_v55  ;;  %v1803_v46 = vsel %vm1799_vm9, %v1770_v53, %v3114_v42  ;;  %v5237_v57 = vunpack.i.l.bf16 %v4251_v62 }
 0x112   : > { %v3122_v19 = vpop.permute.xlu0 %3121  ;;  %v1801_v28 = vsel %vm1799_vm9, %v1768_v36, %v3109_v25 }
 0x113   : > { %v3117_v23 = vpop.permute.xlu1 %3116  ;;  %v3124_v59 = vunpack.i.h.bf16 %v3122_v19  ;;  %v3123_v43 = vunpack.i.l.bf16 %v3122_v19  ;;  %v1639_v53 = vsel %vm1634_vm4, %v3660_v47, %v5237_v57  ;;  %v2914_v47 = vunpack.i.h.bf16 %v4261_v51 }
 0x114   : > { %3411 = vrot.lane.b32.xlu0 %v4446_v44, %s3551_s13  ;;  %v3119_v35 = vunpack.i.h.bf16 %v3117_v23  ;;  %v3118_v27 = vunpack.i.l.bf16 %v3117_v23  ;;  %v1800_v44 = vsel %vm1799_vm9, %v1767_v33, %v3108_v22 }
 0x115   : > { %3406 = vrot.lane.b32.xlu1 %v4166_v2, %s3556_s9  ;;  %v1835_v23 = vsel %vm1832_vm10, %v1802_v10, %v3123_v43  ;;  %v1836_v7 = vsel %vm1832_vm10, %v1803_v46, %v3124_v59  ;;  %v5236_v59 = vunpack.i.h.bf16 %v4251_v62  ;;  %v5239_v10 = vunpack.i.l.bf16 %v4257_v3 }
 0x116   : > { %v3132_v49 = vpop.permute.xlu0 %3131  ;;  %v1833_v55 = vsel %vm1832_vm10, %v1800_v44, %v3118_v27  ;;  %v1834_v13 = vsel %vm1832_vm10, %v1801_v28, %v3119_v35  ;;  %v5238_v35 = vunpack.i.h.bf16 %v4257_v3  ;;  %v1132_v62 = vrot.slane %v4478_v1, 1 }
 0x117   : > { %v3127_v32 = vpop.permute.xlu1 %3126  ;;  %v3134_v39 = vunpack.i.h.bf16 %v3132_v49  ;;  %v3133_v37 = vunpack.i.l.bf16 %v3132_v49  ;;  %v1640_v43 = vsel %vm1634_vm4, %v3652_v40, %v5236_v59  ;;  %v1641_v21 = vsel %vm1634_vm4, %v3698_v12, %v5239_v10 }
 0x118   : > { %v3129_v19 = vunpack.i.h.bf16 %v3127_v32  ;;  %v3128_v11 = vunpack.i.l.bf16 %v3127_v32  ;;  %3421 = vrot.lane.b32.xlu0 %v5233_v61, %s3552_s24  ;;  %v1642_v27 = vsel %vm1634_vm4, %v3686_v63, %v5238_v35  ;;  %v1131_v40 = vrot.slane %v4482_v20, 1  ;;  %v5240_v63 = vld [vmem:[#allocation34_spill] sm:$0xff] }
 0x119   : > { %v1868_v26 = vsel %vm1865_vm11, %v1835_v23, %v3133_v37  ;;  %v1869_v42 = vsel %vm1865_vm11, %v1836_v7, %v3134_v39  ;;  %3416 = vrot.lane.b32.xlu1 %v4454_v29, %s3551_s13  ;;  %v2913_v46 = vunpack.i.l.bf16 %v4261_v51  ;;  %v4563_v12 = vpack.i.bf16 %v4019_v31, %v4025_v18 }
 0x11a   : > { %v2633_v48 = vpack.c.bf16 %v1869_v42, %v1868_v26  ;;  %v4524_v25 = vpop.permute.xlu0 %3141  ;;  %v1866_v22 = vsel %vm1865_vm11, %v1833_v55, %v3128_v11  ;;  %v1867_v50 = vsel %vm1865_vm11, %v1834_v13, %v3129_v19  ;;  %v2983_v3 = vunpack.i.l.bf16 %v4322_v30 }
 0x11b   : > { %v3137_v33 = vpop.permute.xlu1 %3136  ;;  %v2630_v36 = vpack.c.bf16 %v1867_v50, %v1866_v22  ;;  %v4571_v28 = vsel %vm569_vm1, %v550_v38, 0.0  ;;  %v2989_v32 = vunpack.i.h.bf16 %v4331_v6  ;;  %v2988_v39 = vunpack.i.l.bf16 %v4331_v6 }
 0x11c   : > { %3431 = vrot.lane.b32.xlu0 %v4166_v2, %s3553_s27  ;;  %v2984_v2 = vunpack.i.h.bf16 %v4322_v30  ;;  %v3064_v31 = vunpack.i.h.bf16 %v4401_v4  ;;  %v3063_v18 = vunpack.i.l.bf16 %v4401_v4  ;;  %v4581_v30 = vpack.i.bf16 %v4478_v1, %v4482_v20 }
 0x11d   : > { %3426 = vrot.lane.b32.xlu1 %v5240_v63, %s3552_s24  ;;  %2824 = vmatprep.mubr.msk.bf16.mxu0 %vm4530_vm13, %v2630_v36  ;;  %v4586_v23 = vsel %vm678_vm2, %v1131_v40, %v1132_v62  ;;  %v3069_v7 = vunpack.i.h.bf16 %v4413_v8  ;;  %v3068_v6 = vunpack.i.l.bf16 %v4413_v8  ;;  %v1134_v4 = vrot.slane %v4571_v28, 1 }
 0x11e   : > { %2825 = vmatmul.mubr.msk.bf16.vlgmr.msra.gmra.mrb[0].mxu0 %vm4530_vm13, %v2633_v48  ;;  %v3152_v49 = vpop.permute.xlu0 %3151  ;;  %v1673_v19 = vsel %vm1667_vm5, %v1640_v43, %v2984_v2  ;;  %v1672_v11 = vsel %vm1667_vm5, %v1639_v53, %v2983_v3  ;;  %v1233_v42 = vrot.slane %v4478_v1, 2  ;;  %v1235_v55 = vrot.slane %v4571_v28, 2 }
 0x11f   : > { %v3147_v37 = vpop.permute.xlu1 %3146  ;;  %v1675_v13 = vsel %vm1667_vm5, %v1642_v27, %v2989_v32  ;;  %v1674_v8 = vsel %vm1667_vm5, %v1641_v21, %v2988_v39  ;;  %v3144_v48 = vunpack.i.h.bf16 %v4524_v25  ;;  %v3143_v22 = vunpack.i.l.bf16 %v4524_v25 }
 0x120   : > { %3441 = vrot.lane.b32.xlu0 %v4454_v29, %s3554_s7  ;;  %v1232_v29 = vrot.slane %v4482_v20, 2  ;;  %v1705_v38 = vsel %vm1700_vm6, %v1672_v11, %v3063_v18  ;;  %v1706_v59 = vsel %vm1700_vm6, %v1673_v19, %v3064_v31  ;;  %v3139_v43 = vunpack.i.h.bf16 %v3137_v33 }
 0x121   : > { %3436 = vrot.lane.b32.xlu1 %v4159_v24, %s3553_s27  ;;  %v3138_v57 = vunpack.i.l.bf16 %v3137_v33  ;;  %v1707_v53 = vsel %vm1700_vm6, %v1674_v8, %v3068_v6  ;;  %v1708_v35 = vsel %vm1700_vm6, %v1675_v13, %v3069_v7  ;;  %v3154_v27 = vunpack.i.h.bf16 %v3152_v49 }
 0x122   : > { %v3162_v26 = vpop.permute.xlu0 %3161  ;;  %v3153_v36 = vunpack.i.l.bf16 %v3152_v49  ;;  %v3149_v25 = vunpack.i.h.bf16 %v3147_v37  ;;  %v3148_v10 = vunpack.i.l.bf16 %v3147_v37  ;;  %v1741_v3 = vsel %vm1733_vm7, %v1708_v35, %v3144_v48 }
 0x123   : > { %v3157_v50 = vpop.permute.xlu1 %3156  ;;  %v3164_v21 = vunpack.i.h.bf16 %v3162_v26  ;;  %v3163_v40 = vunpack.i.l.bf16 %v3162_v26  ;;  %v1740_v33 = vsel %vm1733_vm7, %v1707_v53, %v3143_v22  ;;  %v1738_v39 = vsel %vm1733_vm7, %v1705_v38, %v3138_v57 }
 0x124   : > { %3451 = vrot.lane.b32.xlu0 %v5240_v63, %s3555_s8  ;;  %v3159_v44 = vunpack.i.h.bf16 %v3157_v50  ;;  %v3158_v63 = vunpack.i.l.bf16 %v3157_v50  ;;  %v1739_v31 = vsel %vm1733_vm7, %v1706_v59, %v3139_v43  ;;  %v1773_v37 = vsel %vm1766_vm8, %v1740_v33, %v3153_v36 }
 0x125   : > { %3446 = vrot.lane.b32.xlu1 %v4563_v12, %s3554_s7  ;;  %v1774_v7 = vsel %vm1766_vm8, %v1741_v3, %v3154_v27  ;;  %v1771_v11 = vsel %vm1766_vm8, %v1738_v39, %v3148_v10  ;;  %v1772_v26 = vsel %vm1766_vm8, %v1739_v31, %v3149_v25  ;;  %v1806_v13 = vsel %vm1799_vm9, %v1773_v37, %v3163_v40 }
 0x126   : > { %v3172_v2 = vpop.permute.xlu0 %3171  ;;  %v1807_v8 = vsel %vm1799_vm9, %v1774_v7, %v3164_v21  ;;  %v1805_v22 = vsel %vm1799_vm9, %v1772_v26, %v3159_v44  ;;  %v2919_v33 = vunpack.i.h.bf16 %v4269_v17  ;;  %v2918_v44 = vunpack.i.l.bf16 %v4269_v17 }
 0x127   : > { %v3167_v32 = vpop.permute.xlu1 %3166  ;;  %v3174_v49 = vunpack.i.h.bf16 %v3172_v2  ;;  %v3173_v18 = vunpack.i.l.bf16 %v3172_v2  ;;  %v1644_v17 = vsel %vm1634_vm4, %v3731_v45, %v2914_v47  ;;  %v2994_v20 = vunpack.i.h.bf16 %v4329_v16 }
 0x128   : > { %3461 = vrot.lane.b32.xlu0 %v4159_v24, %s3556_s9  ;;  %v3169_v6 = vunpack.i.h.bf16 %v3167_v32  ;;  %v3168_v19 = vunpack.i.l.bf16 %v3167_v32  ;;  %v1804_v24 = vsel %vm1799_vm9, %v1771_v11, %v3158_v63  ;;  %v1646_v28 = vsel %vm1634_vm4, %v3738_v56, %v2919_v33 }
 0x129   : > { %3456 = vrot.lane.b32.xlu1 %v4051_v34, %s3555_s8  ;;  %v1839_v43 = vsel %vm1832_vm10, %v1806_v13, %v3173_v18  ;;  %v1840_v57 = vsel %vm1832_vm10, %v1807_v8, %v3174_v49  ;;  %v2999_v45 = vunpack.i.h.bf16 %v4339_v14  ;;  %v2998_v51 = vunpack.i.l.bf16 %v4339_v14 }
 0x12a   : > { %v3182_v48 = vpop.permute.xlu0 %3181  ;;  %v1837_v27 = vsel %vm1832_vm10, %v1804_v24, %v3168_v19  ;;  %v1838_v36 = vsel %vm1832_vm10, %v1805_v22, %v3169_v6  ;;  %v3078_v56 = vunpack.i.l.bf16 %v4425_v41 }
 0x12b   : > { %v3177_v50 = vpop.permute.xlu1 %3176  ;;  %v3184_v38 = vunpack.i.h.bf16 %v3182_v48  ;;  %v3183_v59 = vunpack.i.l.bf16 %v3182_v48  ;;  %v1679_v31 = vsel %vm1667_vm5, %v1646_v28, %v2999_v45 }
 0x12c   : > { %v3179_v53 = vunpack.i.h.bf16 %v3177_v50  ;;  %v3178_v35 = vunpack.i.l.bf16 %v3177_v50  ;;  %3471 = vrot.lane.b32.xlu0 %v4563_v12, %s3551_s13  ;;  %v1135_v12 = vsel %vm678_vm2, %v1132_v62, %v1134_v4  ;;  %v1234_v62 = vsel %vm855_vm3, %v1232_v29, %v1233_v42 }
 0x12d   : > { %v1872_v25 = vsel %vm1865_vm11, %v1839_v43, %v3183_v59  ;;  %v1873_v10 = vsel %vm1865_vm11, %v1840_v57, %v3184_v38  ;;  %3466 = vrot.lane.b32.xlu1 %v4179_v9, %s3556_s9  ;;  %v3485_v39 = vpack.i.bf16 %v1135_v12, %v4586_v23  ;;  %v1643_v23 = vsel %vm1634_vm4, %v3736_v52, %v2913_v46 }
 0x12e   : > { %v1870_v21 = vsel %vm1865_vm11, %v1837_v27, %v3178_v35  ;;  %v1871_v40 = vsel %vm1865_vm11, %v1838_v36, %v3179_v53  ;;  %v2639_v2 = vpack.c.bf16 %v1873_v10, %v1872_v25  ;;  %v3192_v3 = vpop.permute.xlu0 %3191  ;;  %v2993_v4 = vunpack.i.l.bf16 %v4329_v16 }
 0x12f   : > { %v2636_v63 = vpack.c.bf16 %v1871_v40, %v1870_v21  ;;  %v3187_v32 = vpop.permute.xlu1 %3186  ;;  %v1645_v29 = vsel %vm1634_vm4, %v3749_v0, %v2918_v44  ;;  %v3074_v52 = vunpack.i.h.bf16 %v4411_v5  ;;  %v3073_v46 = vunpack.i.l.bf16 %v4411_v5 }
 0x130   : > { %3481 = vrot.lane.b32.xlu0 %v4051_v34, %s3552_s24  ;;  %v1236_v34 = vsel %vm855_vm3, %v1233_v42, %v1235_v55  ;;  %v3079_v42 = vunpack.i.h.bf16 %v4425_v41  ;;  %v1676_v0 = vsel %vm1667_vm5, %v1643_v23, %v2993_v4  ;;  %v1677_v55 = vsel %vm1667_vm5, %v1644_v17, %v2994_v20 }
 0x131   : > { %3476 = vrot.lane.b32.xlu1 %v4581_v30, %s3551_s13  ;;  %2828 = vmatprep.mubr.msk.bf16.mxu0 %vm4530_vm13, %v2636_v63  ;;  %v3495_v16 = vpack.i.bf16 %v1236_v34, %v1234_v62  ;;  %v1678_v49 = vsel %vm1667_vm5, %v1645_v29, %v2998_v51  ;;  %v3194_v5 = vunpack.i.h.bf16 %v3192_v3  ;;  %v3193_v18 = vunpack.i.l.bf16 %v3192_v3 }
 0x132   : > { %2829 = vmatmul.mubr.msk.bf16.gmra.mrb[4].mxu0 %vm4530_vm13, %v2639_v2  ;;  %v3202_v1 = vpop.permute.xlu0 %3201  ;;  %v1710_v7 = vsel %vm1700_vm6, %v1677_v55, %v3074_v52  ;;  %v3189_v6 = vunpack.i.h.bf16 %v3187_v32  ;;  %v3188_v41 = vunpack.i.l.bf16 %v3187_v32  ;;  %v1711_v19 = vsel %vm1700_vm6, %v1678_v49, %v3078_v56 }
 0x133   : > { %v3197_v47 = vpop.permute.xlu1 %3196  ;;  %v1712_v11 = vsel %vm1700_vm6, %v1679_v31, %v3079_v42  ;;  %v3204_v26 = vunpack.i.h.bf16 %v3202_v1  ;;  %v3203_v13 = vunpack.i.l.bf16 %v3202_v1  ;;  %v1744_v59 = vsel %vm1733_vm7, %v1711_v19, %v3193_v18  ;;  %v5245_v19 = vld [vmem:[#allocation10_spill] sm:$0xff] }
 0x134   : > { %3491 = vrot.lane.b32.xlu0 %v4179_v9, %s3553_s27  ;;  %v1709_v9 = vsel %vm1700_vm6, %v1676_v0, %v3073_v46  ;;  %v3199_v8 = vunpack.i.h.bf16 %v3197_v47  ;;  %v3198_v48 = vunpack.i.l.bf16 %v3197_v47  ;;  %v1745_v38 = vsel %vm1733_vm7, %v1712_v11, %v3194_v5  ;;  %v5243_v47 = vld [vmem:[#allocation3_spill] sm:$0xff] }
 0x135   : > { %3486 = vrot.lane.b32.xlu1 %v3485_v39, %s3552_s24  ;;  %v1742_v53 = vsel %vm1733_vm7, %v1709_v9, %v3188_v41  ;;  %v1743_v35 = vsel %vm1733_vm7, %v1710_v7, %v3189_v6  ;;  %v1777_v25 = vsel %vm1766_vm8, %v1744_v59, %v3203_v13  ;;  %v1778_v10 = vsel %vm1766_vm8, %v1745_v38, %v3204_v26  ;;  %v5244_v9 = vld [vmem:[#allocation19_spill] sm:$0xff]  ;;  %v5247_v13 = vld [vmem:[#allocation41_spill] sm:$0xff]  ;;  %s268_s24 = scalar_lea.vmem %s5107_s6, %s5279_s22 }
 0x136   : > { %v3212_v14 = vpop.permute.xlu0 %3211  ;;  %v5242_v2 = vmov 0.0   ;;  %v1775_v3 = vsel %vm1766_vm8, %v1742_v53, %v3198_v48  ;;  %v1776_v12 = vsel %vm1766_vm8, %v1743_v35, %v3199_v8  ;;  %v2923_v31 = vunpack.i.l.bf16 %v4271_v15  ;;  %v5246_v26 = vld [vmem:[#allocation11_spill] sm:$0xff] }
 0x137   : > { %v3207_v37 = vpop.permute.xlu1 %3206  ;;  %v3214_v24 = vunpack.i.h.bf16 %v3212_v14  ;;  %v3213_v22 = vunpack.i.l.bf16 %v3212_v14  ;;  %v2924_v14 = vunpack.i.h.bf16 %v4271_v15  ;;  %v2929_v5 = vunpack.i.h.bf16 %v4277_v60 }
 0x138   : > { %3501 = vrot.lane.b32.xlu0 %v4581_v30, %s3554_s7  ;;  %v3209_v43 = vunpack.i.h.bf16 %v3207_v37  ;;  %v3208_v57 = vunpack.i.l.bf16 %v3207_v37  ;;  %v2928_v18 = vunpack.i.l.bf16 %v4277_v60  ;;  %v3004_v37 = vunpack.i.h.bf16 %v4337_v58 }
 0x139   : > { %3496 = vrot.lane.b32.xlu1 %v3495_v16, %s3553_s27  ;;  %v1810_v33 = vsel %vm1799_vm9, %v1777_v25, %v3213_v22  ;;  %v1811_v44 = vsel %vm1799_vm9, %v1778_v10, %v3214_v24  ;;  %v3009_v7 = vunpack.i.h.bf16 %v5244_v9  ;;  %v3008_v6 = vunpack.i.l.bf16 %v5244_v9  ;;  %v5248_v24 = vld [vmem:[#allocation12_spill] sm:$0xff] }
 0x13a   : > { %v3222_v50 = vpop.permute.xlu0 %3221  ;;  %v1808_v32 = vsel %vm1799_vm9, %v1775_v3, %v3208_v57  ;;  %v1648_v11 = vsel %vm1634_vm4, %v5245_v19, %v2924_v14  ;;  %v1647_v15 = vsel %vm1634_vm4, %v5246_v26, %v2923_v31  ;;  %v3084_v8 = vunpack.i.h.bf16 %v5247_v13 }
 0x13b   : > { %v3217_v30 = vpop.permute.xlu1 %3216  ;;  %v3224_v27 = vunpack.i.h.bf16 %v3222_v50  ;;  %v3223_v36 = vunpack.i.l.bf16 %v3222_v50  ;;  %v3083_v48 = vunpack.i.l.bf16 %v5247_v13  ;;  %v1650_v22 = vsel %vm1634_vm4, %v5248_v24, %v2929_v5 }
 0x13c   : > { %3511 = vrot.lane.b32.xlu0 %v3485_v39, %s3555_s8  ;;  %v3219_v21 = vunpack.i.h.bf16 %v3217_v30  ;;  %v3218_v40 = vunpack.i.l.bf16 %v3217_v30  ;;  %v1809_v39 = vsel %vm1799_vm9, %v1776_v12, %v3209_v43  ;;  %v1681_v57 = vsel %vm1667_vm5, %v1648_v11, %v3004_v37 }
 0x13d   : > { %3506 = vrot.lane.b32.xlu1 %v5242_v2, %s3554_s7  ;;  %v1843_v23 = vsel %vm1832_vm10, %v1810_v33, %v3223_v36  ;;  %v1844_v20 = vsel %vm1832_vm10, %v1811_v44, %v3224_v27  ;;  %v1683_v35 = vsel %vm1667_vm5, %v1650_v22, %v3009_v7 }
 0x13e   : > { %v3232_v63 = vpop.permute.xlu0 %3231  ;;  %v1841_v28 = vsel %vm1832_vm10, %v1808_v32, %v3218_v40  ;;  %v1842_v29 = vsel %vm1832_vm10, %v1809_v39, %v3219_v21  ;;  %v1714_v40 = vsel %vm1700_vm6, %v1681_v57, %v3084_v8 }
 0x13f   : > { %v3227_v62 = vpop.permute.xlu1 %3226  ;;  %v3234_v34 = vunpack.i.h.bf16 %v3232_v63  ;;  %v3233_v17 = vunpack.i.l.bf16 %v3232_v63 }
 0x140   : > { %v3229_v4 = vunpack.i.h.bf16 %v3227_v62  ;;  %v3228_v1 = vunpack.i.l.bf16 %v3227_v62  ;;  %3521 = vrot.lane.b32.xlu0 %v3495_v16, %s3556_s9 }
 0x141   : > { %v1876_v45 = vsel %vm1865_vm11, %v1843_v23, %v3233_v17  ;;  %v1877_v51 = vsel %vm1865_vm11, %v1844_v20, %v3234_v34  ;;  %3516 = vrot.lane.b32.xlu1 %v5243_v47, %s3555_s8 }
 0x142   : > { %v1874_v52 = vsel %vm1865_vm11, %v1841_v28, %v3228_v1  ;;  %v1875_v46 = vsel %vm1865_vm11, %v1842_v29, %v3229_v4  ;;  %v2645_v42 = vpack.c.bf16 %v1877_v51, %v1876_v45  ;;  %v3242_v56 = vpop.permute.xlu0 %3241 }
 0x143   : > { %v2642_v0 = vpack.c.bf16 %v1875_v46, %v1874_v52  ;;  %v3237_v55 = vpop.permute.xlu1 %3236  ;;  %v3244_v38 = vunpack.i.h.bf16 %v3242_v56  ;;  %v3243_v59 = vunpack.i.l.bf16 %v3242_v56 }
 0x144   : > { %v3239_v30 = vunpack.i.h.bf16 %v3237_v55  ;;  %v3238_v53 = vunpack.i.l.bf16 %v3237_v55 }
 0x145   : > { %3526 = vrot.lane.b32.xlu1 %v3677_v54, %s3556_s9  ;;  %2832 = vmatprep.mubr.msk.bf16.mxu0 %vm4530_vm13, %v2642_v0  ;;  %v3003_v54 = vunpack.i.l.bf16 %v4337_v58  ;;  %v5249_v58 = vld [vmem:[#allocation13_spill] sm:$0xff]  ;;  %v1747_v44 = vsel %vm1733_vm7, %v1714_v40, %v3244_v38  ;;  %v5254_v40 = vld [vmem:[#allocation15_spill] sm:$0xff] }
 0x146   : > { %2833 = vmatmul.mubr.msk.bf16.gmra.mrb[8].mxu0 %vm4530_vm13, %v2645_v42  ;;  %v3252_v16 = vpop.permute.xlu0 %3251  ;;  %v1649_v50 = vsel %vm1634_vm4, %v5249_v58, %v2928_v18  ;;  %v1716_v39 = vsel %vm1700_vm6, %v1683_v35, %v3239_v30  ;;  %v5250_v58 = vld [vmem:[#allocation5_spill] sm:$0xff] }
 0x147   : > { %v3247_v49 = vpop.permute.xlu1 %3246  ;;  %v1680_v43 = vsel %vm1667_vm5, %v1647_v15, %v3003_v54  ;;  %v1682_v27 = vsel %vm1667_vm5, %v1649_v50, %v3008_v6  ;;  %v3254_v36 = vunpack.i.h.bf16 %v3252_v16  ;;  %v3253_v25 = vunpack.i.l.bf16 %v3252_v16 }
 0x148   : > { %v1713_v21 = vsel %vm1700_vm6, %v1680_v43, %v3083_v48  ;;  %v1715_v62 = vsel %vm1700_vm6, %v1682_v27, %v3238_v53  ;;  %v3249_v34 = vunpack.i.h.bf16 %v3247_v49  ;;  %v3248_v17 = vunpack.i.l.bf16 %v3247_v49  ;;  %v5251_v43 = vld [vmem:[#allocation6_spill] sm:$0xff]  ;;  %v5252_v53 = vld [vmem:[#allocation17_spill] sm:$0xff] }
 0x149   : > { %v1746_v33 = vsel %vm1733_vm7, %v1713_v21, %v3243_v59  ;;  %v1780_v20 = vsel %vm1766_vm8, %v1747_v44, %v3254_v36  ;;  %v2934_v50 = vunpack.i.h.bf16 %v5250_v58  ;;  %v2933_v38 = vunpack.i.l.bf16 %v5250_v58  ;;  %v5253_v36 = vld [vmem:[#allocation35_spill] sm:$0xff] }
 0x14a   : > { %v3262_v41 = vpop.permute.xlu0 %3261  ;;  %v1779_v23 = vsel %vm1766_vm8, %v1746_v33, %v3253_v25  ;;  %v1748_v49 = vsel %vm1733_vm7, %v1715_v62, %v3248_v17  ;;  %v1749_v5 = vsel %vm1733_vm7, %v1716_v39, %v3249_v34  ;;  %v2939_v57 = vunpack.i.h.bf16 %v5251_v43  ;;  %v5257_v62 = vld [vmem:[#allocation20_spill] sm:$0xff] }
 0x14b   : > { %v3257_v60 = vpop.permute.xlu1 %3256  ;;  %v3264_v2 = vunpack.i.h.bf16 %v3262_v41  ;;  %v3263_v3 = vunpack.i.l.bf16 %v3262_v41  ;;  %v2938_v30 = vunpack.i.l.bf16 %v5251_v43  ;;  %v3014_v35 = vunpack.i.h.bf16 %v5252_v53 }
 0x14c   : > { %v3259_v4 = vunpack.i.h.bf16 %v3257_v60  ;;  %v3258_v1 = vunpack.i.l.bf16 %v3257_v60  ;;  %v3013_v27 = vunpack.i.l.bf16 %v5252_v53  ;;  %v3019_v25 = vunpack.i.h.bf16 %v5253_v36 }
 0x14d   : > { %v1812_v29 = vsel %vm1799_vm9, %v1779_v23, %v3263_v3  ;;  %v1813_v45 = vsel %vm1799_vm9, %v1780_v20, %v3264_v2  ;;  %v1652_v2 = vsel %vm1634_vm4, %v5254_v40, %v2934_v50  ;;  %v5255_v3 = vld [vmem:[#allocation16_spill] sm:$0xff]  ;;  %v1653_v34 = vsel %vm1634_vm4, %v5257_v62, %v2938_v30  ;;  %v5258_v62 = vld [vmem:[#allocation7_spill] sm:$0xff] }
 0x14e   : > { %v3272_v10 = vpop.permute.xlu0 %3271  ;;  %v1781_v54 = vsel %vm1766_vm8, %v1748_v49, %v3258_v1  ;;  %v1782_v9 = vsel %vm1766_vm8, %v1749_v5, %v3259_v4  ;;  %v1685_v4 = vsel %vm1667_vm5, %v1652_v2, %v3014_v35 }
 0x14f   : > { %v3267_v12 = vpop.permute.xlu1 %3266  ;;  %v3274_v63 = vunpack.i.h.bf16 %v3272_v10  ;;  %v3273_v32 = vunpack.i.l.bf16 %v3272_v10  ;;  %v3018_v10 = vunpack.i.l.bf16 %v5253_v36 }
 0x150   : > { %v3269_v46 = vunpack.i.h.bf16 %v3267_v12  ;;  %v3268_v42 = vunpack.i.l.bf16 %v3267_v12  ;;  %v1651_v12 = vsel %vm1634_vm4, %v5255_v3, %v2933_v38 }
 0x151   : > { %v1845_v56 = vsel %vm1832_vm10, %v1812_v29, %v3273_v32  ;;  %v1846_v0 = vsel %vm1832_vm10, %v1813_v45, %v3274_v63  ;;  %v5256_v32 = vld [vmem:[#allocation18_spill] sm:$0xff]  ;;  %v1684_v20 = vsel %vm1667_vm5, %v1651_v12, %v3013_v27  ;;  %v1686_v45 = vsel %vm1667_vm5, %v1653_v34, %v3018_v10 }
 0x152   : > { %v3282_v28 = vpop.permute.xlu0 %3281  ;;  %v1814_v6 = vsel %vm1799_vm9, %v1781_v54, %v3268_v42  ;;  %v1815_v41 = vsel %vm1799_vm9, %v1782_v9, %v3269_v46  ;;  %v1654_v39 = vsel %vm1634_vm4, %v5256_v32, %v2939_v57  ;;  %v2944_v34 = vunpack.i.h.bf16 %v5258_v62 }
 0x153   : > { %v3277_v51 = vpop.permute.xlu1 %3276  ;;  %v3284_v47 = vunpack.i.h.bf16 %v3282_v28  ;;  %v3283_v52 = vunpack.i.l.bf16 %v3282_v28  ;;  %v1687_v29 = vsel %vm1667_vm5, %v1654_v39, %v3019_v25 }
 0x154   : > { %v3279_v55 = vunpack.i.h.bf16 %v3277_v51  ;;  %v3278_v16 = vunpack.i.l.bf16 %v3277_v51 }
 0x155   : > { %v1878_v14 = vsel %vm1865_vm11, %v1845_v56, %v3283_v52  ;;  %v1879_v31 = vsel %vm1865_vm11, %v1846_v0, %v3284_v47 }
 0x156   : > { %v2648_v18 = vpack.c.bf16 %v1879_v31, %v1878_v14  ;;  %v3292_v37 = vpop.permute.xlu0 %3291  ;;  %v1847_v26 = vsel %vm1832_vm10, %v1814_v6, %v3278_v16  ;;  %v1848_v15 = vsel %vm1832_vm10, %v1815_v41, %v3279_v55 }
 0x157   : > { %v3287_v7 = vpop.permute.xlu1 %3286  ;;  %v3294_v33 = vunpack.i.h.bf16 %v3292_v37  ;;  %v3293_v44 = vunpack.i.l.bf16 %v3292_v37 }
 0x158   : > { %v3289_v19 = vunpack.i.h.bf16 %v3287_v7  ;;  %v3288_v11 = vunpack.i.l.bf16 %v3287_v7  ;;  %2836 = vmatprep.mubr.msk.bf16.mxu0 %vm4530_vm13, %v2648_v18 }
 0x159   : > { %v1717_v46 = vsel %vm1700_vm6, %v1684_v20, %v3293_v44  ;;  %v1718_v42 = vsel %vm1700_vm6, %v1685_v4, %v3294_v33  ;;  %v5259_v20 = vld [vmem:[#allocation8_spill] sm:$0xff] }
 0x15a   : > { %v1880_v13 = vsel %vm1865_vm11, %v1847_v26, %v3288_v11  ;;  %v1881_v8 = vsel %vm1865_vm11, %v1848_v15, %v3289_v19  ;;  %v3302_v48 = vpop.permute.xlu0 %3301  ;;  %v2949_v4 = vunpack.i.h.bf16 %v5259_v20 }
 0x15b   : > { %v2651_v60 = vpack.c.bf16 %v1881_v8, %v1880_v13  ;;  %v3297_v24 = vpop.permute.xlu1 %3296  ;;  %v3304_v17 = vunpack.i.h.bf16 %v3302_v48  ;;  %v3303_v23 = vunpack.i.l.bf16 %v3302_v48 }
 0x15c   : > { %v3299_v1 = vunpack.i.h.bf16 %v3297_v24  ;;  %v3298_v28 = vunpack.i.l.bf16 %v3297_v24 }
 0x15d   : > { %2837 = vmatmul.mubr.msk.bf16.gmra.mrb[12].mxu0 %vm4530_vm13, %v2651_v60  ;;  %v1750_v16 = vsel %vm1733_vm7, %v1717_v46, %v3303_v23  ;;  %v1751_v14 = vsel %vm1733_vm7, %v1718_v42, %v3304_v17  ;;  %v2943_v17 = vunpack.i.l.bf16 %v5258_v62  ;;  %v5262_v42 = vld [vmem:[#allocation21_spill] sm:$0xff] }
 0x15e   : > { %v3312_v22 = vpop.permute.xlu0 %3311  ;;  %v1720_v5 = vsel %vm1700_vm6, %v1687_v29, %v3299_v1  ;;  %v1719_v18 = vsel %vm1700_vm6, %v1686_v45, %v3298_v28  ;;  %v2948_v1 = vunpack.i.l.bf16 %v5259_v20  ;;  %v5260_v28 = vld [vmem:[#allocation22_spill] sm:$0xff] }
 0x15f   : > { %v3307_v59 = vpop.permute.xlu1 %3306  ;;  %v3314_v51 = vunpack.i.h.bf16 %v3312_v22  ;;  %v3313_v47 = vunpack.i.l.bf16 %v3312_v22  ;;  %v3024_v29 = vunpack.i.h.bf16 %v5260_v28  ;;  %v3023_v45 = vunpack.i.l.bf16 %v5260_v28 }
 0x160   : > { %v3309_v37 = vunpack.i.h.bf16 %v3307_v59  ;;  %v3308_v54 = vunpack.i.l.bf16 %v3307_v59 }
 0x161   : > { %v1783_v9 = vsel %vm1766_vm8, %v1750_v16, %v3313_v47  ;;  %v1784_v7 = vsel %vm1766_vm8, %v1751_v14, %v3314_v51  ;;  %v5261_v51 = vld [vmem:[#allocation36_spill] sm:$0xff] }
 0x162   : > { %v3322_v21 = vpop.permute.xlu0 %3321  ;;  %v1752_v43 = vsel %vm1733_vm7, %v1719_v18, %v3308_v54  ;;  %v1753_v57 = vsel %vm1733_vm7, %v1720_v5, %v3309_v37  ;;  %v3029_v47 = vunpack.i.h.bf16 %v5261_v51  ;;  %v5265_v18 = vld [vmem:[#allocation26_spill] sm:$0xff] }
 0x163   : > { %v3317_v63 = vpop.permute.xlu1 %3316  ;;  %v3324_v56 = vunpack.i.h.bf16 %v3322_v21  ;;  %v3323_v0 = vunpack.i.l.bf16 %v3322_v21  ;;  %v1657_v37 = vsel %vm1634_vm4, %v5265_v18, %v2948_v1  ;;  %v5266_v18 = vld [vmem:[#allocation9_spill] sm:$0xff] }
 0x164   : > { %v3319_v6 = vunpack.i.h.bf16 %v3317_v63  ;;  %v3318_v41 = vunpack.i.l.bf16 %v3317_v63 }
 0x165   : > { %v1816_v11 = vsel %vm1799_vm9, %v1783_v9, %v3323_v0  ;;  %v1817_v26 = vsel %vm1799_vm9, %v1784_v7, %v3324_v56  ;;  %v1656_v56 = vsel %vm1634_vm4, %v5262_v42, %v2944_v34  ;;  %v5263_v0 = vld [vmem:[#allocation23_spill] sm:$0xff] }
 0x166   : > { %v3332_v52 = vpop.permute.xlu0 %3331  ;;  %v1785_v35 = vsel %vm1766_vm8, %v1752_v43, %v3318_v41  ;;  %v1786_v27 = vsel %vm1766_vm8, %v1753_v57, %v3319_v6  ;;  %v1689_v6 = vsel %vm1667_vm5, %v1656_v56, %v3024_v29 }
 0x167   : > { %v3327_v55 = vpop.permute.xlu1 %3326  ;;  %v3334_v31 = vunpack.i.h.bf16 %v3332_v52  ;;  %v3333_v49 = vunpack.i.l.bf16 %v3332_v52  ;;  %v3028_v52 = vunpack.i.l.bf16 %v5261_v51 }
 0x168   : > { %v3329_v48 = vunpack.i.h.bf16 %v3327_v55  ;;  %v3328_v60 = vunpack.i.l.bf16 %v3327_v55  ;;  %v1655_v55 = vsel %vm1634_vm4, %v5263_v0, %v2943_v17 }
 0x169   : > { %v1849_v24 = vsel %vm1832_vm10, %v1816_v11, %v3333_v49  ;;  %v1850_v22 = vsel %vm1832_vm10, %v1817_v26, %v3334_v31  ;;  %v5264_v49 = vld [vmem:[#allocation24_spill] sm:$0xff]  ;;  %v1688_v7 = vsel %vm1667_vm5, %v1655_v55, %v3023_v45  ;;  %v1690_v26 = vsel %vm1667_vm5, %v1657_v37, %v3028_v52 }
 0x16a   : > { %v3342_v19 = vpop.permute.xlu0 %3341  ;;  %v1818_v25 = vsel %vm1799_vm9, %v1785_v35, %v3328_v60  ;;  %v1819_v10 = vsel %vm1799_vm9, %v1786_v27, %v3329_v48  ;;  %v1658_v5 = vsel %vm1634_vm4, %v5264_v49, %v2949_v4  ;;  %v2954_v37 = vunpack.i.h.bf16 %v5266_v18 }
 0x16b   : > { %v3337_v15 = vpop.permute.xlu1 %3336  ;;  %v3344_v13 = vunpack.i.h.bf16 %v3342_v19  ;;  %v3343_v8 = vunpack.i.l.bf16 %v3342_v19  ;;  %v1691_v11 = vsel %vm1667_vm5, %v1658_v5, %v3029_v47 }
 0x16c   : > { %v3339_v58 = vunpack.i.h.bf16 %v3337_v15  ;;  %v3338_v50 = vunpack.i.l.bf16 %v3337_v15 }
 0x16d   : > { %v1882_v38 = vsel %vm1865_vm11, %v1849_v24, %v3343_v8  ;;  %v1883_v59 = vsel %vm1865_vm11, %v1850_v22, %v3344_v13 }
 0x16e   : > { %v3352_v30 = vpop.permute.xlu0 %3351  ;;  %v2654_v53 = vpack.c.bf16 %v1883_v59, %v1882_v38  ;;  %v1851_v2 = vsel %vm1832_vm10, %v1818_v25, %v3338_v50  ;;  %v1852_v3 = vsel %vm1832_vm10, %v1819_v10, %v3339_v58 }
 0x16f   : > { %v3347_v36 = vpop.permute.xlu1 %3346  ;;  %v3354_v16 = vunpack.i.h.bf16 %v3352_v30  ;;  %v3353_v14 = vunpack.i.l.bf16 %v3352_v30 }
 0x170   : > { %v3349_v21 = vunpack.i.h.bf16 %v3347_v36  ;;  %v3348_v40 = vunpack.i.l.bf16 %v3347_v36  ;;  %2840 = vmatprep.mubr.msk.bf16.mxu1 %vm4530_vm13, %v2654_v53 }
 0x171   : > { %v1721_v48 = vsel %vm1700_vm6, %v1688_v7, %v3353_v14  ;;  %v1722_v60 = vsel %vm1700_vm6, %v1689_v6, %v3354_v16  ;;  %v5267_v7 = vld [vmem:[#allocation14_spill] sm:$0xff] }
 0x172   : > { %v1884_v12 = vsel %vm1865_vm11, %v1851_v2, %v3348_v40  ;;  %v1885_v33 = vsel %vm1865_vm11, %v1852_v3, %v3349_v21  ;;  %v3362_v44 = vpop.permute.xlu0 %3361  ;;  %v2959_v6 = vunpack.i.h.bf16 %v5267_v7 }
 0x173   : > { %v2657_v63 = vpack.c.bf16 %v1885_v33, %v1884_v12  ;;  %v3357_v32 = vpop.permute.xlu1 %3356  ;;  %v3364_v54 = vunpack.i.h.bf16 %v3362_v44  ;;  %v3363_v9 = vunpack.i.l.bf16 %v3362_v44 }
 0x174   : > { %v3359_v41 = vunpack.i.h.bf16 %v3357_v32  ;;  %v3358_v19 = vunpack.i.l.bf16 %v3357_v32 }
 0x175   : > { %2841 = vmatmul.mubr.msk.bf16.vlgmr.msra.gmra.mrb[0].mxu1 %vm4530_vm13, %v2657_v63  ;;  %v1754_v50 = vsel %vm1733_vm7, %v1721_v48, %v3363_v9  ;;  %v1755_v38 = vsel %vm1733_vm7, %v1722_v60, %v3364_v54  ;;  %v2953_v54 = vunpack.i.l.bf16 %v5266_v18  ;;  %v5270_v60 = vld [vmem:[#allocation27_spill] sm:$0xff] }
 0x176   : > { %v3372_v39 = vpop.permute.xlu0 %3371  ;;  %v1724_v57 = vsel %vm1700_vm6, %v1691_v11, %v3359_v41  ;;  %v1723_v30 = vsel %vm1700_vm6, %v1690_v26, %v3358_v19  ;;  %v2958_v41 = vunpack.i.l.bf16 %v5267_v7  ;;  %v5268_v19 = vld [vmem:[#allocation25_spill] sm:$0xff] }
 0x177   : > { %v3367_v23 = vpop.permute.xlu1 %3366  ;;  %v3374_v15 = vunpack.i.h.bf16 %v3372_v39  ;;  %v3373_v13 = vunpack.i.l.bf16 %v3372_v39  ;;  %v3034_v11 = vunpack.i.h.bf16 %v5268_v19  ;;  %v3033_v26 = vunpack.i.l.bf16 %v5268_v19 }
 0x178   : > { %v3369_v53 = vunpack.i.h.bf16 %v3367_v23  ;;  %v3368_v35 = vunpack.i.l.bf16 %v3367_v23 }
 0x179   : > { %v1787_v27 = vsel %vm1766_vm8, %v1754_v50, %v3373_v13  ;;  %v1788_v36 = vsel %vm1766_vm8, %v1755_v38, %v3374_v15  ;;  %v5269_v15 = vld [vmem:[#allocation37_spill] sm:$0xff] }
 0x17a   : > { %v3382_v46 = vpop.permute.xlu0 %3381  ;;  %v1756_v20 = vsel %vm1733_vm7, %v1723_v30, %v3368_v35  ;;  %v1757_v4 = vsel %vm1733_vm7, %v1724_v57, %v3369_v53  ;;  %v3039_v13 = vunpack.i.h.bf16 %v5269_v15  ;;  %v5273_v30 = vld [vmem:[#allocation32_spill] sm:$0xff] }
 0x17b   : > { %v3377_v31 = vpop.permute.xlu1 %3376  ;;  %v3384_v24 = vunpack.i.h.bf16 %v3382_v46  ;;  %v3383_v22 = vunpack.i.l.bf16 %v3382_v46  ;;  %v1661_v53 = vsel %vm1634_vm4, %v5273_v30, %v2958_v41 }
 0x17c   : > { %v3379_v25 = vunpack.i.h.bf16 %v3377_v31  ;;  %v3378_v10 = vunpack.i.l.bf16 %v3377_v31 }
 0x17d   : > { %v1820_v40 = vsel %vm1799_vm9, %v1787_v27, %v3383_v22  ;;  %v1821_v2 = vsel %vm1799_vm9, %v1788_v36, %v3384_v24  ;;  %v1660_v24 = vsel %vm1634_vm4, %v5270_v60, %v2954_v37  ;;  %v5271_v22 = vld [vmem:[#allocation29_spill] sm:$0xff] }
 0x17e   : > { %v3392_v8 = vpop.permute.xlu0 %3391  ;;  %v1789_v29 = vsel %vm1766_vm8, %v1756_v20, %v3378_v10  ;;  %v1790_v45 = vsel %vm1766_vm8, %v1757_v4, %v3379_v25  ;;  %v1693_v25 = vsel %vm1667_vm5, %v1660_v24, %v3034_v11 }
 0x17f   : > { %v3387_v58 = vpop.permute.xlu1 %3386  ;;  %v3394_v59 = vunpack.i.h.bf16 %v3392_v8  ;;  %v3393_v43 = vunpack.i.l.bf16 %v3392_v8  ;;  %v3038_v8 = vunpack.i.l.bf16 %v5269_v15 }
 0x180   : > { %v3389_v44 = vunpack.i.h.bf16 %v3387_v58  ;;  %v3388_v63 = vunpack.i.l.bf16 %v3387_v58  ;;  %v1659_v58 = vsel %vm1634_vm4, %v5271_v22, %v2953_v54 }
 0x181   : > { %v1853_v32 = vsel %vm1832_vm10, %v1820_v40, %v3393_v43  ;;  %v1854_v39 = vsel %vm1832_vm10, %v1821_v2, %v3394_v59  ;;  %v5272_v43 = vld [vmem:[#allocation30_spill] sm:$0xff]  ;;  %v1692_v36 = vsel %vm1667_vm5, %v1659_v58, %v3033_v26  ;;  %v1694_v2 = vsel %vm1667_vm5, %v1661_v53, %v3038_v8 }
 0x182   : > { %v3402_v21 = vpop.permute.xlu0 %3401  ;;  %v1822_v47 = vsel %vm1799_vm9, %v1789_v29, %v3388_v63  ;;  %v1823_v52 = vsel %vm1799_vm9, %v1790_v45, %v3389_v44  ;;  %v1662_v57 = vsel %vm1634_vm4, %v5272_v43, %v2959_v6 }
 0x183   : > { %v3397_v3 = vpop.permute.xlu1 %3396  ;;  %v3404_v12 = vunpack.i.h.bf16 %v3402_v21  ;;  %v3403_v33 = vunpack.i.l.bf16 %v3402_v21  ;;  %v1695_v40 = vsel %vm1667_vm5, %v1662_v57, %v3039_v13 }
 0x184   : > { %v3399_v62 = vunpack.i.h.bf16 %v3397_v3  ;;  %v3398_v34 = vunpack.i.l.bf16 %v3397_v3 }
 0x185   : > { %v1886_v17 = vsel %vm1865_vm11, %v1853_v32, %v3403_v33  ;;  %v1887_v23 = vsel %vm1865_vm11, %v1854_v39, %v3404_v12 }
 0x186   : > { %v2660_v1 = vpack.c.bf16 %v1887_v23, %v1886_v17  ;;  %v3412_v28 = vpop.permute.xlu0 %3411  ;;  %v1855_v56 = vsel %vm1832_vm10, %v1822_v47, %v3398_v34  ;;  %v1856_v0 = vsel %vm1832_vm10, %v1823_v52, %v3399_v62 }
 0x187   : > { %v3407_v51 = vpop.permute.xlu1 %3406  ;;  %v3414_v50 = vunpack.i.h.bf16 %v3412_v28  ;;  %v3413_v38 = vunpack.i.l.bf16 %v3412_v28 }
 0x188   : > { %v3409_v46 = vunpack.i.h.bf16 %v3407_v51  ;;  %v3408_v42 = vunpack.i.l.bf16 %v3407_v51  ;;  %2844 = vmatprep.mubr.msk.bf16.mxu1 %vm4530_vm13, %v2660_v1 }
 0x189   : > { %v1725_v44 = vsel %vm1700_vm6, %v1692_v36, %v3413_v38  ;;  %v1726_v63 = vsel %vm1700_vm6, %v1693_v25, %v3414_v50 }
 0x18a   : > { %v1888_v55 = vsel %vm1865_vm11, %v1855_v56, %v3408_v42  ;;  %v1889_v16 = vsel %vm1865_vm11, %v1856_v0, %v3409_v46  ;;  %v3422_v14 = vpop.permute.xlu0 %3421 }
 0x18b   : > { %v2663_v31 = vpack.c.bf16 %v1889_v16, %v1888_v55  ;;  %v3417_v49 = vpop.permute.xlu1 %3416  ;;  %v3424_v35 = vunpack.i.h.bf16 %v3422_v14  ;;  %v3423_v27 = vunpack.i.l.bf16 %v3422_v14 }
 0x18c   : > { %v3419_v10 = vunpack.i.h.bf16 %v3417_v49  ;;  %v3418_v21 = vunpack.i.l.bf16 %v3417_v49 }
 0x18d   : > { %2845 = vmatmul.mubr.msk.bf16.gmra.mrb[4].mxu1 %vm4530_vm13, %v2663_v31  ;;  %v1758_v34 = vsel %vm1733_vm7, %v1725_v44, %v3423_v27  ;;  %v1759_v17 = vsel %vm1733_vm7, %v1726_v63, %v3424_v35  ;;  %v5275_v63 = vld [vmem:[#allocation39_spill] sm:$0xff] }
 0x18e   : > { %v3432_v5 = vpop.permute.xlu0 %3431  ;;  %v1728_v4 = vsel %vm1700_vm6, %v1695_v40, %v3419_v10  ;;  %v1727_v1 = vsel %vm1700_vm6, %v1694_v2, %v3418_v21 }
 0x18f   : > { %v3427_v9 = vpop.permute.xlu1 %3426  ;;  %v3434_v3 = vunpack.i.h.bf16 %v3432_v5  ;;  %v3433_v12 = vunpack.i.l.bf16 %v3432_v5 }
 0x190   : > { %v3429_v28 = vunpack.i.h.bf16 %v3427_v9  ;;  %v3428_v29 = vunpack.i.l.bf16 %v3427_v9 }
 0x191   : > { %v1791_v45 = vsel %vm1766_vm8, %v1758_v34, %v3433_v12  ;;  %v1792_v51 = vsel %vm1766_vm8, %v1759_v17, %v3434_v3 }
 0x192   : > { %v3442_v48 = vpop.permute.xlu0 %3441  ;;  %v1760_v7 = vsel %vm1733_vm7, %v1727_v1, %v3428_v29  ;;  %v1761_v6 = vsel %vm1733_vm7, %v1728_v4, %v3429_v28  ;;  %v5276_v1 = vld [vmem:[#allocation28_spill] sm:$0xff] }
 0x193   : > { %v3437_v59 = vpop.permute.xlu1 %3436  ;;  %v3444_v32 = vunpack.i.h.bf16 %v3442_v48  ;;  %v3443_v39 = vunpack.i.l.bf16 %v3442_v48  ;;  %v5277_v29 = vld [vmem:[#allocation40_spill] sm:$0xff] }
 0x194   : > { %v3439_v47 = vunpack.i.h.bf16 %v3437_v59  ;;  %v3438_v52 = vunpack.i.l.bf16 %v3437_v59 }
 0x195   : > { %v1824_v42 = vsel %vm1799_vm9, %v1791_v45, %v3443_v39  ;;  %v1825_v56 = vsel %vm1799_vm9, %v1792_v51, %v3444_v32 }
 0x196   : > { %v3452_v33 = vpop.permute.xlu0 %3451  ;;  %v1793_v11 = vsel %vm1766_vm8, %v1760_v7, %v3438_v52  ;;  %v1794_v26 = vsel %vm1766_vm8, %v1761_v6, %v3439_v47 }
 0x197   : > { %v3447_v62 = vpop.permute.xlu1 %3446  ;;  %v3454_v23 = vunpack.i.h.bf16 %v3452_v33  ;;  %v3453_v20 = vunpack.i.l.bf16 %v3452_v33  ;;  %v5274_v33 = vld [vmem:[#allocation38_spill] sm:$0xff] }
 0x198   : > { %v3449_v14 = vunpack.i.h.bf16 %v3447_v62  ;;  %v3448_v31 = vunpack.i.l.bf16 %v3447_v62 }
 0x199   : > { %v1857_v49 = vsel %vm1832_vm10, %v1824_v42, %v3453_v20  ;;  %v1858_v5 = vsel %vm1832_vm10, %v1825_v56, %v3454_v23 }
 0x19a   : > { %v3462_v46 = vpop.permute.xlu0 %3461  ;;  %v1826_v13 = vsel %vm1799_vm9, %v1793_v11, %v3448_v31  ;;  %v1827_v8 = vsel %vm1799_vm9, %v1794_v26, %v3449_v14 }
 0x19b   : > { %v3457_v0 = vpop.permute.xlu1 %3456  ;;  %v3464_v55 = vunpack.i.h.bf16 %v3462_v46  ;;  %v3463_v16 = vunpack.i.l.bf16 %v3462_v46 }
 0x19c   : > { %v3459_v18 = vunpack.i.h.bf16 %v3457_v0  ;;  %v3458_v37 = vunpack.i.l.bf16 %v3457_v0 }
 0x19d   : > { %v1890_v54 = vsel %vm1865_vm11, %v1857_v49, %v3463_v16  ;;  %v1891_v9 = vsel %vm1865_vm11, %v1858_v5, %v3464_v55 }
 0x19e   : > { %v2666_v41 = vpack.c.bf16 %v1891_v9, %v1890_v54  ;;  %v3472_v19 = vpop.permute.xlu0 %3471  ;;  %v1859_v24 = vsel %vm1832_vm10, %v1826_v13, %v3458_v37  ;;  %v1860_v22 = vsel %vm1832_vm10, %v1827_v8, %v3459_v18 }
 0x19f   : > { %v3467_v15 = vpop.permute.xlu1 %3466  ;;  %v3474_v35 = vunpack.i.h.bf16 %v3472_v19  ;;  %v3473_v27 = vunpack.i.l.bf16 %v3472_v19 }
 0x1a0   : > { %v3469_v48 = vunpack.i.h.bf16 %v3467_v15  ;;  %v3468_v60 = vunpack.i.l.bf16 %v3467_v15  ;;  %2848 = vmatprep.mubr.msk.bf16.mxu1 %vm4530_vm13, %v2666_v41 }
 0x1a1   : > { %v1729_v44 = vsel %vm1700_vm6, %v5274_v33, %v3473_v27  ;;  %v1730_v32 = vsel %vm1700_vm6, %v5275_v63, %v3474_v35 }
 0x1a2   : > { %v1892_v58 = vsel %vm1865_vm11, %v1859_v24, %v3468_v60  ;;  %v1893_v50 = vsel %vm1865_vm11, %v1860_v22, %v3469_v48  ;;  %v3482_v38 = vpop.permute.xlu0 %3481 }
 0x1a3   : > { %v2669_v59 = vpack.c.bf16 %v1893_v50, %v1892_v58  ;;  %v3477_v43 = vpop.permute.xlu1 %3476  ;;  %v3484_v25 = vunpack.i.h.bf16 %v3482_v38  ;;  %v3483_v10 = vunpack.i.l.bf16 %v3482_v38 }
 0x1a4   : > { %v3479_v21 = vunpack.i.h.bf16 %v3477_v43  ;;  %v3478_v40 = vunpack.i.l.bf16 %v3477_v43 }
 0x1a5   : > { %2849 = vmatmul.mubr.msk.bf16.gmra.mrb[8].mxu1 %vm4530_vm13, %v2669_v59  ;;  %v1762_v17 = vsel %vm1733_vm7, %v1729_v44, %v3483_v10  ;;  %v1763_v23 = vsel %vm1733_vm7, %v1730_v32, %v3484_v25 }
 0x1a6   : > { %v3492_v57 = vpop.permute.xlu0 %3491  ;;  %v1732_v28 = vsel %vm1700_vm6, %v5276_v1, %v3479_v21  ;;  %v1731_v45 = vsel %vm1700_vm6, %v5277_v29, %v3478_v40 }
 0x1a7   : > { %v3487_v30 = vpop.permute.xlu1 %3486  ;;  %v3494_v2 = vunpack.i.h.bf16 %v3492_v57  ;;  %v3493_v3 = vunpack.i.l.bf16 %v3492_v57 }
 0x1a8   : > { %v3489_v51 = vunpack.i.h.bf16 %v3487_v30  ;;  %v3488_v47 = vunpack.i.l.bf16 %v3487_v30 }
 0x1a9   : > { %v1795_v52 = vsel %vm1766_vm8, %v1762_v17, %v3493_v3  ;;  %v1796_v46 = vsel %vm1766_vm8, %v1763_v23, %v3494_v2 }
 0x1aa   : > { %v3502_v53 = vpop.permute.xlu0 %3501  ;;  %v1764_v19 = vsel %vm1733_vm7, %v1731_v45, %v3488_v47  ;;  %v1765_v11 = vsel %vm1733_vm7, %v1732_v28, %v3489_v51 }
 0x1ab   : > { %v3497_v36 = vpop.permute.xlu1 %3496  ;;  %v3504_v39 = vunpack.i.h.bf16 %v3502_v53  ;;  %v3503_v62 = vunpack.i.l.bf16 %v3502_v53 }
 0x1ac   : > { %v3499_v42 = vunpack.i.h.bf16 %v3497_v36  ;;  %v3498_v56 = vunpack.i.l.bf16 %v3497_v36 }
 0x1ad   : > { %v1828_v55 = vsel %vm1799_vm9, %v1795_v52, %v3503_v62  ;;  %v1829_v16 = vsel %vm1799_vm9, %v1796_v46, %v3504_v39 }
 0x1ae   : > { %v3512_v12 = vpop.permute.xlu0 %3511  ;;  %v1797_v15 = vsel %vm1766_vm8, %v1764_v19, %v3498_v56  ;;  %v1798_v13 = vsel %vm1766_vm8, %v1765_v11, %v3499_v42 }
 0x1af   : > { %v3507_v34 = vpop.permute.xlu1 %3506  ;;  %v3514_v20 = vunpack.i.h.bf16 %v3512_v12  ;;  %v3513_v4 = vunpack.i.l.bf16 %v3512_v12 }
 0x1b0   : > { %v3509_v5 = vunpack.i.h.bf16 %v3507_v34  ;;  %v3508_v18 = vunpack.i.l.bf16 %v3507_v34 }
 0x1b1   : > { %v1861_v37 = vsel %vm1832_vm10, %v1828_v55, %v3513_v4  ;;  %v1862_v54 = vsel %vm1832_vm10, %v1829_v16, %v3514_v20 }
 0x1b2   : > { %v3522_v0 = vpop.permute.xlu0 %3521  ;;  %v1830_v48 = vsel %vm1799_vm9, %v1797_v15, %v3508_v18  ;;  %v1831_v60 = vsel %vm1799_vm9, %v1798_v13, %v3509_v5 }
 0x1b3   : > { %v3517_v14 = vpop.permute.xlu1 %3516  ;;  %v3524_v31 = vunpack.i.h.bf16 %v3522_v0  ;;  %v3523_v49 = vunpack.i.l.bf16 %v3522_v0 }
 0x1b4   : > { %v3519_v9 = vunpack.i.h.bf16 %v3517_v14  ;;  %v3518_v7 = vunpack.i.l.bf16 %v3517_v14 }
 0x1b5   : > { %v1894_v6 = vsel %vm1865_vm11, %v1861_v37, %v3523_v49  ;;  %v1895_v41 = vsel %vm1865_vm11, %v1862_v54, %v3524_v31 }
 0x1b6   : > { %v2672_v26 = vpack.c.bf16 %v1895_v41, %v1894_v6  ;;  %v1863_v58 = vsel %vm1832_vm10, %v1830_v48, %v3518_v7  ;;  %v1864_v50 = vsel %vm1832_vm10, %v1831_v60, %v3519_v9 }
 0x1b7   : > { %v3527_v8 = vpop.permute.xlu1 %3526 }
 0x1b8   : > { %v3529_v24 = vunpack.i.h.bf16 %v3527_v8  ;;  %v3528_v22 = vunpack.i.l.bf16 %v3527_v8  ;;  %2852 = vmatprep.mubr.msk.bf16.mxu1 %vm4530_vm13, %v2672_v26 }
 0x1ba   : > { %v1896_v38 = vsel %vm1865_vm11, %v1863_v58, %v3528_v22  ;;  %v1897_v59 = vsel %vm1865_vm11, %v1864_v50, %v3529_v24 }
 0x1bb   : > { %v2675_v43 = vpack.c.bf16 %v1897_v59, %v1896_v38 }
 0x1bd   : > { %2853 = vmatmul.mubr.msk.bf16.gmra.mrb[12].mxu1 %vm4530_vm13, %v2675_v43 }
 0x1f1   : > { %v2826_v57 = vpop.f32.mrb[0].mxu0 }
 0x1f2   : > { %v2714_v30 = vpack.c.bf16 %v2826_v57, %v2826_v57  ;;  %v2045_v53 = vpop.f32.mrb[1].mxu0  ;;  %v2406_v61 = vmul.f32 %v2826_v57, %v2826_v57  ;;  %v2336_v33 = vsel %vm1634_vm4, %v2826_v57, 0.0 }
 0x1f3   : > { %v2712_v35 = vpack.c.bf16 %v2045_v53, %v2045_v53  ;;  %v2404_v27 = vmul.f32 %v2045_v53, %v2045_v53  ;;  %v2827_v36 = vpop.f32.mrb[2].mxu0  ;;  %v2333_v21 = vsel %vm1634_vm4, %v2045_v53, 0.0 }
 0x1f4   : > { %2303 = vst.msk [vmem:[%s4960_s16 + $0x8] sm:$0xf] %vm2300_vm14, %v2714_v30  ;;  %v2715_v25 = vpack.c.bf16 %v2827_v36, %v2827_v36  ;;  %v2048_v10 = vpop.f32.mrb[3].mxu0  ;;  %v2407_v63 = vmul.f32 %v2827_v36, %v2827_v36  ;;  %v2439_v34 = vsel %vm1634_vm4, %v2406_v61, 0.0  ;;  %v2338_v17 = vsel %vm1634_vm4, %v2827_v36, 0.0 }
 0x1f5   : > { %2301 = vst.msk [vmem:[%s4960_s16] sm:$0xf] %vm2300_vm14, %v2712_v35  ;;  %v2713_v40 = vpack.c.bf16 %v2048_v10, %v2048_v10  ;;  %v2334_v2 = vsel %vm1634_vm4, %v2048_v10, 0.0  ;;  %v2405_v3 = vmul.f32 %v2048_v10, %v2048_v10  ;;  %v2436_v44 = vsel %vm1634_vm4, %v2404_v27, 0.0 }
 0x1f6   : > { %2304 = vst.msk [vmem:[%s4960_s16 + $0xc] sm:$0xf] %vm2300_vm14, %v2715_v25  ;;  %v2335_v12 = vadd.f32 %v2334_v2, %v2333_v21  ;;  %v2441_v4 = vsel %vm1634_vm4, %v2407_v63, 0.0 }
 0x1f7   : > { %2302 = vst.msk [vmem:[%s4960_s16 + $0x4] sm:$0xf] %vm2300_vm14, %v2713_v40  ;;  %v2437_v32 = vsel %vm1634_vm4, %v2405_v3, 0.0 }
 0x1f8   : > { %v2337_v39 = vadd.f32 %v2336_v33, %v2335_v12  ;;  %v2438_v62 = vadd.f32 %v2437_v32, %v2436_v44 }
 0x1fa   : > { %v2440_v23 = vadd.f32 %v2439_v34, %v2438_v62  ;;  %v2339_v20 = vadd.f32 %v2338_v17, %v2337_v39 }
 0x1fc   : > { %v2442_v1 = vadd.f32 %v2441_v4, %v2440_v23 }
 0x205   : > { %v2830_v28 = vpop.f32.mrb[4].mxu0 }
 0x206   : > { %v2718_v29 = vpack.c.bf16 %v2830_v28, %v2830_v28  ;;  %v2061_v45 = vpop.f32.mrb[5].mxu0  ;;  %v2410_v31 = vmul.f32 %v2830_v28, %v2830_v28  ;;  %v2344_v37 = vsel %vm1634_vm4, %v2830_v28, 0.0 }
 0x207   : > { %v2716_v51 = vpack.c.bf16 %v2061_v45, %v2061_v45  ;;  %v2340_v47 = vsel %vm1634_vm4, %v2061_v45, 0.0  ;;  %v2408_v52 = vmul.f32 %v2061_v45, %v2061_v45  ;;  %v2831_v46 = vpop.f32.mrb[6].mxu0 }
 0x208   : > { %2307 = vst.msk [vmem:[%s4960_s16 + $0x18] sm:$0xf] %vm2300_vm14, %v2718_v29  ;;  %v2341_v42 = vadd.f32 %v2340_v47, %v2339_v20  ;;  %v2719_v56 = vpack.c.bf16 %v2831_v46, %v2831_v46  ;;  %v2064_v0 = vpop.f32.mrb[7].mxu0  ;;  %v2411_v54 = vmul.f32 %v2831_v46, %v2831_v46  ;;  %v2346_v6 = vsel %vm1634_vm4, %v2831_v46, 0.0 }
 0x209   : > { %2305 = vst.msk [vmem:[%s4960_s16 + $0x10] sm:$0xf] %vm2300_vm14, %v2716_v51  ;;  %v2443_v55 = vsel %vm1634_vm4, %v2408_v52, 0.0  ;;  %v2717_v16 = vpack.c.bf16 %v2064_v0, %v2064_v0  ;;  %v2342_v14 = vsel %vm1634_vm4, %v2064_v0, 0.0  ;;  %v2409_v18 = vmul.f32 %v2064_v0, %v2064_v0 }
 0x20a   : > { %v2444_v49 = vadd.f32 %v2443_v55, %v2442_v1  ;;  %2308 = vst.msk [vmem:[%s4960_s16 + $0x1c] sm:$0xf] %vm2300_vm14, %v2719_v56  ;;  %v2343_v5 = vadd.f32 %v2342_v14, %v2341_v42  ;;  %v2447_v19 = vsel %vm1634_vm4, %v2410_v31, 0.0  ;;  %v2449_v15 = vsel %vm1634_vm4, %v2411_v54, 0.0 }
 0x20b   : > { %2306 = vst.msk [vmem:[%s4960_s16 + $0x14] sm:$0xf] %vm2300_vm14, %v2717_v16  ;;  %v2445_v7 = vsel %vm1634_vm4, %v2409_v18, 0.0 }
 0x20c   : > { %v2345_v9 = vadd.f32 %v2344_v37, %v2343_v5  ;;  %v2446_v41 = vadd.f32 %v2445_v7, %v2444_v49 }
 0x20e   : > { %v2347_v11 = vadd.f32 %v2346_v6, %v2345_v9  ;;  %v2448_v26 = vadd.f32 %v2447_v19, %v2446_v41 }
 0x210   : > { %v2450_v13 = vadd.f32 %v2449_v15, %v2448_v26 }
 0x219   : > { %v2834_v8 = vpop.f32.mrb[8].mxu0 }
 0x21a   : > { %v2722_v48 = vpack.c.bf16 %v2834_v8, %v2834_v8  ;;  %v2077_v60 = vpop.f32.mrb[9].mxu0  ;;  %v2414_v35 = vmul.f32 %v2834_v8, %v2834_v8  ;;  %v2352_v25 = vsel %vm1634_vm4, %v2834_v8, 0.0 }
 0x21b   : > { %v2720_v24 = vpack.c.bf16 %v2077_v60, %v2077_v60  ;;  %v2348_v22 = vsel %vm1634_vm4, %v2077_v60, 0.0  ;;  %v2412_v58 = vmul.f32 %v2077_v60, %v2077_v60  ;;  %v2835_v50 = vpop.f32.mrb[10].mxu0 }
 0x21c   : > { %2311 = vst.msk [vmem:[%s4960_s16 + $0x28] sm:$0xf] %vm2300_vm14, %v2722_v48  ;;  %v2349_v38 = vadd.f32 %v2348_v22, %v2347_v11  ;;  %v2723_v59 = vpack.c.bf16 %v2835_v50, %v2835_v50  ;;  %v2080_v43 = vpop.f32.mrb[11].mxu0  ;;  %v2415_v10 = vmul.f32 %v2835_v50, %v2835_v50  ;;  %v2354_v2 = vsel %vm1634_vm4, %v2835_v50, 0.0 }
 0x21d   : > { %2309 = vst.msk [vmem:[%s4960_s16 + $0x20] sm:$0xf] %vm2300_vm14, %v2720_v24  ;;  %v2451_v57 = vsel %vm1634_vm4, %v2412_v58, 0.0  ;;  %v2721_v30 = vpack.c.bf16 %v2080_v43, %v2080_v43  ;;  %v2350_v53 = vsel %vm1634_vm4, %v2080_v43, 0.0  ;;  %v2413_v61 = vmul.f32 %v2080_v43, %v2080_v43 }
 0x21e   : > { %v2452_v27 = vadd.f32 %v2451_v57, %v2450_v13  ;;  %2312 = vst.msk [vmem:[%s4960_s16 + $0x2c] sm:$0xf] %vm2300_vm14, %v2723_v59  ;;  %v2351_v36 = vadd.f32 %v2350_v53, %v2349_v38  ;;  %v2455_v12 = vsel %vm1634_vm4, %v2414_v35, 0.0  ;;  %v2457_v63 = vsel %vm1634_vm4, %v2415_v10, 0.0 }
 0x21f   : > { %2310 = vst.msk [vmem:[%s4960_s16 + $0x24] sm:$0xf] %vm2300_vm14, %v2721_v30  ;;  %v2453_v40 = vsel %vm1634_vm4, %v2413_v61, 0.0 }
 0x220   : > { %v2353_v21 = vadd.f32 %v2352_v25, %v2351_v36  ;;  %v2454_v3 = vadd.f32 %v2453_v40, %v2452_v27 }
 0x222   : > { %v2355_v33 = vadd.f32 %v2354_v2, %v2353_v21  ;;  %v2456_v44 = vadd.f32 %v2455_v12, %v2454_v3 }
 0x224   : > { %v2458_v32 = vadd.f32 %v2457_v63, %v2456_v44 }
 0x230   : > { %v2838_v39 = vpop.f32.mrb[12].mxu0 }
 0x231   : > { %v2726_v62 = vpack.c.bf16 %v2838_v39, %v2838_v39  ;;  %v2093_v34 = vpop.f32.mrb[13].mxu0  ;;  %v2418_v52 = vmul.f32 %v2838_v39, %v2838_v39  ;;  %v2360_v0 = vsel %vm1634_vm4, %v2838_v39, 0.0 }
 0x232   : > { %v2724_v17 = vpack.c.bf16 %v2093_v34, %v2093_v34  ;;  %v2356_v23 = vsel %vm1634_vm4, %v2093_v34, 0.0  ;;  %v2416_v20 = vmul.f32 %v2093_v34, %v2093_v34  ;;  %v2839_v4 = vpop.f32.mrb[14].mxu0 }
 0x233   : > { %2315 = vst.msk [vmem:[%s4960_s16 + $0x38] sm:$0xf] %vm2300_vm14, %v2726_v62  ;;  %v2357_v1 = vadd.f32 %v2356_v23, %v2355_v33  ;;  %v2727_v28 = vpack.c.bf16 %v2839_v4, %v2839_v4  ;;  %v2096_v29 = vpop.f32.mrb[15].mxu0  ;;  %v2419_v55 = vmul.f32 %v2839_v4, %v2839_v4  ;;  %v2362_v31 = vsel %vm1634_vm4, %v2839_v4, 0.0 }
 0x234   : > { %2313 = vst.msk [vmem:[%s4960_s16 + $0x30] sm:$0xf] %vm2300_vm14, %v2724_v17  ;;  %v2459_v45 = vsel %vm1634_vm4, %v2416_v20, 0.0  ;;  %v2725_v51 = vpack.c.bf16 %v2096_v29, %v2096_v29  ;;  %v2358_v47 = vsel %vm1634_vm4, %v2096_v29, 0.0  ;;  %v2417_v56 = vmul.f32 %v2096_v29, %v2096_v29 }
 0x235   : > { %v2460_v46 = vadd.f32 %v2459_v45, %v2458_v32  ;;  %2316 = vst.msk [vmem:[%s4960_s16 + $0x3c] sm:$0xf] %vm2300_vm14, %v2727_v28  ;;  %v2359_v42 = vadd.f32 %v2358_v47, %v2357_v1  ;;  %v2463_v5 = vsel %vm1634_vm4, %v2418_v52, 0.0  ;;  %v2465_v54 = vsel %vm1634_vm4, %v2419_v55, 0.0 }
 0x236   : > { %2314 = vst.msk [vmem:[%s4960_s16 + $0x34] sm:$0xf] %vm2300_vm14, %v2725_v51  ;;  %v2461_v14 = vsel %vm1634_vm4, %v2417_v56, 0.0 }
 0x237   : > { %v2361_v16 = vadd.f32 %v2360_v0, %v2359_v42  ;;  %v2462_v49 = vadd.f32 %v2461_v14, %v2460_v46 }
 0x239   : > { %v2363_v18 = vadd.f32 %v2362_v31, %v2361_v16  ;;  %v2464_v37 = vadd.f32 %v2463_v5, %v2462_v49 }
 0x23b   : > { %v2466_v9 = vadd.f32 %v2465_v54, %v2464_v37 }
 0x248   : > { %v2842_v7 = vpop.f32.mrb[0].mxu1 }
 0x249   : > { %v2730_v6 = vpack.c.bf16 %v2842_v7, %v2842_v7  ;;  %v2109_v41 = vpop.f32.mrb[1].mxu1  ;;  %v2422_v58 = vmul.f32 %v2842_v7, %v2842_v7  ;;  %v2368_v43 = vsel %vm1634_vm4, %v2842_v7, 0.0 }
 0x24a   : > { %v2728_v19 = vpack.c.bf16 %v2109_v41, %v2109_v41  ;;  %v2364_v11 = vsel %vm1634_vm4, %v2109_v41, 0.0  ;;  %v2420_v26 = vmul.f32 %v2109_v41, %v2109_v41  ;;  %v2843_v15 = vpop.f32.mrb[2].mxu1 }
 0x24b   : > { %2319 = vst.msk [vmem:[%s4960_s16 + $0x48] sm:$0xf] %vm2300_vm14, %v2730_v6  ;;  %v2365_v13 = vadd.f32 %v2364_v11, %v2363_v18  ;;  %v2731_v8 = vpack.c.bf16 %v2843_v15, %v2843_v15  ;;  %v2112_v48 = vpop.f32.mrb[3].mxu1  ;;  %v2423_v57 = vmul.f32 %v2843_v15, %v2843_v15  ;;  %v2370_v35 = vsel %vm1634_vm4, %v2843_v15, 0.0 }
 0x24c   : > { %2317 = vst.msk [vmem:[%s4960_s16 + $0x40] sm:$0xf] %vm2300_vm14, %v2728_v19  ;;  %v2467_v60 = vsel %vm1634_vm4, %v2420_v26, 0.0  ;;  %v2729_v24 = vpack.c.bf16 %v2112_v48, %v2112_v48  ;;  %v2366_v22 = vsel %vm1634_vm4, %v2112_v48, 0.0  ;;  %v2421_v59 = vmul.f32 %v2112_v48, %v2112_v48 }
 0x24d   : > { %v2468_v50 = vadd.f32 %v2467_v60, %v2466_v9  ;;  %2320 = vst.msk [vmem:[%s4960_s16 + $0x4c] sm:$0xf] %vm2300_vm14, %v2731_v8  ;;  %v2367_v38 = vadd.f32 %v2366_v22, %v2365_v13  ;;  %v2471_v36 = vsel %vm1634_vm4, %v2422_v58, 0.0  ;;  %v2473_v10 = vsel %vm1634_vm4, %v2423_v57, 0.0 }
 0x24e   : > { %2318 = vst.msk [vmem:[%s4960_s16 + $0x44] sm:$0xf] %vm2300_vm14, %v2729_v24  ;;  %v2469_v53 = vsel %vm1634_vm4, %v2421_v59, 0.0 }
 0x24f   : > { %v2369_v30 = vadd.f32 %v2368_v43, %v2367_v38  ;;  %v2470_v27 = vadd.f32 %v2469_v53, %v2468_v50 }
 0x251   : > { %v2371_v61 = vadd.f32 %v2370_v35, %v2369_v30  ;;  %v2472_v25 = vadd.f32 %v2471_v36, %v2470_v27 }
 0x253   : > { %v2474_v21 = vadd.f32 %v2473_v10, %v2472_v25 }
 0x260   : > { %v2846_v40 = vpop.f32.mrb[4].mxu1 }
 0x261   : > { %v2734_v2 = vpack.c.bf16 %v2846_v40, %v2846_v40  ;;  %v2125_v3 = vpop.f32.mrb[5].mxu1  ;;  %v2426_v20 = vmul.f32 %v2846_v40, %v2846_v40  ;;  %v2376_v29 = vsel %vm1634_vm4, %v2846_v40, 0.0 }
 0x262   : > { %v2732_v12 = vpack.c.bf16 %v2125_v3, %v2125_v3  ;;  %v2372_v33 = vsel %vm1634_vm4, %v2125_v3, 0.0  ;;  %v2424_v44 = vmul.f32 %v2125_v3, %v2125_v3  ;;  %v2847_v63 = vpop.f32.mrb[6].mxu1 }
 0x263   : > { %2323 = vst.msk [vmem:[%s4960_s16 + $0x58] sm:$0xf] %vm2300_vm14, %v2734_v2  ;;  %v2373_v32 = vadd.f32 %v2372_v33, %v2371_v61  ;;  %v2735_v39 = vpack.c.bf16 %v2847_v63, %v2847_v63  ;;  %v2128_v62 = vpop.f32.mrb[7].mxu1  ;;  %v2427_v45 = vmul.f32 %v2847_v63, %v2847_v63  ;;  %v2378_v52 = vsel %vm1634_vm4, %v2847_v63, 0.0 }
 0x264   : > { %2321 = vst.msk [vmem:[%s4960_s16 + $0x50] sm:$0xf] %vm2300_vm14, %v2732_v12  ;;  %v2475_v34 = vsel %vm1634_vm4, %v2424_v44, 0.0  ;;  %v2733_v17 = vpack.c.bf16 %v2128_v62, %v2128_v62  ;;  %v2374_v23 = vsel %vm1634_vm4, %v2128_v62, 0.0  ;;  %v2425_v28 = vmul.f32 %v2128_v62, %v2128_v62 }
 0x265   : > { %v2476_v4 = vadd.f32 %v2475_v34, %v2474_v21  ;;  %2324 = vst.msk [vmem:[%s4960_s16 + $0x5c] sm:$0xf] %vm2300_vm14, %v2735_v39  ;;  %v2375_v1 = vadd.f32 %v2374_v23, %v2373_v32  ;;  %v2479_v42 = vsel %vm1634_vm4, %v2426_v20, 0.0  ;;  %v2481_v55 = vsel %vm1634_vm4, %v2427_v45, 0.0 }
 0x266   : > { %2322 = vst.msk [vmem:[%s4960_s16 + $0x54] sm:$0xf] %vm2300_vm14, %v2733_v17  ;;  %v2477_v47 = vsel %vm1634_vm4, %v2425_v28, 0.0 }
 0x267   : > { %v2377_v51 = vadd.f32 %v2376_v29, %v2375_v1  ;;  %v2478_v46 = vadd.f32 %v2477_v47, %v2476_v4 }
 0x269   : > { %v2379_v56 = vadd.f32 %v2378_v52, %v2377_v51  ;;  %v2480_v0 = vadd.f32 %v2479_v42, %v2478_v46 }
 0x26b   : > { %v2482_v16 = vadd.f32 %v2481_v55, %v2480_v0 }
 0x278   : > { %v2850_v14 = vpop.f32.mrb[8].mxu1 }
 0x279   : > { %v2738_v31 = vpack.c.bf16 %v2850_v14, %v2850_v14  ;;  %v2141_v49 = vpop.f32.mrb[9].mxu1  ;;  %v2430_v26 = vmul.f32 %v2850_v14, %v2850_v14  ;;  %v2384_v48 = vsel %vm1634_vm4, %v2850_v14, 0.0 }
 0x27a   : > { %v2736_v5 = vpack.c.bf16 %v2141_v49, %v2141_v49  ;;  %v2380_v18 = vsel %vm1634_vm4, %v2141_v49, 0.0  ;;  %v2428_v37 = vmul.f32 %v2141_v49, %v2141_v49  ;;  %v2851_v54 = vpop.f32.mrb[10].mxu1 }
 0x27b   : > { %2327 = vst.msk [vmem:[%s4960_s16 + $0x68] sm:$0xf] %vm2300_vm14, %v2738_v31  ;;  %v2381_v9 = vadd.f32 %v2380_v18, %v2379_v56  ;;  %v2739_v7 = vpack.c.bf16 %v2851_v54, %v2851_v54  ;;  %v2144_v6 = vpop.f32.mrb[11].mxu1  ;;  %v2431_v60 = vmul.f32 %v2851_v54, %v2851_v54  ;;  %v2386_v58 = vsel %vm1634_vm4, %v2851_v54, 0.0 }
 0x27c   : > { %2325 = vst.msk [vmem:[%s4960_s16 + $0x60] sm:$0xf] %vm2300_vm14, %v2736_v5  ;;  %v2483_v41 = vsel %vm1634_vm4, %v2428_v37, 0.0  ;;  %v2737_v19 = vpack.c.bf16 %v2144_v6, %v2144_v6  ;;  %v2382_v11 = vsel %vm1634_vm4, %v2144_v6, 0.0  ;;  %v2429_v8 = vmul.f32 %v2144_v6, %v2144_v6 }
 0x27d   : > { %v2484_v15 = vadd.f32 %v2483_v41, %v2482_v16  ;;  %2328 = vst.msk [vmem:[%s4960_s16 + $0x6c] sm:$0xf] %vm2300_vm14, %v2739_v7  ;;  %v2383_v13 = vadd.f32 %v2382_v11, %v2381_v9  ;;  %v2487_v38 = vsel %vm1634_vm4, %v2430_v26, 0.0  ;;  %v2489_v57 = vsel %vm1634_vm4, %v2431_v60, 0.0 }
 0x27e   : > { %2326 = vst.msk [vmem:[%s4960_s16 + $0x64] sm:$0xf] %vm2300_vm14, %v2737_v19  ;;  %v2485_v22 = vsel %vm1634_vm4, %v2429_v8, 0.0 }
 0x27f   : > { %v2385_v24 = vadd.f32 %v2384_v48, %v2383_v13  ;;  %v2486_v50 = vadd.f32 %v2485_v22, %v2484_v15 }
 0x281   : > { %v2387_v59 = vadd.f32 %v2386_v58, %v2385_v24  ;;  %v2488_v43 = vadd.f32 %v2487_v38, %v2486_v50 }
 0x283   : > { %v2490_v30 = vadd.f32 %v2489_v57, %v2488_v43 }
 0x290   : > { %v2854_v53 = vpop.f32.mrb[12].mxu1 }
 0x291   : > { %v2742_v35 = vpack.c.bf16 %v2854_v53, %v2854_v53  ;;  %v2157_v27 = vpop.f32.mrb[13].mxu1  ;;  %v2434_v44 = vmul.f32 %v2854_v53, %v2854_v53  ;;  %v2392_v62 = vsel %vm1634_vm4, %v2854_v53, 0.0 }
 0x292   : > { %v2740_v36 = vpack.c.bf16 %v2157_v27, %v2157_v27  ;;  %v2388_v61 = vsel %vm1634_vm4, %v2157_v27, 0.0  ;;  %v2432_v25 = vmul.f32 %v2157_v27, %v2157_v27  ;;  %v2855_v10 = vpop.f32.mrb[14].mxu1 }
 0x293   : > { %2331 = vst.msk [vmem:[%s4960_s16 + $0x78] sm:$0xf] %vm2300_vm14, %v2742_v35  ;;  %v2389_v21 = vadd.f32 %v2388_v61, %v2387_v59  ;;  %v2743_v40 = vpack.c.bf16 %v2855_v10, %v2855_v10  ;;  %v2160_v2 = vpop.f32.mrb[15].mxu1  ;;  %v2435_v34 = vmul.f32 %v2855_v10, %v2855_v10  ;;  %v2394_v20 = vsel %vm1634_vm4, %v2855_v10, 0.0 }
 0x294   : > { %2329 = vst.msk [vmem:[%s4960_s16 + $0x70] sm:$0xf] %vm2300_vm14, %v2740_v36  ;;  %v2491_v3 = vsel %vm1634_vm4, %v2432_v25, 0.0  ;;  %v2741_v12 = vpack.c.bf16 %v2160_v2, %v2160_v2  ;;  %v2390_v33 = vsel %vm1634_vm4, %v2160_v2, 0.0  ;;  %v2433_v39 = vmul.f32 %v2160_v2, %v2160_v2 }
 0x295   : > { %v2492_v63 = vadd.f32 %v2491_v3, %v2490_v30  ;;  %2332 = vst.msk [vmem:[%s4960_s16 + $0x7c] sm:$0xf] %vm2300_vm14, %v2743_v40  ;;  %v2391_v32 = vadd.f32 %v2390_v33, %v2389_v21  ;;  %v2495_v1 = vsel %vm1634_vm4, %v2434_v44, 0.0  ;;  %v2497_v45 = vsel %vm1634_vm4, %v2435_v34, 0.0 }
 0x296   : > { %2330 = vst.msk [vmem:[%s4960_s16 + $0x74] sm:$0xf] %vm2300_vm14, %v2741_v12  ;;  %v2493_v23 = vsel %vm1634_vm4, %v2433_v39, 0.0 }
 0x297   : > { %v2393_v17 = vadd.f32 %v2392_v62, %v2391_v32  ;;  %v2494_v4 = vadd.f32 %v2493_v23, %v2492_v63 }
 0x299   : > { %v2395_v28 = vadd.f32 %v2394_v20, %v2393_v17  ;;  %v2496_v29 = vadd.f32 %v2495_v1, %v2494_v4 }
 0x29b   : > { %v2396_v51 = vrot.slane %v2395_v28, 4  ;;  %v2498_v47 = vadd.f32 %v2497_v45, %v2496_v29 }
 0x29d   : > { %v2397_v52 = vadd.f32 %v2396_v51, %v2395_v28  ;;  %v2499_v46 = vrot.slane %v2498_v47, 4 }
 0x29f   : > { %v2398_v42 = vrot.slane %v2397_v52, 2  ;;  %v2500_v56 = vadd.f32 %v2499_v46, %v2498_v47 }
 0x2a1   : > { %v2399_v0 = vadd.f32 %v2398_v42, %v2397_v52  ;;  %v2501_v55 = vrot.slane %v2500_v56, 2 }
 0x2a3   : > { %v2400_v16 = vrot.slane %v2399_v0, 1  ;;  %v2502_v14 = vadd.f32 %v2501_v55, %v2500_v56 }
 0x2a5   : > { %v2401_v31 = vadd.f32 %v2400_v16, %v2399_v0  ;;  %v2503_v49 = vrot.slane %v2502_v14, 1 }
 0x2a7   : > { %2403 = vst.msk [vmem:[%s265_s19] sm:$0x1] %vm2402_vm15, %v2401_v31  ;;  %v2504_v5 = vadd.f32 %v2503_v49, %v2502_v14 }
 0x2a9   : > { %2505 = vst.msk [vmem:[%s268_s24] sm:$0x1] %vm2402_vm15, %v2504_v5 }
 0x2aa PF: > { %s17_s21 = sadd.s32 1, %s3546_s21  }
 0x2ab   : > { %p14_p4 = scmp.ge.s32.totalorder %s17_s21, 4  }
 0x2ad   :  { %16 = sbr.rel (!%p14_p4) target bundleno = 1 (0x1), region = 90 }

</bundles_post_ra>
